<compile_context>
chip_gen: v7x
topology: tpu7x:2x2x1
jax: 0.10.0
libtpu: 0.0.40
codegen_flags: <defaults>
</compile_context>

<pallas_src>
import numpy as np
import jax
import jax.numpy as jnp
from jax import lax
from jax.experimental import pallas as pl
from jax.experimental.pallas import tpu as pltpu


def _round_up(x, m):
    return (x + m - 1) // m * m


# ---------------------------------------------------------------------------
# Parameter construction (matches CompactBilinearPooling.__init__ seeds)
# ---------------------------------------------------------------------------
def generate_sketch_matrix(rand_h, rand_s, output_dim):
    input_dim = len(rand_h)
    m = np.zeros((input_dim, output_dim), dtype=np.float32)
    m[np.arange(input_dim), rand_h.astype(np.int64)] = rand_s.astype(np.float32)
    return m


def make_sketch_matrices(input_dim1, input_dim2, output_dim):
    np.random.seed(1)
    rand_h_1 = np.random.randint(output_dim, size=input_dim1)
    np.random.seed(3)
    rand_s_1 = 2 * np.random.randint(2, size=input_dim1) - 1
    np.random.seed(5)
    rand_h_2 = np.random.randint(output_dim, size=input_dim2)
    np.random.seed(7)
    rand_s_2 = 2 * np.random.randint(2, size=input_dim2) - 1
    return (jnp.asarray(generate_sketch_matrix(rand_h_1, rand_s_1, output_dim)),
            jnp.asarray(generate_sketch_matrix(rand_h_2, rand_s_2, output_dim)))


# ---------------------------------------------------------------------------
# Pallas kernel
# ---------------------------------------------------------------------------
def _make_cbp_kernel(sum_pool, inv_out_dim, out_dim, block_f):
    TN = (((0,), (0,)), ((), ()))   # contract dim 0 of both (transposed-LHS matmul)
    NT = (((1,), (1,)), ((), ()))   # contract dim 1 of both (transposed-RHS matmul)

    def kernel(x1_ref, x2_ref, w1_ref, w2_ref, cos_ref, sin_ref, o_ref,
               s1_ref, s2_ref):
        h = pl.program_id(2)
        f = pl.program_id(3)
        last_h = pl.num_programs(2) - 1
        last_f = pl.num_programs(3) - 1

        # ---- count-sketch: once per (batch, split, hw-tile), cached in VMEM ----
        # (inputs are already in compute_dtype; no in-kernel cast needed)
        @pl.when(f == 0)
        def _():
            s1_ref[...] = lax.dot_general(                 # [THW, Dp]
                x1_ref[0], w1_ref[...], TN,
                preferred_element_type=jnp.float32).astype(s1_ref.dtype)
            s2_ref[...] = lax.dot_general(
                x2_ref[0], w2_ref[...], TN,
                preferred_element_type=jnp.float32).astype(s2_ref.dtype)

        if sum_pool:
            is_first = (h == 0) & (f == 0)
            is_last = (h == last_h) & (f == last_f)
        else:
            is_first = f == 0
            is_last = f == last_f

        @pl.when(is_first)
        def _():
            o_ref[...] = jnp.zeros_like(o_ref)

        cosb = cos_ref[...]                                # [Dp, block_f]
        sinb = sin_ref[...]
        s1 = s1_ref[...]
        s2 = s2_ref[...]

        # Forward half-spectrum DFT of this frequency tile.  *_im holds the
        # NEGATED imaginary part; the sign is folded into the algebra below.
        a_re = jnp.dot(s1, cosb, preferred_element_type=jnp.float32)
        a_im = jnp.dot(s1, sinb, preferred_element_type=jnp.float32)
        b_re = jnp.dot(s2, cosb, preferred_element_type=jnp.float32)
        b_im = jnp.dot(s2, sinb, preferred_element_type=jnp.float32)

        p_re = a_re * b_re - a_im * b_im                   #  Re(F1 * F2)
        p_im = a_re * b_im + a_im * b_re                   # -Im(F1 * F2)

        if sum_pool:
            # Linearity: reduce over the tile's pixels BEFORE the inverse DFT.
            p_re = jnp.sum(p_re, axis=0, keepdims=True)    # [1, block_f]
            p_im = jnp.sum(p_im, axis=0, keepdims=True)

        # Hermitian weight: 1 for k == 0 and k == D/2 (D even), else 2.
        k_idx = f * block_f + lax.broadcasted_iota(jnp.int32, (1, block_f), 1)
        wt = jnp.where((k_idx == 0) | (k_idx * 2 == out_dim),
                       jnp.float32(1.0), jnp.float32(2.0))
        p_re = p_re * wt
        p_im = p_im * wt

        # Partial inverse DFT, accumulated straight into the resident output
        # block (no summed f32 temporary).  conv = Re(P)@cos - Im(P)@sin; with
        # the folded sign of Im both terms are additions.
        cdt = cosb.dtype
        if sum_pool:
            o_ref[0, 0] += lax.dot_general(p_re.astype(cdt), cosb, NT,
                                           preferred_element_type=jnp.float32)
            o_ref[0, 0] += lax.dot_general(p_im.astype(cdt), sinb, NT,
                                           preferred_element_type=jnp.float32)
        else:
            o_ref[0] += lax.dot_general(p_re.astype(cdt), cosb, NT,
                                        preferred_element_type=jnp.float32)
            o_ref[0] += lax.dot_general(p_im.astype(cdt), sinb, NT,
                                        preferred_element_type=jnp.float32)

        @pl.when(is_last)
        def _():
            o_ref[...] = o_ref[...] * inv_out_dim          # fold 1/D once

    return kernel


def compact_bilinear_pooling(x1, x2, w1, w2, output_dim, *, sum_pool=True,
                             block_hw=512, block_f=256,
                             compute_dtype=jnp.bfloat16,
                             vmem_headroom_bytes=16 << 20):
    """x1: [B, C1, H, W], x2: [B, C2, H, W] (NCHW), w*: [C*, output_dim].
    Returns float32 [B, output_dim] if sum_pool else [B, H, W, output_dim]."""
    B, C1, H, W = x1.shape
    C2 = x2.shape[1]
    HW = H * W
    D = int(output_dim)
    assert w1.shape == (C1, D) and w2.shape == (C2, D)

    csize = jnp.dtype(compute_dtype).itemsize

    # ---- tile / padding geometry -------------------------------------------
    Dp = _round_up(D, 128)                        # padded output (time) dim
    Kh = D // 2 + 1                               # rfft half-spectrum length
    Kp_full = _round_up(Kh, 128)
    Cp1, Cp2 = _round_up(C1, 8), _round_up(C2, 8)

    block_hw = _round_up(min(block_hw, _round_up(HW, 128)), 128)
    block_f = _round_up(min(block_f, Kp_full), 128)

    try:
        vmem_cap = int(pltpu.get_tpu_info().vmem_capacity_bytes)
    except Exception:                              # conservative: v7x per-TC VMEM
        vmem_cap = 64 << 20
    budget = max(vmem_cap - vmem_headroom_bytes, 16 << 20)

    def vmem_tally(bhw, bf, freq_resident):
        t = 2 * (Cp1 + Cp2) * bhw * csize                     # double-buffered x tiles
        t += (Cp1 + Cp2) * Dp * csize                         # single-buffered sketch mats
        t += (1 if freq_resident else 2) * 2 * Dp * bf * csize  # cos + sin tiles
        t += 2 * bhw * Dp * csize                             # s1/s2 sketch scratch
        t += 2 * (Dp * 4 if sum_pool else bhw * Dp * 4)       # output block(s), f32
        return t

    # Prefer fully resident cos/sin (constant index map -> DMA'd once).
    if vmem_tally(block_hw, Kp_full, True) <= budget:
        block_f = Kp_full
    else:
        while block_f > 128 and vmem_tally(block_hw, block_f,
                                           block_f == Kp_full) > budget:
            block_f -= 128                      # shrink freq tile first (cheap for MXU)
        while block_hw > 128 and vmem_tally(block_hw, block_f,
                                            block_f == Kp_full) > budget:
            block_hw -= 128                     # only then give up arithmetic intensity
    freq_resident = (block_f == Kp_full)
    Kp = _round_up(Kh, block_f)
    n_f = Kp // block_f

    n_hw_total = -(-HW // block_hw)
    # sum_pool: 2-way parallel split of the HW reduction so both v7x cores work.
    n_split = 2 if (sum_pool and n_hw_total >= 2) else 1
    n_hw = -(-n_hw_total // n_split)
    HWp = n_split * n_hw * block_hw

    # ---- inputs: NCHW -> [B, C, HW] (free reshape), cast + zero-pad ----------
    x1r = x1.reshape(B, C1, HW).astype(compute_dtype)
    x2r = x2.reshape(B, C2, HW).astype(compute_dtype)
    if (Cp1, HWp) != (C1, HW):
        x1r = jnp.pad(x1r, ((0, 0), (0, Cp1 - C1), (0, HWp - HW)))
    if (Cp2, HWp) != (C2, HW):
        x2r = jnp.pad(x2r, ((0, 0), (0, Cp2 - C2), (0, HWp - HW)))

    # ---- constants: sketch matrices and half-spectrum DFT cos/sin ------------
    # Only the matrices are zero-padded; the modulus stays D so the circular
    # convolution is exact and padded output lanes are exactly 0.
    w1p = jnp.zeros((Cp1, Dp), compute_dtype).at[:C1, :D].set(w1.astype(compute_dtype))
    w2p = jnp.zeros((Cp2, Dp), compute_dtype).at[:C2, :D].set(w2.astype(compute_dtype))

    idx_n = np.arange(D)
    idx_k = np.arange(Kh)
    ang = (2.0 * np.pi / D) * ((idx_n[:, None] * idx_k[None, :]) % D)   # exact angles
    cosm_np = np.zeros((Dp, Kp), np.float32); cosm_np[:D, :Kh] = np.cos(ang)
    sinm_np = np.zeros((Dp, Kp), np.float32); sinm_np[:D, :Kh] = np.sin(ang)
    cosm = jnp.asarray(cosm_np, dtype=compute_dtype)
    sinm = jnp.asarray(sinm_np, dtype=compute_dtype)

    # ---- grid / specs ---------------------------------------------------------
    grid = (B, n_split, n_hw, n_f)
    if sum_pool:
        out_shape = jax.ShapeDtypeStruct((B, n_split, 1, Dp), jnp.float32)
        out_spec = pl.BlockSpec((1, 1, 1, Dp), lambda b, s, h, f: (b, s, 0, 0))
        dims = ("parallel", "parallel", "arbitrary", "arbitrary")
        out_rows = n_split
    else:
        out_shape = jax.ShapeDtypeStruct((B, HWp, Dp), jnp.float32)
        out_spec = pl.BlockSpec((1, block_hw, Dp),
                                lambda b, s, h, f: (b, s * n_hw + h, 0))
        dims = ("parallel", "parallel", "parallel", "arbitrary")
        out_rows = HWp

    # ---- advisory cost estimate ----------------------------------------------
    flops = B * 2 * HWp * Dp * (Cp1 + Cp2)              # count sketch
    flops += B * 8 * HWp * Dp * Kp                      # forward half-spectrum DFT
    flops += B * 8 * HWp * Kp                           # spectrum product + weight
    if sum_pool:
        flops += B * n_split * n_hw * 4 * Kp * Dp       # inverse DFT on pooled spectrum
    else:
        flops += B * 4 * HWp * Kp * Dp                  # inverse DFT per pixel
    const_streams = 1 if freq_resident else B * n_split * n_hw
    bytes_accessed = int(x1r.size * x1r.dtype.itemsize
                         + x2r.size * x2r.dtype.itemsize
                         + (w1p.size + w2p.size) * csize
                         + const_streams * (cosm.size + sinm.size) * csize
                         + B * out_rows * Dp * 4)

    kernel = _make_cbp_kernel(sum_pool, 1.0 / D, D, block_f)
    vmem_limit = int(min(max(vmem_tally(block_hw, block_f, freq_resident) + (8 << 20),
                             32 << 20),
                         vmem_cap))

    def _run(single_buffer):
        def const_spec(shape, idx):
            # Constant-index inputs don't need double buffering.
            if single_buffer:
                return pl.BlockSpec(shape, idx, pipeline_mode=pl.Buffered(1))
            return pl.BlockSpec(shape, idx)

        if freq_resident:
            cos_spec = const_spec((Dp, block_f), lambda b, s, h, f: (0, 0))
            sin_spec = const_spec((Dp, block_f), lambda b, s, h, f: (0, 0))
        else:
            cos_spec = pl.BlockSpec((Dp, block_f), lambda b, s, h, f: (0, f))
            sin_spec = pl.BlockSpec((Dp, block_f), lambda b, s, h, f: (0, f))

        in_specs = [
            pl.BlockSpec((1, Cp1, block_hw), lambda b, s, h, f: (b, 0, s * n_hw + h)),
            pl.BlockSpec((1, Cp2, block_hw), lambda b, s, h, f: (b, 0, s * n_hw + h)),
            const_spec((Cp1, Dp), lambda b, s, h, f: (0, 0)),
            const_spec((Cp2, Dp), lambda b, s, h, f: (0, 0)),
            cos_spec,
            sin_spec,
        ]

        return pl.pallas_call(
            kernel,
            out_shape=out_shape,
            grid=grid,
            in_specs=in_specs,
            out_specs=out_spec,
            scratch_shapes=[
                pltpu.VMEM((block_hw, Dp), compute_dtype),   # cached sketch of x1 tile
                pltpu.VMEM((block_hw, Dp), compute_dtype),   # cached sketch of x2 tile
            ],
            compiler_params=pltpu.CompilerParams(
                dimension_semantics=dims,
                vmem_limit_bytes=vmem_limit),
            cost_estimate=pl.CostEstimate(flops=int(flops), transcendentals=0,
                                          bytes_accessed=bytes_accessed),
        )(x1r, x2r, w1p, w2p, cosm, sinm)

    if hasattr(pl, "Buffered"):
        try:
            result = jax.block_until_ready(_run(True))
        except Exception:
            # Fallback for JAX builds that reject single-buffered pipeline_mode.
            result = _run(False)
    else:
        result = _run(False)

    if sum_pool:
        return jnp.sum(result[:, :, 0, :D], axis=1)
    return result[:, :HW, :D].reshape(B, H, W, D)


# ---------------------------------------------------------------------------
# Pure-JAX reference (mirrors the torch rfft/irfft semantics)
# ---------------------------------------------------------------------------
def cbp_reference(x1, x2, w1, w2, sum_pool=True):
    B, C1, H, W = x1.shape
    C2 = x2.shape[1]
    x1f = jnp.transpose(x1, (0, 2, 3, 1)).reshape(-1, C1)
    x2f = jnp.transpose(x2, (0, 2, 3, 1)).reshape(-1, C2)
    s1 = x1f @ w1
    s2 = x2f @ w2
    f1 = jnp.fft.fft(s1.astype(jnp.complex64), axis=-1)
    f2 = jnp.fft.fft(s2.astype(jnp.complex64), axis=-1)
    cbp = jnp.real(jnp.fft.ifft(f1 * f2, axis=-1)).reshape(B, H, W, -1)
    if sum_pool:
        cbp = jnp.sum(cbp, axis=(1, 2))
    return cbp


if __name__ == "__main__":
    B, C1, C2, H, W, D = 2, 4, 6, 16, 16, 32

    key = jax.random.PRNGKey(0)
    k1, k2 = jax.random.split(key)
    x1 = jax.random.normal(k1, (B, C1, H, W), dtype=jnp.float32)
    x2 = jax.random.normal(k2, (B, C2, H, W), dtype=jnp.float32)
    w1, w2 = make_sketch_matrices(C1, C2, D)

    ref_sum = np.asarray(cbp_reference(x1, x2, w1, w2, sum_pool=True))

    # 1) f32 constants, sum_pool=True; block_hw=128 -> 2 hw tiles, exercising the
    #    2-way parallel split of the pooled output (summed in the wrapper).
    out_f32 = jax.block_until_ready(
        compact_bilinear_pooling(x1, x2, w1, w2, D, sum_pool=True,
                                 block_hw=128, compute_dtype=jnp.float32))
    assert out_f32.shape == (B, D)
    np.testing.assert_allclose(np.asarray(out_f32), ref_sum, rtol=1e-2, atol=1e-2)

    # 2) bf16 fast path with default tiling (resident half-spectrum DFT matrices);
    #    sanity check via relative L2 error (the f32 path is the tight check).
    out_bf16 = jax.block_until_ready(
        compact_bilinear_pooling(x1, x2, w1, w2, D, sum_pool=True))
    rel = (np.linalg.norm(np.asarray(out_bf16, dtype=np.float32) - ref_sum)
           / np.linalg.norm(ref_sum))
    assert rel < 3e-2, f"bf16 relative L2 error too large: {rel}"

    # 3) sum_pool=False: exercises HW zero-padding and the per-pixel output path.
    H2 = W2 = 12
    x1b = jax.random.normal(jax.random.PRNGKey(1), (B, C1, H2, W2), dtype=jnp.float32)
    x2b = jax.random.normal(jax.random.PRNGKey(2), (B, C2, H2, W2), dtype=jnp.float32)
    ref_map = np.asarray(cbp_reference(x1b, x2b, w1, w2, sum_pool=False))
    out_map = jax.block_until_ready(
        compact_bilinear_pooling(x1b, x2b, w1, w2, D, sum_pool=False,
                                 block_hw=128, compute_dtype=jnp.float32))
    assert out_map.shape == (B, H2, W2, D)
    np.testing.assert_allclose(np.asarray(out_map), ref_map, rtol=1e-2, atol=1e-2)

    print("KERNEL_OK")
</pallas_src>

<mosaic_0001>
module attributes {stable_mosaic.version = 11 : i64} {
  func.func @kernel(%arg0: i32, %arg1: i32, %arg2: i32, %arg3: i32, %arg4: memref<1x8x128xf32, #tpu.memory_space<vmem>>, %arg5: memref<1x8x128xf32, #tpu.memory_space<vmem>>, %arg6: memref<8x128xf32, #tpu.memory_space<vmem>>, %arg7: memref<8x128xf32, #tpu.memory_space<vmem>>, %arg8: memref<128x128xf32, #tpu.memory_space<vmem>>, %arg9: memref<128x128xf32, #tpu.memory_space<vmem>>, %arg10: memref<1x1x1x128xf32, #tpu.memory_space<vmem>>, %arg11: memref<128x128xf32, #tpu.memory_space<vmem>>, %arg12: memref<128x128xf32, #tpu.memory_space<vmem>>) attributes {dimension_semantics = [#tpu.dimension_semantics<parallel>, #tpu.dimension_semantics<parallel>, #tpu.dimension_semantics<arbitrary>, #tpu.dimension_semantics<arbitrary>], iteration_bounds = array<i64: 2, 2, 1, 1>, scalar_prefetch = 0 : i64, scratch_operands = 2 : i64, tpu.core_type = #tpu.core_type<tc>, window_params = [{transform_indices = @transform_0, window_bounds = array<i64: 1, 8, 128>}, {transform_indices = @transform_1, window_bounds = array<i64: 1, 8, 128>}, {pipeline_mode = #tpu.pipeline_mode<synchronous>, transform_indices = @transform_2, window_bounds = array<i64: 8, 128>}, {pipeline_mode = #tpu.pipeline_mode<synchronous>, transform_indices = @transform_3, window_bounds = array<i64: 8, 128>}, {pipeline_mode = #tpu.pipeline_mode<synchronous>, transform_indices = @transform_4, window_bounds = array<i64: 128, 128>}, {pipeline_mode = #tpu.pipeline_mode<synchronous>, transform_indices = @transform_5, window_bounds = array<i64: 128, 128>}, {transform_indices = @transform_6, window_bounds = array<i64: 1, 1, 1, 128>}]} {
    %c0_i32 = arith.constant 0 : i32
    %0 = arith.cmpi eq, %arg3, %c0_i32 : i32
    %1 = arith.extui %0 : i1 to i32
    %c0_i32_0 = arith.constant 0 : i32
    %2 = arith.cmpi ne, %1, %c0_i32_0 : i32
    scf.if %2 {
      %c0_40 = arith.constant 0 : index
      %c0_41 = arith.constant 0 : index
      %c0_42 = arith.constant 0 : index
      %61 = vector.load %arg4[%c0_40, %c0_41, %c0_42] : memref<1x8x128xf32, #tpu.memory_space<vmem>>, vector<1x8x128xf32>
      %62 = vector.shape_cast %61 : vector<1x8x128xf32> to vector<8x128xf32>
      %c0_43 = arith.constant 0 : index
      %c0_44 = arith.constant 0 : index
      %63 = vector.load %arg6[%c0_43, %c0_44] : memref<8x128xf32, #tpu.memory_space<vmem>>, vector<8x128xf32>
      %cst_45 = arith.constant dense<0.000000e+00> : vector<128x128xf32>
      %64 = tpu.matmul %62, %63, %cst_45 {dimension_numbers = #tpu.dot_dimension_numbers<[0], [0], [1], [1], [0, 1, 1, 1], [], []>} : vector<8x128xf32>, vector<8x128xf32>, vector<128x128xf32> -> vector<128x128xf32>
      %c0_46 = arith.constant 0 : index
      %c0_47 = arith.constant 0 : index
      %65 = vector.load %arg11[%c0_46, %c0_47] : memref<128x128xf32, #tpu.memory_space<vmem>>, vector<128x128xf32>
      tpu.vector_store %arg11[%c0_46, %c0_47], %64 {strides = array<i32>} : memref<128x128xf32, #tpu.memory_space<vmem>>, vector<128x128xf32>,
      %c0_48 = arith.constant 0 : index
      %c0_49 = arith.constant 0 : index
      %c0_50 = arith.constant 0 : index
      %66 = vector.load %arg5[%c0_48, %c0_49, %c0_50] : memref<1x8x128xf32, #tpu.memory_space<vmem>>, vector<1x8x128xf32>
      %67 = vector.shape_cast %66 : vector<1x8x128xf32> to vector<8x128xf32>
      %c0_51 = arith.constant 0 : index
      %c0_52 = arith.constant 0 : index
      %68 = vector.load %arg7[%c0_51, %c0_52] : memref<8x128xf32, #tpu.memory_space<vmem>>, vector<8x128xf32>
      %cst_53 = arith.constant dense<0.000000e+00> : vector<128x128xf32>
      %69 = tpu.matmul %67, %68, %cst_53 {dimension_numbers = #tpu.dot_dimension_numbers<[0], [0], [1], [1], [0, 1, 1, 1], [], []>} : vector<8x128xf32>, vector<8x128xf32>, vector<128x128xf32> -> vector<128x128xf32>
      %c0_54 = arith.constant 0 : index
      %c0_55 = arith.constant 0 : index
      %70 = vector.load %arg12[%c0_54, %c0_55] : memref<128x128xf32, #tpu.memory_space<vmem>>, vector<128x128xf32>
      tpu.vector_store %arg12[%c0_54, %c0_55], %69 {strides = array<i32>} : memref<128x128xf32, #tpu.memory_space<vmem>>, vector<128x128xf32>,
    } else {
    }
    %c0_i32_1 = arith.constant 0 : i32
    %3 = arith.cmpi eq, %arg2, %c0_i32_1 : i32
    %c0_i32_2 = arith.constant 0 : i32
    %4 = arith.cmpi eq, %arg3, %c0_i32_2 : i32
    %5 = arith.andi %3, %4 : i1
    %c0_i32_3 = arith.constant 0 : i32
    %6 = arith.cmpi eq, %arg2, %c0_i32_3 : i32
    %c0_i32_4 = arith.constant 0 : i32
    %7 = arith.cmpi eq, %arg3, %c0_i32_4 : i32
    %8 = arith.andi %6, %7 : i1
    %9 = arith.extui %5 : i1 to i32
    %c0_i32_5 = arith.constant 0 : i32
    %10 = arith.cmpi ne, %9, %c0_i32_5 : i32
    scf.if %10 {
      %cst_40 = arith.constant 0.000000e+00 : f32
      %61 = vector.broadcast %cst_40 : f32 to vector<1x1x1x128xf32>
      %c0_41 = arith.constant 0 : index
      %c0_42 = arith.constant 0 : index
      %c0_43 = arith.constant 0 : index
      %c0_44 = arith.constant 0 : index
      %62 = vector.load %arg10[%c0_41, %c0_42, %c0_43, %c0_44] : memref<1x1x1x128xf32, #tpu.memory_space<vmem>>, vector<1x1x1x128xf32>
      tpu.vector_store %arg10[%c0_41, %c0_42, %c0_43, %c0_44], %61 {strides = array<i32>} : memref<1x1x1x128xf32, #tpu.memory_space<vmem>>, vector<1x1x1x128xf32>,
    } else {
    }
    %c0 = arith.constant 0 : index
    %c0_6 = arith.constant 0 : index
    %11 = vector.load %arg8[%c0, %c0_6] : memref<128x128xf32, #tpu.memory_space<vmem>>, vector<128x128xf32>
    %c0_7 = arith.constant 0 : index
    %c0_8 = arith.constant 0 : index
    %12 = vector.load %arg9[%c0_7, %c0_8] : memref<128x128xf32, #tpu.memory_space<vmem>>, vector<128x128xf32>
    %c0_9 = arith.constant 0 : index
    %c0_10 = arith.constant 0 : index
    %13 = vector.load %arg11[%c0_9, %c0_10] : memref<128x128xf32, #tpu.memory_space<vmem>>, vector<128x128xf32>
    %c0_11 = arith.constant 0 : index
    %c0_12 = arith.constant 0 : index
    %14 = vector.load %arg12[%c0_11, %c0_12] : memref<128x128xf32, #tpu.memory_space<vmem>>, vector<128x128xf32>
    %cst = arith.constant dense<0.000000e+00> : vector<128x128xf32>
    %15 = tpu.matmul %13, %11, %cst {dimension_numbers = #tpu.dot_dimension_numbers<[1], [0], [0], [1], [0, 0, 1, 1], [], []>} : vector<128x128xf32>, vector<128x128xf32>, vector<128x128xf32> -> vector<128x128xf32>
    %cst_13 = arith.constant dense<0.000000e+00> : vector<128x128xf32>
    %16 = tpu.matmul %13, %12, %cst_13 {dimension_numbers = #tpu.dot_dimension_numbers<[1], [0], [0], [1], [0, 0, 1, 1], [], []>} : vector<128x128xf32>, vector<128x128xf32>, vector<128x128xf32> -> vector<128x128xf32>
    %cst_14 = arith.constant dense<0.000000e+00> : vector<128x128xf32>
    %17 = tpu.matmul %14, %11, %cst_14 {dimension_numbers = #tpu.dot_dimension_numbers<[1], [0], [0], [1], [0, 0, 1, 1], [], []>} : vector<128x128xf32>, vector<128x128xf32>, vector<128x128xf32> -> vector<128x128xf32>
    %cst_15 = arith.constant dense<0.000000e+00> : vector<128x128xf32>
    %18 = tpu.matmul %14, %12, %cst_15 {dimension_numbers = #tpu.dot_dimension_numbers<[1], [0], [0], [1], [0, 0, 1, 1], [], []>} : vector<128x128xf32>, vector<128x128xf32>, vector<128x128xf32> -> vector<128x128xf32>
    %19 = arith.mulf %15, %17 : vector<128x128xf32>
    %20 = arith.mulf %16, %18 : vector<128x128xf32>
    %21 = arith.subf %19, %20 : vector<128x128xf32>
    %22 = arith.mulf %15, %18 : vector<128x128xf32>
    %23 = arith.mulf %16, %17 : vector<128x128xf32>
    %24 = arith.addf %22, %23 : vector<128x128xf32>
    %cst_16 = arith.constant dense<0.000000e+00> : vector<128xf32>
    %25 = vector.multi_reduction <add>, %21, %cst_16 [0] : vector<128x128xf32> to vector<128xf32>
    %26 = vector.shape_cast %25 : vector<128xf32> to vector<1x128xf32>
    %cst_17 = arith.constant dense<0.000000e+00> : vector<128xf32>
    %27 = vector.multi_reduction <add>, %24, %cst_17 [0] : vector<128x128xf32> to vector<128xf32>
    %28 = vector.shape_cast %27 : vector<128xf32> to vector<1x128xf32>
    %c128_i32 = arith.constant 128 : i32
    %29 = arith.muli %arg3, %c128_i32 : i32
    %30 = tpu.iota {dimensions = array<i32: 1>} : vector<1x128xi32>
    %31 = vector.broadcast %29 : i32 to vector<1x128xi32>
    %32 = arith.addi %31, %30 : vector<1x128xi32>
    %c0_i32_18 = arith.constant 0 : i32
    %33 = vector.broadcast %c0_i32_18 : i32 to vector<1x128xi32>
    %34 = arith.cmpi eq, %32, %33 : vector<1x128xi32>
    %c2_i32 = arith.constant 2 : i32
    %35 = vector.broadcast %c2_i32 : i32 to vector<1x128xi32>
    %36 = arith.muli %32, %35 : vector<1x128xi32>
    %c32_i32 = arith.constant 32 : i32
    %37 = vector.broadcast %c32_i32 : i32 to vector<1x128xi32>
    %38 = arith.cmpi eq, %36, %37 : vector<1x128xi32>
    %39 = arith.ori %34, %38 : vector<1x128xi1>
    %cst_19 = arith.constant 1.000000e+00 : f32
    %cst_20 = arith.constant 2.000000e+00 : f32
    %40 = vector.broadcast %cst_19 : f32 to vector<1x128xf32>
    %41 = vector.broadcast %cst_20 : f32 to vector<1x128xf32>
    %42 = arith.select %39, %40, %41 : vector<1x128xi1>, vector<1x128xf32>
    %43 = arith.mulf %26, %42 : vector<1x128xf32>
    %44 = arith.mulf %28, %42 : vector<1x128xf32>
    %c0_21 = arith.constant 0 : index
    %c0_22 = arith.constant 0 : index
    %c0_23 = arith.constant 0 : index
    %c0_24 = arith.constant 0 : index
    %45 = vector.load %arg10[%c0_21, %c0_22, %c0_23, %c0_24] : memref<1x1x1x128xf32, #tpu.memory_space<vmem>>, vector<1x1x1x128xf32>
    %46 = vector.shape_cast %45 : vector<1x1x1x128xf32> to vector<1x128xf32>
    %cst_25 = arith.constant dense<0.000000e+00> : vector<1x128xf32>
    %47 = tpu.matmul %43, %11, %cst_25 {dimension_numbers = #tpu.dot_dimension_numbers<[1], [1], [0], [0], [0, 0, 1, 0], [], []>} : vector<1x128xf32>, vector<128x128xf32>, vector<1x128xf32> -> vector<1x128xf32>
    %48 = arith.addf %46, %47 : vector<1x128xf32>
    %c0_26 = arith.constant 0 : index
    %c0_27 = arith.constant 0 : index
    %c0_28 = arith.constant 0 : index
    %c0_29 = arith.constant 0 : index
    %49 = vector.load %arg10[%c0_26, %c0_27, %c0_28, %c0_29] : memref<1x1x1x128xf32, #tpu.memory_space<vmem>>, vector<1x1x1x128xf32>
    %50 = vector.shape_cast %49 : vector<1x1x1x128xf32> to vector<1x128xf32>
    %51 = vector.shape_cast %48 : vector<1x128xf32> to vector<1x1x1x128xf32>
    tpu.vector_store %arg10[%c0_26, %c0_27, %c0_28, %c0_29], %51 {strides = array<i32>} : memref<1x1x1x128xf32, #tpu.memory_space<vmem>>, vector<1x1x1x128xf32>,
    %c0_30 = arith.constant 0 : index
    %c0_31 = arith.constant 0 : index
    %c0_32 = arith.constant 0 : index
    %c0_33 = arith.constant 0 : index
    %52 = vector.load %arg10[%c0_30, %c0_31, %c0_32, %c0_33] : memref<1x1x1x128xf32, #tpu.memory_space<vmem>>, vector<1x1x1x128xf32>
    %53 = vector.shape_cast %52 : vector<1x1x1x128xf32> to vector<1x128xf32>
    %cst_34 = arith.constant dense<0.000000e+00> : vector<1x128xf32>
    %54 = tpu.matmul %44, %12, %cst_34 {dimension_numbers = #tpu.dot_dimension_numbers<[1], [1], [0], [0], [0, 0, 1, 0], [], []>} : vector<1x128xf32>, vector<128x128xf32>, vector<1x128xf32> -> vector<1x128xf32>
    %55 = arith.addf %53, %54 : vector<1x128xf32>
    %c0_35 = arith.constant 0 : index
    %c0_36 = arith.constant 0 : index
    %c0_37 = arith.constant 0 : index
    %c0_38 = arith.constant 0 : index
    %56 = vector.load %arg10[%c0_35, %c0_36, %c0_37, %c0_38] : memref<1x1x1x128xf32, #tpu.memory_space<vmem>>, vector<1x1x1x128xf32>
    %57 = vector.shape_cast %56 : vector<1x1x1x128xf32> to vector<1x128xf32>
    %58 = vector.shape_cast %55 : vector<1x128xf32> to vector<1x1x1x128xf32>
    tpu.vector_store %arg10[%c0_35, %c0_36, %c0_37, %c0_38], %58 {strides = array<i32>} : memref<1x1x1x128xf32, #tpu.memory_space<vmem>>, vector<1x1x1x128xf32>,
    %59 = arith.extui %8 : i1 to i32
    %c0_i32_39 = arith.constant 0 : i32
    %60 = arith.cmpi ne, %59, %c0_i32_39 : i32
    scf.if %60 {
      %c0_40 = arith.constant 0 : index
      %c0_41 = arith.constant 0 : index
      %c0_42 = arith.constant 0 : index
      %c0_43 = arith.constant 0 : index
      %61 = vector.load %arg10[%c0_40, %c0_41, %c0_42, %c0_43] : memref<1x1x1x128xf32, #tpu.memory_space<vmem>>, vector<1x1x1x128xf32>
      %cst_44 = arith.constant 3.125000e-02 : f32
      %62 = vector.broadcast %cst_44 : f32 to vector<1x1x1x128xf32>
      %63 = arith.mulf %61, %62 : vector<1x1x1x128xf32>
      %c0_45 = arith.constant 0 : index
      %c0_46 = arith.constant 0 : index
      %c0_47 = arith.constant 0 : index
      %c0_48 = arith.constant 0 : index
      %64 = vector.load %arg10[%c0_45, %c0_46, %c0_47, %c0_48] : memref<1x1x1x128xf32, #tpu.memory_space<vmem>>, vector<1x1x1x128xf32>
      tpu.vector_store %arg10[%c0_45, %c0_46, %c0_47, %c0_48], %63 {strides = array<i32>} : memref<1x1x1x128xf32, #tpu.memory_space<vmem>>, vector<1x1x1x128xf32>,
    } else {
    }
    return
  }
  func.func @transform_0(%arg0: i32, %arg1: i32, %arg2: i32, %arg3: i32) -> (i32, i32, i32) {
    %c1_i32 = arith.constant 1 : i32
    %0 = arith.muli %arg1, %c1_i32 : i32
    %1 = arith.addi %0, %arg2 : i32
    %c0_i32 = arith.constant 0 : i32
    %c0_i32_0 = arith.constant 0 : i32
    return %arg0, %c0_i32, %1 : i32, i32, i32
  }
  func.func @transform_1(%arg0: i32, %arg1: i32, %arg2: i32, %arg3: i32) -> (i32, i32, i32) {
    %c1_i32 = arith.constant 1 : i32
    %0 = arith.muli %arg1, %c1_i32 : i32
    %1 = arith.addi %0, %arg2 : i32
    %c0_i32 = arith.constant 0 : i32
    %c0_i32_0 = arith.constant 0 : i32
    return %arg0, %c0_i32, %1 : i32, i32, i32
  }
  func.func @transform_2(%arg0: i32, %arg1: i32, %arg2: i32, %arg3: i32) -> (i32, i32) {
    %c0_i32 = arith.constant 0 : i32
    %c0_i32_0 = arith.constant 0 : i32
    %c0_i32_1 = arith.constant 0 : i32
    return %c0_i32, %c0_i32_0 : i32, i32
  }
  func.func @transform_3(%arg0: i32, %arg1: i32, %arg2: i32, %arg3: i32) -> (i32, i32) {
    %c0_i32 = arith.constant 0 : i32
    %c0_i32_0 = arith.constant 0 : i32
    %c0_i32_1 = arith.constant 0 : i32
    return %c0_i32, %c0_i32_0 : i32, i32
  }
  func.func @transform_4(%arg0: i32, %arg1: i32, %arg2: i32, %arg3: i32) -> (i32, i32) {
    %c0_i32 = arith.constant 0 : i32
    %c0_i32_0 = arith.constant 0 : i32
    %c0_i32_1 = arith.constant 0 : i32
    return %c0_i32, %c0_i32_0 : i32, i32
  }
  func.func @transform_5(%arg0: i32, %arg1: i32, %arg2: i32, %arg3: i32) -> (i32, i32) {
    %c0_i32 = arith.constant 0 : i32
    %c0_i32_0 = arith.constant 0 : i32
    %c0_i32_1 = arith.constant 0 : i32
    return %c0_i32, %c0_i32_0 : i32, i32
  }
  func.func @transform_6(%arg0: i32, %arg1: i32, %arg2: i32, %arg3: i32) -> (i32, i32, i32, i32) {
    %c0_i32 = arith.constant 0 : i32
    %c0_i32_0 = arith.constant 0 : i32
    %c0_i32_1 = arith.constant 0 : i32
    return %arg0, %arg1, %c0_i32, %c0_i32_0 : i32, i32, i32, i32
  }
}

module attributes {stable_mosaic.version = 11 : i64} {
  func.func @kernel(%arg0: i32, %arg1: i32, %arg2: i32, %arg3: i32, %arg4: memref<1x8x128xf32, #tpu.memory_space<vmem>>, %arg5: memref<1x8x128xf32, #tpu.memory_space<vmem>>, %arg6: memref<8x128xf32, #tpu.memory_space<vmem>>, %arg7: memref<8x128xf32, #tpu.memory_space<vmem>>, %arg8: memref<128x128xf32, #tpu.memory_space<vmem>>, %arg9: memref<128x128xf32, #tpu.memory_space<vmem>>, %arg10: memref<1x1x1x128xf32, #tpu.memory_space<vmem>>, %arg11: memref<128x128xf32, #tpu.memory_space<vmem>>, %arg12: memref<128x128xf32, #tpu.memory_space<vmem>>) attributes {dimension_semantics = [#tpu.dimension_semantics<parallel>, #tpu.dimension_semantics<parallel>, #tpu.dimension_semantics<arbitrary>, #tpu.dimension_semantics<arbitrary>], iteration_bounds = array<i64: 2, 2, 1, 1>, scalar_prefetch = 0 : i64, scratch_operands = 2 : i64, tpu.core_type = #tpu.core_type<tc>, window_params = [{transform_indices = @transform_0, window_bounds = array<i64: 1, 8, 128>}, {transform_indices = @transform_1, window_bounds = array<i64: 1, 8, 128>}, {pipeline_mode = #tpu.pipeline_mode<synchronous>, transform_indices = @transform_2, window_bounds = array<i64: 8, 128>}, {pipeline_mode = #tpu.pipeline_mode<synchronous>, transform_indices = @transform_3, window_bounds = array<i64: 8, 128>}, {pipeline_mode = #tpu.pipeline_mode<synchronous>, transform_indices = @transform_4, window_bounds = array<i64: 128, 128>}, {pipeline_mode = #tpu.pipeline_mode<synchronous>, transform_indices = @transform_5, window_bounds = array<i64: 128, 128>}, {transform_indices = @transform_6, window_bounds = array<i64: 1, 1, 1, 128>}]} {
    %c0_i32 = arith.constant 0 : i32
    %0 = arith.cmpi eq, %arg3, %c0_i32 : i32
    %1 = arith.extui %0 : i1 to i32
    %c0_i32_0 = arith.constant 0 : i32
    %2 = arith.cmpi ne, %1, %c0_i32_0 : i32
    scf.if %2 {
      %c0_40 = arith.constant 0 : index
      %c0_41 = arith.constant 0 : index
      %c0_42 = arith.constant 0 : index
      %61 = vector.load %arg4[%c0_40, %c0_41, %c0_42] : memref<1x8x128xf32, #tpu.memory_space<vmem>>, vector<1x8x128xf32>
      %62 = vector.shape_cast %61 : vector<1x8x128xf32> to vector<8x128xf32>
      %c0_43 = arith.constant 0 : index
      %c0_44 = arith.constant 0 : index
      %63 = vector.load %arg6[%c0_43, %c0_44] : memref<8x128xf32, #tpu.memory_space<vmem>>, vector<8x128xf32>
      %cst_45 = arith.constant dense<0.000000e+00> : vector<128x128xf32>
      %64 = tpu.matmul %62, %63, %cst_45 {dimension_numbers = #tpu.dot_dimension_numbers<[0], [0], [1], [1], [0, 1, 1, 1], [], []>} : vector<8x128xf32>, vector<8x128xf32>, vector<128x128xf32> -> vector<128x128xf32>
      %c0_46 = arith.constant 0 : index
      %c0_47 = arith.constant 0 : index
      %65 = vector.load %arg11[%c0_46, %c0_47] : memref<128x128xf32, #tpu.memory_space<vmem>>, vector<128x128xf32>
      tpu.vector_store %arg11[%c0_46, %c0_47], %64 {strides = array<i32>} : memref<128x128xf32, #tpu.memory_space<vmem>>, vector<128x128xf32>,
      %c0_48 = arith.constant 0 : index
      %c0_49 = arith.constant 0 : index
      %c0_50 = arith.constant 0 : index
      %66 = vector.load %arg5[%c0_48, %c0_49, %c0_50] : memref<1x8x128xf32, #tpu.memory_space<vmem>>, vector<1x8x128xf32>
      %67 = vector.shape_cast %66 : vector<1x8x128xf32> to vector<8x128xf32>
      %c0_51 = arith.constant 0 : index
      %c0_52 = arith.constant 0 : index
      %68 = vector.load %arg7[%c0_51, %c0_52] : memref<8x128xf32, #tpu.memory_space<vmem>>, vector<8x128xf32>
      %cst_53 = arith.constant dense<0.000000e+00> : vector<128x128xf32>
      %69 = tpu.matmul %67, %68, %cst_53 {dimension_numbers = #tpu.dot_dimension_numbers<[0], [0], [1], [1], [0, 1, 1, 1], [], []>} : vector<8x128xf32>, vector<8x128xf32>, vector<128x128xf32> -> vector<128x128xf32>
      %c0_54 = arith.constant 0 : index
      %c0_55 = arith.constant 0 : index
      %70 = vector.load %arg12[%c0_54, %c0_55] : memref<128x128xf32, #tpu.memory_space<vmem>>, vector<128x128xf32>
      tpu.vector_store %arg12[%c0_54, %c0_55], %69 {strides = array<i32>} : memref<128x128xf32, #tpu.memory_space<vmem>>, vector<128x128xf32>,
    } else {
    }
    %c0_i32_1 = arith.constant 0 : i32
    %3 = arith.cmpi eq, %arg2, %c0_i32_1 : i32
    %c0_i32_2 = arith.constant 0 : i32
    %4 = arith.cmpi eq, %arg3, %c0_i32_2 : i32
    %5 = arith.andi %3, %4 : i1
    %c0_i32_3 = arith.constant 0 : i32
    %6 = arith.cmpi eq, %arg2, %c0_i32_3 : i32
    %c0_i32_4 = arith.constant 0 : i32
    %7 = arith.cmpi eq, %arg3, %c0_i32_4 : i32
    %8 = arith.andi %6, %7 : i1
    %9 = arith.extui %5 : i1 to i32
    %c0_i32_5 = arith.constant 0 : i32
    %10 = arith.cmpi ne, %9, %c0_i32_5 : i32
    scf.if %10 {
      %cst_40 = arith.constant 0.000000e+00 : f32
      %61 = vector.broadcast %cst_40 : f32 to vector<1x1x1x128xf32>
      %c0_41 = arith.constant 0 : index
      %c0_42 = arith.constant 0 : index
      %c0_43 = arith.constant 0 : index
      %c0_44 = arith.constant 0 : index
      %62 = vector.load %arg10[%c0_41, %c0_42, %c0_43, %c0_44] : memref<1x1x1x128xf32, #tpu.memory_space<vmem>>, vector<1x1x1x128xf32>
      tpu.vector_store %arg10[%c0_41, %c0_42, %c0_43, %c0_44], %61 {strides = array<i32>} : memref<1x1x1x128xf32, #tpu.memory_space<vmem>>, vector<1x1x1x128xf32>,
    } else {
    }
    %c0 = arith.constant 0 : index
    %c0_6 = arith.constant 0 : index
    %11 = vector.load %arg8[%c0, %c0_6] : memref<128x128xf32, #tpu.memory_space<vmem>>, vector<128x128xf32>
    %c0_7 = arith.constant 0 : index
    %c0_8 = arith.constant 0 : index
    %12 = vector.load %arg9[%c0_7, %c0_8] : memref<128x128xf32, #tpu.memory_space<vmem>>, vector<128x128xf32>
    %c0_9 = arith.constant 0 : index
    %c0_10 = arith.constant 0 : index
    %13 = vector.load %arg11[%c0_9, %c0_10] : memref<128x128xf32, #tpu.memory_space<vmem>>, vector<128x128xf32>
    %c0_11 = arith.constant 0 : index
    %c0_12 = arith.constant 0 : index
    %14 = vector.load %arg12[%c0_11, %c0_12] : memref<128x128xf32, #tpu.memory_space<vmem>>, vector<128x128xf32>
    %cst = arith.constant dense<0.000000e+00> : vector<128x128xf32>
    %15 = tpu.matmul %13, %11, %cst {dimension_numbers = #tpu.dot_dimension_numbers<[1], [0], [0], [1], [0, 0, 1, 1], [], []>} : vector<128x128xf32>, vector<128x128xf32>, vector<128x128xf32> -> vector<128x128xf32>
    %cst_13 = arith.constant dense<0.000000e+00> : vector<128x128xf32>
    %16 = tpu.matmul %13, %12, %cst_13 {dimension_numbers = #tpu.dot_dimension_numbers<[1], [0], [0], [1], [0, 0, 1, 1], [], []>} : vector<128x128xf32>, vector<128x128xf32>, vector<128x128xf32> -> vector<128x128xf32>
    %cst_14 = arith.constant dense<0.000000e+00> : vector<128x128xf32>
    %17 = tpu.matmul %14, %11, %cst_14 {dimension_numbers = #tpu.dot_dimension_numbers<[1], [0], [0], [1], [0, 0, 1, 1], [], []>} : vector<128x128xf32>, vector<128x128xf32>, vector<128x128xf32> -> vector<128x128xf32>
    %cst_15 = arith.constant dense<0.000000e+00> : vector<128x128xf32>
    %18 = tpu.matmul %14, %12, %cst_15 {dimension_numbers = #tpu.dot_dimension_numbers<[1], [0], [0], [1], [0, 0, 1, 1], [], []>} : vector<128x128xf32>, vector<128x128xf32>, vector<128x128xf32> -> vector<128x128xf32>
    %19 = arith.mulf %15, %17 : vector<128x128xf32>
    %20 = arith.mulf %16, %18 : vector<128x128xf32>
    %21 = arith.subf %19, %20 : vector<128x128xf32>
    %22 = arith.mulf %15, %18 : vector<128x128xf32>
    %23 = arith.mulf %16, %17 : vector<128x128xf32>
    %24 = arith.addf %22, %23 : vector<128x128xf32>
    %cst_16 = arith.constant dense<0.000000e+00> : vector<128xf32>
    %25 = vector.multi_reduction <add>, %21, %cst_16 [0] : vector<128x128xf32> to vector<128xf32>
    %26 = vector.shape_cast %25 : vector<128xf32> to vector<1x128xf32>
    %cst_17 = arith.constant dense<0.000000e+00> : vector<128xf32>
    %27 = vector.multi_reduction <add>, %24, %cst_17 [0] : vector<128x128xf32> to vector<128xf32>
    %28 = vector.shape_cast %27 : vector<128xf32> to vector<1x128xf32>
    %c128_i32 = arith.constant 128 : i32
    %29 = arith.muli %arg3, %c128_i32 : i32
    %30 = tpu.iota {dimensions = array<i32: 1>} : vector<1x128xi32>
    %31 = vector.broadcast %29 : i32 to vector<1x128xi32>
    %32 = arith.addi %31, %30 : vector<1x128xi32>
    %c0_i32_18 = arith.constant 0 : i32
    %33 = vector.broadcast %c0_i32_18 : i32 to vector<1x128xi32>
    %34 = arith.cmpi eq, %32, %33 : vector<1x128xi32>
    %c2_i32 = arith.constant 2 : i32
    %35 = vector.broadcast %c2_i32 : i32 to vector<1x128xi32>
    %36 = arith.muli %32, %35 : vector<1x128xi32>
    %c32_i32 = arith.constant 32 : i32
    %37 = vector.broadcast %c32_i32 : i32 to vector<1x128xi32>
    %38 = arith.cmpi eq, %36, %37 : vector<1x128xi32>
    %39 = arith.ori %34, %38 : vector<1x128xi1>
    %cst_19 = arith.constant 1.000000e+00 : f32
    %cst_20 = arith.constant 2.000000e+00 : f32
    %40 = vector.broadcast %cst_19 : f32 to vector<1x128xf32>
    %41 = vector.broadcast %cst_20 : f32 to vector<1x128xf32>
    %42 = arith.select %39, %40, %41 : vector<1x128xi1>, vector<1x128xf32>
    %43 = arith.mulf %26, %42 : vector<1x128xf32>
    %44 = arith.mulf %28, %42 : vector<1x128xf32>
    %c0_21 = arith.constant 0 : index
    %c0_22 = arith.constant 0 : index
    %c0_23 = arith.constant 0 : index
    %c0_24 = arith.constant 0 : index
    %45 = vector.load %arg10[%c0_21, %c0_22, %c0_23, %c0_24] : memref<1x1x1x128xf32, #tpu.memory_space<vmem>>, vector<1x1x1x128xf32>
    %46 = vector.shape_cast %45 : vector<1x1x1x128xf32> to vector<1x128xf32>
    %cst_25 = arith.constant dense<0.000000e+00> : vector<1x128xf32>
    %47 = tpu.matmul %43, %11, %cst_25 {dimension_numbers = #tpu.dot_dimension_numbers<[1], [1], [0], [0], [0, 0, 1, 0], [], []>} : vector<1x128xf32>, vector<128x128xf32>, vector<1x128xf32> -> vector<1x128xf32>
    %48 = arith.addf %46, %47 : vector<1x128xf32>
    %c0_26 = arith.constant 0 : index
    %c0_27 = arith.constant 0 : index
    %c0_28 = arith.constant 0 : index
    %c0_29 = arith.constant 0 : index
    %49 = vector.load %arg10[%c0_26, %c0_27, %c0_28, %c0_29] : memref<1x1x1x128xf32, #tpu.memory_space<vmem>>, vector<1x1x1x128xf32>
    %50 = vector.shape_cast %49 : vector<1x1x1x128xf32> to vector<1x128xf32>
    %51 = vector.shape_cast %48 : vector<1x128xf32> to vector<1x1x1x128xf32>
    tpu.vector_store %arg10[%c0_26, %c0_27, %c0_28, %c0_29], %51 {strides = array<i32>} : memref<1x1x1x128xf32, #tpu.memory_space<vmem>>, vector<1x1x1x128xf32>,
    %c0_30 = arith.constant 0 : index
    %c0_31 = arith.constant 0 : index
    %c0_32 = arith.constant 0 : index
    %c0_33 = arith.constant 0 : index
    %52 = vector.load %arg10[%c0_30, %c0_31, %c0_32, %c0_33] : memref<1x1x1x128xf32, #tpu.memory_space<vmem>>, vector<1x1x1x128xf32>
    %53 = vector.shape_cast %52 : vector<1x1x1x128xf32> to vector<1x128xf32>
    %cst_34 = arith.constant dense<0.000000e+00> : vector<1x128xf32>
    %54 = tpu.matmul %44, %12, %cst_34 {dimension_numbers = #tpu.dot_dimension_numbers<[1], [1], [0], [0], [0, 0, 1, 0], [], []>} : vector<1x128xf32>, vector<128x128xf32>, vector<1x128xf32> -> vector<1x128xf32>
    %55 = arith.addf %53, %54 : vector<1x128xf32>
    %c0_35 = arith.constant 0 : index
    %c0_36 = arith.constant 0 : index
    %c0_37 = arith.constant 0 : index
    %c0_38 = arith.constant 0 : index
    %56 = vector.load %arg10[%c0_35, %c0_36, %c0_37, %c0_38] : memref<1x1x1x128xf32, #tpu.memory_space<vmem>>, vector<1x1x1x128xf32>
    %57 = vector.shape_cast %56 : vector<1x1x1x128xf32> to vector<1x128xf32>
    %58 = vector.shape_cast %55 : vector<1x128xf32> to vector<1x1x1x128xf32>
    tpu.vector_store %arg10[%c0_35, %c0_36, %c0_37, %c0_38], %58 {strides = array<i32>} : memref<1x1x1x128xf32, #tpu.memory_space<vmem>>, vector<1x1x1x128xf32>,
    %59 = arith.extui %8 : i1 to i32
    %c0_i32_39 = arith.constant 0 : i32
    %60 = arith.cmpi ne, %59, %c0_i32_39 : i32
    scf.if %60 {
      %c0_40 = arith.constant 0 : index
      %c0_41 = arith.constant 0 : index
      %c0_42 = arith.constant 0 : index
      %c0_43 = arith.constant 0 : index
      %61 = vector.load %arg10[%c0_40, %c0_41, %c0_42, %c0_43] : memref<1x1x1x128xf32, #tpu.memory_space<vmem>>, vector<1x1x1x128xf32>
      %cst_44 = arith.constant 3.125000e-02 : f32
      %62 = vector.broadcast %cst_44 : f32 to vector<1x1x1x128xf32>
      %63 = arith.mulf %61, %62 : vector<1x1x1x128xf32>
      %c0_45 = arith.constant 0 : index
      %c0_46 = arith.constant 0 : index
      %c0_47 = arith.constant 0 : index
      %c0_48 = arith.constant 0 : index
      %64 = vector.load %arg10[%c0_45, %c0_46, %c0_47, %c0_48] : memref<1x1x1x128xf32, #tpu.memory_space<vmem>>, vector<1x1x1x128xf32>
      tpu.vector_store %arg10[%c0_45, %c0_46, %c0_47, %c0_48], %63 {strides = array<i32>} : memref<1x1x1x128xf32, #tpu.memory_space<vmem>>, vector<1x1x1x128xf32>,
    } else {
    }
    return
  }
  func.func @transform_0(%arg0: i32, %arg1: i32, %arg2: i32, %arg3: i32) -> (i32, i32, i32) {
    %c1_i32 = arith.constant 1 : i32
    %0 = arith.muli %arg1, %c1_i32 : i32
    %1 = arith.addi %0, %arg2 : i32
    %c0_i32 = arith.constant 0 : i32
    %c0_i32_0 = arith.constant 0 : i32
    return %arg0, %c0_i32, %1 : i32, i32, i32
  }
  func.func @transform_1(%arg0: i32, %arg1: i32, %arg2: i32, %arg3: i32) -> (i32, i32, i32) {
    %c1_i32 = arith.constant 1 : i32
    %0 = arith.muli %arg1, %c1_i32 : i32
    %1 = arith.addi %0, %arg2 : i32
    %c0_i32 = arith.constant 0 : i32
    %c0_i32_0 = arith.constant 0 : i32
    return %arg0, %c0_i32, %1 : i32, i32, i32
  }
  func.func @transform_2(%arg0: i32, %arg1: i32, %arg2: i32, %arg3: i32) -> (i32, i32) {
    %c0_i32 = arith.constant 0 : i32
    %c0_i32_0 = arith.constant 0 : i32
    %c0_i32_1 = arith.constant 0 : i32
    return %c0_i32, %c0_i32_0 : i32, i32
  }
  func.func @transform_3(%arg0: i32, %arg1: i32, %arg2: i32, %arg3: i32) -> (i32, i32) {
    %c0_i32 = arith.constant 0 : i32
    %c0_i32_0 = arith.constant 0 : i32
    %c0_i32_1 = arith.constant 0 : i32
    return %c0_i32, %c0_i32_0 : i32, i32
  }
  func.func @transform_4(%arg0: i32, %arg1: i32, %arg2: i32, %arg3: i32) -> (i32, i32) {
    %c0_i32 = arith.constant 0 : i32
    %c0_i32_0 = arith.constant 0 : i32
    %c0_i32_1 = arith.constant 0 : i32
    return %c0_i32, %c0_i32_0 : i32, i32
  }
  func.func @transform_5(%arg0: i32, %arg1: i32, %arg2: i32, %arg3: i32) -> (i32, i32) {
    %c0_i32 = arith.constant 0 : i32
    %c0_i32_0 = arith.constant 0 : i32
    %c0_i32_1 = arith.constant 0 : i32
    return %c0_i32, %c0_i32_0 : i32, i32
  }
  func.func @transform_6(%arg0: i32, %arg1: i32, %arg2: i32, %arg3: i32) -> (i32, i32, i32, i32) {
    %c0_i32 = arith.constant 0 : i32
    %c0_i32_0 = arith.constant 0 : i32
    %c0_i32_1 = arith.constant 0 : i32
    return %arg0, %arg1, %c0_i32, %c0_i32_0 : i32, i32, i32, i32
  }
}

</mosaic_0001>

<bundles_post_ra>
// kernel: tpu_custom_call.1
= control target key start
LH: loop header
LB: loop body
LE: loop exit
PB: predicated region body
PF: predicated region fallthrough
CT: control target
= control target key end

     0   :  { %s3769_s0 = inlined_call_operand.hbm [shape: f32[2,8,256], index: 0, kind: input, shape index: {}]   ;;  %s3770_s1 = inlined_call_operand.hbm [shape: f32[2,8,256], index: 1, kind: input, shape index: {}]   ;;  %s3771_s2 = inlined_call_operand.hbm [shape: f32[8,128], index: 2, kind: input, shape index: {}]   ;;  %s3772_s3 = inlined_call_operand.vmem [shape: f32[8,128], index: 3, kind: input, shape index: {}]   ;;  %s3773_s4 = inlined_call_operand.hbm [shape: f32[128,128], index: 4, kind: input, shape index: {}]   ;;  %s3774_s5 = inlined_call_operand.hbm [shape: f32[128,128], index: 5, kind: input, shape index: {}]   ;;  %s3775_s6 = inlined_call_operand.hbm [shape: f32[2,2,1,128], index: 6, kind: output, shape index: {}]  }
   0x1   :  { %3785 = sst [smem:[#allocation23_spill]] %s3771_s2 }
   0x2   :  { %3786 = sst [smem:[#allocation24_spill]] %s3773_s4 }
   0x3   :  { %3787 = sst [smem:[#allocation25_spill]] %s3774_s5 }
   0x4   :  { %3788 = sst [smem:[#allocation26_spill]] %s3775_s6 }
   0x5   :  { %11 = vsyncpa [#allocation5], 0 }
   0x6   :  { %13 = vsyncpa [#allocation5 + $0x1], 0 }
   0x7   :  { %14 = vsyncpa [#allocation8], 0 }
   0x8   :  { %16 = vsyncpa [#allocation8 + $0x1], 0 }
   0x9   :  { %17 = vsyncpa [#allocation11], 0 }
   0xa   :  { %18 = vsyncpa [#allocation6], 0 }
   0xb   :  { %20 = vsyncpa [#allocation6 + $0x1], 0  ;;  %s3183_s21 = smov 0   ;;  %s3185_s22 = smov 0  }
   0xc   :  { %s3187_s23 = smov 0   ;;  %s3189_s24 = smov 0  }
   0xd   :  { %s3191_s25 = smov 0   ;;  %s3193_s26 = smov 0  }
   0xe   :  { %s3195_s27 = smov 0   ;;  %s3197_s28 = smov 0  }
   0xf LB: > { %3789 = sst [smem:[#allocation19_spill]] %s3106_s21  ;;  %s3224_s29 = sadd.s32 4294967295, %s3134_s28   ;;  %s3134_s28 = sphi %s3197_s28, %s26_s28   ;;  %s3130_s27 = sphi %s3195_s27, %s3824_s27   ;;  %s3126_s26 = sphi %s3193_s26, %s3823_s26   ;;  %s3122_s25 = sphi %s3191_s25, %s3822_s25   ;;  %s3118_s24 = sphi %s3189_s24, %s3821_s24   ;;  %s3114_s23 = sphi %s3187_s23, %s3820_s23   ;;  %s3110_s22 = sphi %s3185_s22, %s3819_s22   ;;  %s3106_s21 = sphi %s3183_s21, %s3818_s21  }
  0x10   : > { %s1988_s30 = sadd.s32 4294967294, %s3134_s28   ;;  %p76_p0 = scmp.ne.s32.totalorder %s3110_s22, %s3106_s21 }
  0x11   : > { %p3776_p1 = scmp.eq.s32.totalorder %s3224_s29, 0  ;;  %p222_p3 = scmp.eq.s32.totalorder %s1988_s30, 3 }
  0x12   : > { %p1989_p5 = scmp.ge.s32.totalorder %s3134_s28, 1  ;;  %p229_p7 = scmp.lt.s32.totalorder %s3134_s28, 5 }
  0x13   : > { %p3233_p4 = por %p3776_p1, %p76_p0  ;;  %p3238_p6 = por %p222_p3, %p76_p0 }
  0x14   : > { %p3243_p8 = pnand %p1989_p5, %p229_p7  ;;  %s3136_s10 = smov [#allocation9]  }
  0x15   : > { %s3790_s7 = scalar_select %p3233_p4, 1, 0 }
  0x16   : > { %s3791_s8 = scalar_select %p3238_p6, 1, 0 }
  0x17   : > { %s3793_s9 = scalar_select %p3243_p8, 1, 0 }
  0x18   : > { %3792 = sst [smem:[#allocation20_spill]] %s3791_s8  ;;  %s242_s11 = sshll.u32 %s3136_s10, 4  ;;  %s243_s11 = int_to_ptr.vmem [resolvable:$true] %s242_s11 }
  0x19   : > { %p2778_p9 = pneg %p3243_p8  ;;  %s3137_s12 = smov [#allocation10]  }
  0x1a   : > { %s255_s13 = sshll.u32 %s3137_s12, 4  ;;  %s3138_s15 = smov [#allocation12]   ;;  %s3255_s13 = int_to_ptr.vmem [resolvable:$true] %s255_s13 }
  0x1b   : > { %p3251_p10 = pnand %p2778_p9, %p3776_p1  ;;  %s3257_s16 = sshll.u32 %s3138_s15, 4  ;;  %s269_s16 = int_to_ptr.vmem [resolvable:$true] %s3257_s16 }
  0x1c   : > { %s3795_s2 = sld [smem:[#allocation23_spill]] }
  0x1d   : > { %p3267_p12 = pneg %p3251_p10 }
  0x22   : > { %s2880_s19 = scalar_lea.hbm %s3795_s2, 128 }
  0x23   : > { %p2881_p11 = scmp.ne.s32.totalorder %s3795_s2, %s2880_s19  ;;  %p2887_p3 = scmp.lt.u32.totalorder %s2880_s19, %s3795_s2 }
  0x25   : > { %p2883_p13 = pnand %p3267_p12, %p2881_p11 }
  0x27   : > { %p2884_p0 = pneg %p2883_p13 }
  0x29   : > { %p2889_p5 = pnand %p2887_p3, %p2884_p0 }
  0x2b   : > { %2892 = shalt.err (!%p2889_p5)
}
  0x2c   : > { %s2893_s17 = scalar_lea.vmem %s243_s11, 128  ;;  %p2901_p2 = scmp.lt.s32.totalorder %s243_s11, %s243_s11 }
  0x2d   : > { %p2894_p7 = scmp.ne.s32.totalorder %s243_s11, %s2893_s17  ;;  %p2902_p6 = scmp.lt.s32.totalorder %s2893_s17, %s2893_s17 }
  0x2f   : > { %p2896_p9 = pnand %p2894_p7, %p3267_p12  ;;  %p2903_p4 = por %p2902_p6, %p2901_p2 }
  0x31   : > { %p2897_p1 = pneg %p2896_p9 }
  0x33   : > { %p2904_p8 = pnand %p2903_p4, %p2897_p1 }
  0x35   : > { %2907 = shalt.err (!%p2904_p8)
}
  0x36   : > { %2781 = dma.hbm_to_vmem [thread:$0]  (!%p3251_p10), %s3795_s2, 128, %s243_s11, [#allocation8]  }
  0x37   : > { %s3797_s4 = sld [smem:[#allocation24_spill]] }
  0x3d   : > { %s2908_s12 = scalar_lea.hbm %s3797_s4, 2048 }
  0x3e   : > { %p2909_p11 = scmp.ne.s32.totalorder %s3797_s4, %s2908_s12  ;;  %p2915_p1 = scmp.lt.u32.totalorder %s2908_s12, %s3797_s4 }
  0x40   : > { %p2911_p13 = pnand %p2909_p11, %p3267_p12 }
  0x42   : > { %p2912_p2 = pneg %p2911_p13 }
  0x44   : > { %p2917_p4 = pnand %p2915_p1, %p2912_p2 }
  0x46   : > { %2920 = shalt.err (!%p2917_p4)
}
  0x47   : > { %s2921_s11 = scalar_lea.vmem %s3255_s13, 2048  ;;  %p2929_p3 = scmp.lt.s32.totalorder %s3255_s13, %s3255_s13 }
  0x48   : > { %p2922_p6 = scmp.ne.s32.totalorder %s3255_s13, %s2921_s11  ;;  %p2930_p5 = scmp.lt.s32.totalorder %s2921_s11, %s2921_s11 }
  0x4a   : > { %p2924_p8 = pnand %p2922_p6, %p3267_p12  ;;  %p2931_p7 = por %p2930_p5, %p2929_p3 }
  0x4c   : > { %p2925_p0 = pneg %p2924_p8 }
  0x4e   : > { %p2932_p9 = pnand %p2931_p7, %p2925_p0 }
  0x50   : > { %2935 = shalt.err (!%p2932_p9)
}
  0x51   : > { %s3139_s8 = smov 128   ;;  %s3140_s21 = smov 8  }
  0x52   : > { %2784 = dma.hbm_to_vmem [thread:$0]  (!%p3251_p10), %s3797_s4, 2048, %s3255_s13, [#allocation11], %s3139_s8, %s3139_s8, %s3140_s21  }
  0x53   : > { %s3798_s5 = sld [smem:[#allocation25_spill]] }
  0x59   : > { %s2936_s12 = scalar_lea.hbm %s3798_s5, 2048 }
  0x5a   : > { %p2937_p11 = scmp.ne.s32.totalorder %s3798_s5, %s2936_s12  ;;  %p2943_p1 = scmp.lt.u32.totalorder %s2936_s12, %s3798_s5 }
  0x5c   : > { %p2939_p13 = pnand %p2937_p11, %p3267_p12 }
  0x5e   : > { %p2940_p2 = pneg %p2939_p13 }
  0x60   : > { %p2945_p4 = pnand %p2943_p1, %p2940_p2 }
  0x62   : > { %2948 = shalt.err (!%p2945_p4)
}
  0x63   : > { %s2949_s18 = scalar_lea.vmem %s269_s16, 2048  ;;  %p2957_p3 = scmp.lt.s32.totalorder %s269_s16, %s269_s16 }
  0x64   : > { %p2950_p6 = scmp.ne.s32.totalorder %s269_s16, %s2949_s18  ;;  %p2958_p5 = scmp.lt.s32.totalorder %s2949_s18, %s2949_s18 }
  0x66   : > { %p2952_p8 = pnand %p2950_p6, %p3267_p12  ;;  %p2959_p7 = por %p2958_p5, %p2957_p3 }
  0x68   : > { %p2953_p0 = pneg %p2952_p8 }
  0x6a   : > { %p2960_p9 = pnand %p2959_p7, %p2953_p0 }
  0x6c   : > { %2963 = shalt.err (!%p2960_p9)
}
  0x6d   : > { %2787 = dma.hbm_to_vmem [thread:$0]  (!%p3251_p10), %s3798_s5, 2048, %s269_s16, [#allocation11], %s3139_s8, %s3139_s8, %s3140_s21  }
  0x6e   : > { %s48_s2 = sadd.s32 1, %s3126_s26  ;;  %s52_s14 = sadd.s32 1, %s3130_s27 }
  0x6f   : > { %p50_p12 = scmp.ge.s32.totalorder %s48_s2, 2  ;;  %s63_s10 = sadd.s32 1, %s3114_s23 }
  0x70   : > { %p70_p11 = scmp.ne.s32.totalorder %s3114_s23, %s3110_s22  ;;  %p71_p13 = scmp.eq.s32.totalorder %s3134_s28, 0 }
  0x71   : > { %s3826_s2 = smov (%p50_p12, %s48_s2), 0  ;;  %s3828_s14 = smov (!%p50_p12, %s52_s14), %s3130_s27 }
  0x72   : > { %3799 = sst [smem:[#allocation21_spill]] %s3826_s2  ;;  %s59_s19 = ssub.s32 %s3126_s26, %s3826_s2 }
  0x73   : > { %p54_p2 = scmp.ge.s32.totalorder %s3828_s14, 2  ;;  %p3800_p1 = scmp.eq.s32.totalorder %s3224_s29, 3 }
  0x74   : > { %p3342_p10 = por %p71_p13, %p70_p11  ;;  %p2802_p6 = scmp.lt.s32.totalorder %s3134_s28, 4 }
  0x75   : > { %p3338_p4 = por %p3800_p1, %p70_p11  ;;  %s3830_s14 = smov (%p54_p2, %s3828_s14), 0 }
  0x76   : > { %3803 = sst [smem:[#allocation22_spill]] %s3830_s14  ;;  %s282_s8 = sand.u32 1, %s3114_s23  }
  0x77   : > { %s3801_s30 = scalar_select %p3338_p4, 1, 0 }
  0x78   : > { %s1995_s21 = sshll.u32 %s3130_s27, 1  ;;  %s58_s12 = ssub.s32 %s3130_s27, %s3830_s14 }
  0x79   : > { %s60_s15 = sor.u32 %s59_s19, %s58_s12  ;;  %s3353_s17 = sshll.u32 %s282_s8, 3 }
  0x7a   : > { %p61_p8 = scmp.eq.s32.totalorder %s60_s15, 0  ;;  %s292_s11 = sadd.s32 %s3126_s26, %s1995_s21 }
  0x7b   : > { %s286_s18 = scalar_lea.vmem [#allocation4], %s3353_s17  ;;  %s1996_s4 = sshll.u32 %s292_s11, 7 }
  0x7c   : > { %s296_s13 = sshll.u32 %s286_s18, 4  ;;  %s3365_s6 = scalar_lea.hbm %s3769_s0, %s1996_s4  ;;  %s3360_s13 = int_to_ptr.vmem [resolvable:$true] %s296_s13 }
  0x7d   : > { %s3358_s20 = scalar_select %p61_p8, %s3114_s23, %s63_s10  }
  0x7e   : > { %p3371_p0 = pnand %p2802_p6, %p3342_p10  ;;  %s3378_s12 = scalar_lea.hbm %s3770_s1, %s1996_s4 }
  0x7f   : > { %s303_s5 = sand.u32 1, %s3134_s28   ;;  %s283_s2 = scalar_lea.sflag [#allocation5], %s282_s8 }
  0x80   : > { %s2964_s15 = scalar_lea.hbm %s3365_s6, 128  ;;  %p2966_p5 = pneg %p3371_p0 }
  0x81   : > { %p2965_p3 = scmp.ne.s32.totalorder %s3365_s6, %s2964_s15  ;;  %s2969_s18 = scalar_lea.hbm %s3769_s0, 512 }
  0x82   : > { %p2970_p12 = scmp.lt.u32.totalorder %s3365_s6, %s3769_s0  ;;  %p2971_p11 = scmp.lt.u32.totalorder %s2969_s18, %s2964_s15 }
  0x83   : > { %p2967_p7 = pnand %p2966_p5, %p2965_p3  ;;  %p2973_p2 = scmp.lt.u32.totalorder %s2964_s15, %s3365_s6 }
  0x84   : > { %p2972_p13 = por %p2971_p11, %p2970_p12 }
  0x85   : > { %p2968_p9 = pneg %p2967_p7 }
  0x86   : > { %p2974_p1 = por %p2973_p2, %p2972_p13 }
  0x88   : > { %p2975_p10 = pnand %p2974_p1, %p2968_p9 }
  0x8a   : > { %2978 = shalt.err (!%p2975_p10)
}
  0x8b   : > { %s2979_s4 = scalar_lea.vmem %s3360_s13, 128  ;;  %s3141_s8 = smov [#allocation4]  }
  0x8c   : > { %p2980_p6 = scmp.ne.s32.totalorder %s3360_s13, %s2979_s4  ;;  %s2984_s21 = sshll.u32 %s3141_s8, 4  ;;  %s2985_s21 = int_to_ptr.vmem [resolvable:$false] %s2984_s21 }
  0x8d   : > { %s2986_s14 = scalar_lea.vmem %s2985_s21, 256  ;;  %p2987_p7 = scmp.lt.s32.totalorder %s3360_s13, %s2985_s21 }
  0x8e   : > { %p2982_p8 = pnand %p2980_p6, %p2966_p5  ;;  %p2988_p12 = scmp.lt.s32.totalorder %s2986_s14, %s2979_s4 }
  0x90   : > { %p2983_p3 = pneg %p2982_p8  ;;  %p2989_p11 = por %p2988_p12, %p2987_p7 }
  0x92   : > { %p2990_p13 = pnand %p2989_p11, %p2983_p3 }
  0x94   : > { %2993 = shalt.err (!%p2990_p13)
}
  0x95   : > { %2791 = dma.hbm_to_vmem [thread:$0]  (!%p3371_p0), %s3365_s6, 128, %s3360_s13, %s283_s2  }
  0x96   : > { %s307_s15 = scalar_lea.vmem [#allocation7], %s3353_s17  ;;  %s304_s11 = scalar_lea.sflag [#allocation8], %s303_s5 }
  0x97   : > { %s317_s16 = sshll.u32 %s307_s15, 4  ;;  %s2994_s18 = scalar_lea.hbm %s3378_s12, 128  ;;  %s318_s16 = int_to_ptr.vmem [resolvable:$true] %s317_s16 }
  0x98   : > { %p2995_p9 = scmp.ne.s32.totalorder %s3378_s12, %s2994_s18  ;;  %s2999_s8 = scalar_lea.hbm %s3770_s1, 512 }
  0x99   : > { %p3000_p10 = scmp.lt.u32.totalorder %s3378_s12, %s3770_s1  ;;  %p3001_p6 = scmp.lt.u32.totalorder %s2999_s8, %s2994_s18 }
  0x9a   : > { %p2997_p2 = pnand %p2995_p9, %p2966_p5  ;;  %p3003_p3 = scmp.lt.u32.totalorder %s2994_s18, %s3378_s12 }
  0x9b   : > { %p3002_p8 = por %p3001_p6, %p3000_p10 }
  0x9c   : > { %p2998_p1 = pneg %p2997_p2 }
  0x9d   : > { %p3004_p7 = por %p3003_p3, %p3002_p8 }
  0x9f   : > { %p3005_p12 = pnand %p3004_p7, %p2998_p1 }
  0xa1   : > { %3008 = shalt.err (!%p3005_p12)
}
  0xa2   : > { %s3009_s6 = scalar_lea.vmem %s318_s16, 128  ;;  %s3142_s17 = smov [#allocation7]  }
  0xa3   : > { %p3010_p11 = scmp.ne.s32.totalorder %s318_s16, %s3009_s6  ;;  %s3014_s13 = sshll.u32 %s3142_s17, 4  ;;  %s3015_s13 = int_to_ptr.vmem [resolvable:$false] %s3014_s13 }
  0xa4   : > { %s3016_s5 = scalar_lea.vmem %s3015_s13, 256  ;;  %p3017_p2 = scmp.lt.s32.totalorder %s318_s16, %s3015_s13 }
  0xa5   : > { %p3012_p13 = pnand %p3010_p11, %p2966_p5  ;;  %p3018_p4 = scmp.lt.s32.totalorder %s3016_s5, %s3009_s6 }
  0xa7   : > { %p3013_p9 = pneg %p3012_p13  ;;  %p3019_p6 = por %p3018_p4, %p3017_p2 }
  0xa9   : > { %p3020_p10 = pnand %p3019_p6, %p3013_p9 }
  0xab   : > { %3023 = shalt.err (!%p3020_p10)
}
  0xac   : > { %2794 = dma.hbm_to_vmem [thread:$0]  (!%p3371_p0), %s3378_s12, 128, %s318_s16, %s304_s11  }
  0xad   : > { %p3805_p1 = scmp.ne.s32.totalorder %s3793_s9, 0 }
  0xae   : > { %s3431_s2 = sand.u32 (!%p3805_p1), 1, %s3110_s22   ;;  %p3806_p5 = scmp.ne.s32.totalorder (!%p3805_p1), %s3790_s7, 0 }
  0xaf   : > { %326 = sbr.rel (%p3805_p1) target bundleno = 1144 (0x478), region = 44  ;;  %s2001_s15 = sshll.u32 (!%p3805_p1), %s3431_s2, 3 }
  0xb0   : > { %s329_s18 = scalar_lea.sflag (!%p3805_p1), [#allocation5], %s3431_s2  ;;  %s332_s10 = scalar_lea.vmem (!%p3805_p1), [#allocation4], %s2001_s15 }
  0xb6   : > { %3085 = dma.done.wait (%p3806_p5), %s329_s18, 128  }
  0xb7   : > { %3087 = vsyncadd (%p3806_p5), %s329_s18, 4294967168  ;;  %s337_s19 = sand.u32 1, %s3224_s29   ;;  %s341_s9 = scalar_lea.vmem [#allocation7], %s2001_s15 }
  0xb8   : > { %s338_s12 = scalar_lea.sflag [#allocation8], %s337_s19 }
  0xb9   : > { %3089 = dma.done.wait (%p3806_p5), %s338_s12, 128  }
  0xba   : > { %3091 = vsyncadd (%p3806_p5), %s338_s12, 4294967168  ;;  %p3807_p4 = scmp.eq.s32.totalorder %s3224_s29, 0 }
  0xbc   : > { %3093 = dma.done.wait (%p3807_p4), [#allocation8], 128   ;;  %p3808_p0 = pmov %p3807_p4 }
  0xbe   : > { %3095 = vsyncadd (%p3808_p0), [#allocation8], 4294967168  ;;  %p3809_p8 = pmov %p3808_p0 }
  0xbf   : > { %p3810_p3 = pmov %p3808_p0 }
  0xc0   : > { %3097 = dma.done.wait (%p3809_p8), [#allocation11], 4096  }
  0xc1   : > { %3099 = vsyncadd (%p3810_p3), [#allocation11], 4294963200  ;;  %v392_v0 = vld [vmem:[%s332_s10] sm:$0xff]  ;;  %v636_v2 = vld [vmem:[%s341_s9] sm:$0xff]  ;;  %vm426_vm0 = vcmask 64512   ;;  %s3602_s29 = scalar_lea.vmem [#allocation13], %s3431_s2 }
  0xc2   : > { %394 = vxpose.xlu0.b32.start.end [1/1] (short) %v392_v0, 128  ;;  %v393_v1 = vld [vmem:[#allocation9] sm:$0xff]  ;;  %v885_v4 = vld [vmem:[#allocation10] sm:$0xff]  ;;  %v886_v5 = vld [vmem:[#allocation10 + $0x8] sm:$0xff]  ;;  %vm3145_vm1 = vmmov 0   ;;  %s2038_s11 = sshll.u32 %s3122_s25, 1  ;;  %s1845_s21 = sshll.u32 %s3602_s29, 4  ;;  %s3716_s21 = int_to_ptr.vmem [resolvable:$true] %s1845_s21 }
  0xc3   : > { %2238 = vmatprep.subr.mxu0 %v393_v1  ;;  %v637_v3 = vld [vmem:[%s3772_s3] sm:$0xff]  ;;  %v901_v6 = vld [vmem:[#allocation12] sm:$0xff]  ;;  %v3455_v7 = vpack.c.bf16 %v886_v5, %v885_v4  ;;  %v902_v8 = vld [vmem:[#allocation12 + $0x8] sm:$0xff]  ;;  %s1841_s4 = sadd.s32 %s3118_s24, %s2038_s11  ;;  %s3811_s17 = sld [smem:[#allocation26_spill]] }
  0xc4   : > { %2239 = vmatpush3.msra.mxu0 %v393_v1  ;;  %2264 = vmatprep.subr.mxu1 %v637_v3  ;;  %v3457_v9 = vpack.c.bf16 %v902_v8, %v901_v6  ;;  %v887_v11 = vld [vmem:[#allocation10 + $0x10] sm:$0xff]  ;;  %v888_v12 = vld [vmem:[#allocation10 + $0x18] sm:$0xff]  ;;  %v889_v15 = vld [vmem:[#allocation10 + $0x20] sm:$0xff]  ;;  %s2039_s8 = sshll.u32 %s1841_s4, 4  ;;  %s1831_s5 = scalar_lea.sflag [#allocation6], %s3431_s2 }
  0xc5   : > { %2265 = vmatpush3.msra.mxu1 %v637_v3  ;;  %2585 = vmatprep.subr.bf16.mxu0 %v3455_v7  ;;  %v3462_v13 = vpack.c.bf16 %v888_v12, %v887_v11  ;;  %v890_v16 = vld [vmem:[#allocation10 + $0x28] sm:$0xff]  ;;  %v891_v19 = vld [vmem:[#allocation10 + $0x30] sm:$0xff]  ;;  %v892_v20 = vld [vmem:[#allocation10 + $0x38] sm:$0xff]  ;;  %s3024_s15 = scalar_lea.vmem %s3716_s21, 16  ;;  %p3812_p12 = scmp.ne.s32.totalorder %s3801_s30, 0 }
  0xc6   : > { %2617 = vmatprep.subr.bf16.mxu1 %v3457_v9  ;;  %v3467_v17 = vpack.c.bf16 %v890_v16, %v889_v15  ;;  %v3472_v21 = vpack.c.bf16 %v892_v20, %v891_v19  ;;  %v893_v23 = vld [vmem:[#allocation10 + $0x40] sm:$0xff]  ;;  %v894_v24 = vld [vmem:[#allocation10 + $0x48] sm:$0xff]  ;;  %v895_v27 = vld [vmem:[#allocation10 + $0x50] sm:$0xff]  ;;  %p3025_p7 = scmp.ne.s32.totalorder %s3716_s21, %s3024_s15  ;;  %s3147_s24 = smov [#allocation13]  }
  0xc7   : > { %v3477_v25 = vpack.c.bf16 %v894_v24, %v893_v23  ;;  %v896_v28 = vld [vmem:[#allocation10 + $0x58] sm:$0xff]  ;;  %v897_v31 = vld [vmem:[#allocation10 + $0x60] sm:$0xff]  ;;  %v898_v32 = vld [vmem:[#allocation10 + $0x68] sm:$0xff]  ;;  %s3028_s25 = sshll.u32 %s3147_s24, 4  ;;  %s3029_s25 = int_to_ptr.vmem [resolvable:$false] %s3028_s25 }
  0xc8   : > { %v3482_v29 = vpack.c.bf16 %v896_v28, %v895_v27  ;;  %v3487_v33 = vpack.c.bf16 %v898_v32, %v897_v31  ;;  %v899_v35 = vld [vmem:[#allocation10 + $0x70] sm:$0xff]  ;;  %v900_v36 = vld [vmem:[#allocation10 + $0x78] sm:$0xff]  ;;  %v905_v52 = vld [vmem:[#allocation12 + $0x20] sm:$0xff]  ;;  %p3026_p11 = pnand %p3025_p7, %p3812_p12  ;;  %s3030_s18 = scalar_lea.vmem %s3029_s25, 32 }
  0xc9   : > { %v3492_v37 = vpack.c.bf16 %v900_v36, %v899_v35  ;;  %v903_v48 = vld [vmem:[#allocation12 + $0x10] sm:$0xff]  ;;  %v904_v49 = vld [vmem:[#allocation12 + $0x18] sm:$0xff]  ;;  %v906_v53 = vld [vmem:[#allocation12 + $0x28] sm:$0xff]  ;;  %s3714_s13 = scalar_lea.hbm %s3811_s17, %s2039_s8  ;;  %p3031_p9 = scmp.lt.s32.totalorder %s3716_s21, %s3029_s25 }
  0xca   : > { %v3508_v50 = vpack.c.bf16 %v904_v49, %v903_v48  ;;  %v3513_v54 = vpack.c.bf16 %v906_v53, %v905_v52  ;;  %v907_v56 = vld [vmem:[#allocation12 + $0x30] sm:$0xff]  ;;  %v908_v57 = vld [vmem:[#allocation12 + $0x38] sm:$0xff]  ;;  %v909_v60 = vld [vmem:[#allocation12 + $0x40] sm:$0xff]  ;;  %p3027_p13 = pneg %p3026_p11  ;;  %p3032_p2 = scmp.lt.s32.totalorder %s3030_s18, %s3024_s15 }
  0xcb   : > { %v3518_v58 = vpack.c.bf16 %v908_v57, %v907_v56  ;;  %v910_v61 = vld [vmem:[#allocation12 + $0x48] sm:$0xff]  ;;  %v911_v0 = vld [vmem:[#allocation12 + $0x50] sm:$0xff]  ;;  %v912_v1 = vld [vmem:[#allocation12 + $0x58] sm:$0xff] }
  0xcc   : > { %v3523_v62 = vpack.c.bf16 %v910_v61, %v909_v60  ;;  %v913_v4 = vld [vmem:[#allocation12 + $0x60] sm:$0xff]  ;;  %v914_v5 = vld [vmem:[#allocation12 + $0x68] sm:$0xff]  ;;  %v916_v11 = vld [vmem:[#allocation12 + $0x78] sm:$0xff]  ;;  %p3033_p6 = por %p3032_p2, %p3031_p9 }
  0xcd   : > { %v3533_v6 = vpack.c.bf16 %v914_v5, %v913_v4 }
  0xce   : > { %p3034_p10 = pnand %p3033_p6, %p3027_p13 }
  0xff   : > { %638 = vxpose.xlu0.b32.start.end [1/1] (short) %v636_v2, 128  ;;  %v3528_v2 = vpack.c.bf16 %v912_v1, %v911_v0  ;;  %v3143_v1 = vmov 0.0|0.0  }
 0x142   : > { %v410_v10 = vpop.trf.xlu0 }
 0x143   : > { %2240 = vmatprep.mubr.msk.f32.mxu0 %vm426_vm0, %v410_v10  ;;  %v915_v10 = vld [vmem:[#allocation12 + $0x70] sm:$0xff] }
 0x144   : > { %v3538_v12 = vpack.c.bf16 %v916_v11, %v915_v10 }
 0x146   : > { %v411_v14 = vpop.trf.xlu0 }
 0x147   : > { %2241 = vmatmul.mubr.msk.f32.vlgmr.msra.gmra.mrb[0].mxu0 %vm426_vm0, %v411_v14 }
 0x148   : > { %2587 = vmatpush3.bf16.msra.mxu0 %v3455_v7 }
 0x149   : > { %2589 = vmatprep.subr.bf16.mxu0 %v3462_v13 }
 0x14a   : > { %v412_v18 = vpop.trf.xlu0 }
 0x14b   : > { %2243 = vmatprep.mubr.msk.f32.mxu0 %vm426_vm0, %v412_v18 }
 0x14c   : > { %2591 = vmatpush3.bf16.msra.mxu0 %v3462_v13 }
 0x14d   : > { %2593 = vmatprep.subr.bf16.mxu0 %v3467_v17 }
 0x14e   : > { %v413_v22 = vpop.trf.xlu0 }
 0x14f   : > { %2244 = vmatmul.mubr.msk.f32.gmra.mrb[2].mxu0 %vm426_vm0, %v413_v22 }
 0x150   : > { %2595 = vmatpush3.bf16.msra.mxu0 %v3467_v17 }
 0x151   : > { %2597 = vmatprep.subr.bf16.mxu0 %v3472_v21 }
 0x152   : > { %v414_v26 = vpop.trf.xlu0 }
 0x153   : > { %2246 = vmatprep.mubr.msk.f32.mxu0 %vm426_vm0, %v414_v26 }
 0x154   : > { %2599 = vmatpush3.bf16.msra.mxu0 %v3472_v21 }
 0x155   : > { %2601 = vmatprep.subr.bf16.mxu0 %v3477_v25 }
 0x156   : > { %v415_v30 = vpop.trf.xlu0 }
 0x157   : > { %2247 = vmatmul.mubr.msk.f32.gmra.mrb[4].mxu0 %vm426_vm0, %v415_v30 }
 0x158   : > { %2603 = vmatpush3.bf16.msra.mxu0 %v3477_v25 }
 0x159   : > { %2605 = vmatprep.subr.bf16.mxu0 %v3482_v29 }
 0x15a   : > { %v416_v34 = vpop.trf.xlu0 }
 0x15b   : > { %2249 = vmatprep.mubr.msk.f32.mxu0 %vm426_vm0, %v416_v34 }
 0x15c   : > { %2607 = vmatpush3.bf16.msra.mxu0 %v3482_v29 }
 0x15d   : > { %2609 = vmatprep.subr.bf16.mxu0 %v3487_v33 }
 0x15e   : > { %v417_v38 = vpop.trf.xlu0 }
 0x15f   : > { %2250 = vmatmul.mubr.msk.f32.gmra.mrb[6].mxu0 %vm426_vm0, %v417_v38 }
 0x160   : > { %2611 = vmatpush3.bf16.msra.mxu0 %v3487_v33 }
 0x161   : > { %2613 = vmatprep.subr.bf16.mxu0 %v3492_v37 }
 0x162   : > { %v418_v39 = vpop.trf.xlu0 }
 0x163   : > { %2252 = vmatprep.mubr.msk.f32.mxu0 %vm426_vm0, %v418_v39 }
 0x164   : > { %2615 = vmatpush3.bf16.msra.mxu0 %v3492_v37 }
 0x165   : > { %2649 = vmatprep.subr.bf16.mxu0 %v3455_v7 }
 0x166   : > { %v419_v40 = vpop.trf.xlu0 }
 0x167   : > { %2253 = vmatmul.mubr.msk.f32.gmra.mrb[8].mxu0 %vm426_vm0, %v419_v40 }
 0x16a   : > { %v420_v41 = vpop.trf.xlu0 }
 0x16b   : > { %2255 = vmatprep.mubr.msk.f32.mxu0 %vm426_vm0, %v420_v41 }
 0x16e   : > { %v421_v42 = vpop.trf.xlu0 }
 0x16f   : > { %2256 = vmatmul.mubr.msk.f32.gmra.mrb[10].mxu0 %vm426_vm0, %v421_v42 }
 0x172   : > { %v422_v43 = vpop.trf.xlu0 }
 0x173   : > { %2258 = vmatprep.mubr.msk.f32.mxu0 %vm426_vm0, %v422_v43 }
 0x176   : > { %v423_v44 = vpop.trf.xlu0 }
 0x177   : > { %2259 = vmatmul.mubr.msk.f32.gmra.mrb[12].mxu0 %vm426_vm0, %v423_v44 }
 0x17a   : > { %v424_v45 = vpop.trf.xlu0 }
 0x17b   : > { %2261 = vmatprep.mubr.msk.f32.mxu0 %vm426_vm0, %v424_v45 }
 0x17e   : > { %v425_v46 = vpop.trf.xlu0 }
 0x17f   : > { %2262 = vmatmul.mubr.msk.f32.gmra.mrb[14].mxu0 %vm426_vm0, %v425_v46 }
 0x182   : > { %v654_v47 = vpop.trf.xlu0 }
 0x183   : > { %2266 = vmatprep.mubr.msk.f32.mxu1 %vm426_vm0, %v654_v47 }
 0x186   : > { %v655_v51 = vpop.trf.xlu0 }
 0x187   : > { %2267 = vmatmul.mubr.msk.f32.vlgmr.msra.gmra.mrb[0].mxu1 %vm426_vm0, %v655_v51 }
 0x188   : > { %2619 = vmatpush3.bf16.msra.mxu1 %v3457_v9 }
 0x189   : > { %2621 = vmatprep.subr.bf16.mxu1 %v3508_v50 }
 0x18a   : > { %v656_v55 = vpop.trf.xlu0 }
 0x18b   : > { %2269 = vmatprep.mubr.msk.f32.mxu1 %vm426_vm0, %v656_v55 }
 0x18c   : > { %2623 = vmatpush3.bf16.msra.mxu1 %v3508_v50 }
 0x18d   : > { %2625 = vmatprep.subr.bf16.mxu1 %v3513_v54 }
 0x18e   : > { %v657_v59 = vpop.trf.xlu0 }
 0x18f   : > { %2270 = vmatmul.mubr.msk.f32.gmra.mrb[2].mxu1 %vm426_vm0, %v657_v59 }
 0x190   : > { %2627 = vmatpush3.bf16.msra.mxu1 %v3513_v54 }
 0x191   : > { %2629 = vmatprep.subr.bf16.mxu1 %v3518_v58 }
 0x192   : > { %v658_v63 = vpop.trf.xlu0 }
 0x193   : > { %2272 = vmatprep.mubr.msk.f32.mxu1 %vm426_vm0, %v658_v63 }
 0x194   : > { %2631 = vmatpush3.bf16.msra.mxu1 %v3518_v58 }
 0x195   : > { %2633 = vmatprep.subr.bf16.mxu1 %v3523_v62 }
 0x196   : > { %v659_v3 = vpop.trf.xlu0 }
 0x197   : > { %2273 = vmatmul.mubr.msk.f32.gmra.mrb[4].mxu1 %vm426_vm0, %v659_v3 }
 0x198   : > { %2635 = vmatpush3.bf16.msra.mxu1 %v3523_v62 }
 0x199   : > { %2637 = vmatprep.subr.bf16.mxu1 %v3528_v2 }
 0x19a   : > { %v660_v8 = vpop.trf.xlu0 }
 0x19b   : > { %2275 = vmatprep.mubr.msk.f32.mxu1 %vm426_vm0, %v660_v8 }
 0x19c   : > { %2639 = vmatpush3.bf16.msra.mxu1 %v3528_v2 }
 0x19d   : > { %2641 = vmatprep.subr.bf16.mxu1 %v3533_v6 }
 0x19e   : > { %v661_v14 = vpop.trf.xlu0 }
 0x19f   : > { %2276 = vmatmul.mubr.msk.f32.gmra.mrb[6].mxu1 %vm426_vm0, %v661_v14 }
 0x1a0   : > { %2643 = vmatpush3.bf16.msra.mxu1 %v3533_v6 }
 0x1a1   : > { %2645 = vmatprep.subr.bf16.mxu1 %v3538_v12 }
 0x1a2   : > { %v662_v15 = vpop.trf.xlu0 }
 0x1a3   : > { %2278 = vmatprep.mubr.msk.f32.mxu1 %vm426_vm0, %v662_v15 }
 0x1a4   : > { %2647 = vmatpush3.bf16.msra.mxu1 %v3538_v12 }
 0x1a5   : > { %2681 = vmatprep.subr.bf16.mxu1 %v3457_v9 }
 0x1a6   : > { %v663_v16 = vpop.trf.xlu0 }
 0x1a7   : > { %2279 = vmatmul.mubr.msk.f32.gmra.mrb[8].mxu1 %vm426_vm0, %v663_v16 }
 0x1aa   : > { %v664_v18 = vpop.trf.xlu0 }
 0x1ab   : > { %2281 = vmatprep.mubr.msk.f32.mxu1 %vm426_vm0, %v664_v18 }
 0x1ae   : > { %v665_v19 = vpop.trf.xlu0 }
 0x1af   : > { %2282 = vmatmul.mubr.msk.f32.gmra.mrb[10].mxu1 %vm426_vm0, %v665_v19 }
 0x1b2   : > { %v666_v20 = vpop.trf.xlu0 }
 0x1b3   : > { %2284 = vmatprep.mubr.msk.f32.mxu1 %vm426_vm0, %v666_v20 }
 0x1b6   : > { %v667_v22 = vpop.trf.xlu0 }
 0x1b7   : > { %2285 = vmatmul.mubr.msk.f32.gmra.mrb[12].mxu1 %vm426_vm0, %v667_v22 }
 0x1ba   : > { %v668_v23 = vpop.trf.xlu0 }
 0x1bb   : > { %2287 = vmatprep.mubr.msk.f32.mxu1 %vm426_vm0, %v668_v23 }
 0x1be   : > { %v669_v24 = vpop.trf.xlu0 }
 0x1bf   : > { %2288 = vmatmul.mubr.msk.f32.gmra.mrb[14].mxu1 %vm426_vm0, %v669_v24 }
 0x21a   : > { %v2242_v26 = vpop.f32.mrb[0].mxu0 }
 0x21b   : > { %v541_v27 = vpop.f32.mrb[1].mxu0 }
 0x21c   : > { %2322 = vmatprep.mubr.f32.mxu0 %v541_v27  ;;  %2378 = vmatprep.mubr.f32.mxu1 %v541_v27 }
 0x21d   : > { %2323 = vmatmul.mubr.f32.vlgmr.msra.gmra.mrb[16].mxu0 %v2242_v26  ;;  %2379 = vmatmul.mubr.f32.vlgmr.msra.gmra.mrb[16].mxu1 %v2242_v26 }
 0x21e   : > { %2651 = vmatpush3.bf16.msra.mxu0 %v3455_v7  ;;  %2683 = vmatpush3.bf16.msra.mxu1 %v3457_v9 }
 0x21f   : > { %2653 = vmatprep.subr.bf16.mxu0 %v3462_v13  ;;  %2685 = vmatprep.subr.bf16.mxu1 %v3508_v50 }
 0x222   : > { %v2245_v28 = vpop.f32.mrb[2].mxu0  ;;  %2655 = vmatpush3.bf16.msra.mxu0 %v3462_v13  ;;  %2687 = vmatpush3.bf16.msra.mxu1 %v3508_v50 }
 0x223   : > { %v551_v30 = vpop.f32.mrb[3].mxu0  ;;  %2657 = vmatprep.subr.bf16.mxu0 %v3467_v17  ;;  %2689 = vmatprep.subr.bf16.mxu1 %v3513_v54 }
 0x224   : > { %2325 = vmatprep.mubr.f32.mxu0 %v551_v30  ;;  %2381 = vmatprep.mubr.f32.mxu1 %v551_v30 }
 0x225   : > { %2326 = vmatmul.mubr.f32.gmra.mrb[18].mxu0 %v2245_v28  ;;  %2382 = vmatmul.mubr.f32.gmra.mrb[18].mxu1 %v2245_v28 }
 0x226   : > { %2659 = vmatpush3.bf16.msra.mxu0 %v3467_v17  ;;  %2691 = vmatpush3.bf16.msra.mxu1 %v3513_v54 }
 0x227   : > { %2661 = vmatprep.subr.bf16.mxu0 %v3472_v21  ;;  %2693 = vmatprep.subr.bf16.mxu1 %v3518_v58 }
 0x22a   : > { %v2248_v31 = vpop.f32.mrb[4].mxu0  ;;  %2663 = vmatpush3.bf16.msra.mxu0 %v3472_v21  ;;  %2695 = vmatpush3.bf16.msra.mxu1 %v3518_v58 }
 0x22b   : > { %v561_v32 = vpop.f32.mrb[5].mxu0  ;;  %2665 = vmatprep.subr.bf16.mxu0 %v3477_v25  ;;  %2697 = vmatprep.subr.bf16.mxu1 %v3523_v62 }
 0x22c   : > { %2328 = vmatprep.mubr.f32.mxu0 %v561_v32  ;;  %2384 = vmatprep.mubr.f32.mxu1 %v561_v32 }
 0x22d   : > { %2329 = vmatmul.mubr.f32.gmra.mrb[20].mxu0 %v2248_v31  ;;  %2385 = vmatmul.mubr.f32.gmra.mrb[20].mxu1 %v2248_v31 }
 0x22e   : > { %2667 = vmatpush3.bf16.msra.mxu0 %v3477_v25  ;;  %2699 = vmatpush3.bf16.msra.mxu1 %v3523_v62 }
 0x22f   : > { %2669 = vmatprep.subr.bf16.mxu0 %v3482_v29  ;;  %2701 = vmatprep.subr.bf16.mxu1 %v3528_v2 }
 0x232   : > { %v2251_v34 = vpop.f32.mrb[6].mxu0  ;;  %2671 = vmatpush3.bf16.msra.mxu0 %v3482_v29  ;;  %2703 = vmatpush3.bf16.msra.mxu1 %v3528_v2 }
 0x233   : > { %v571_v35 = vpop.f32.mrb[7].mxu0  ;;  %2673 = vmatprep.subr.bf16.mxu0 %v3487_v33  ;;  %2705 = vmatprep.subr.bf16.mxu1 %v3533_v6 }
 0x234   : > { %2331 = vmatprep.mubr.f32.mxu0 %v571_v35  ;;  %2387 = vmatprep.mubr.f32.mxu1 %v571_v35 }
 0x235   : > { %2332 = vmatmul.mubr.f32.gmra.mrb[22].mxu0 %v2251_v34  ;;  %2388 = vmatmul.mubr.f32.gmra.mrb[22].mxu1 %v2251_v34 }
 0x236   : > { %2675 = vmatpush3.bf16.msra.mxu0 %v3487_v33  ;;  %2707 = vmatpush3.bf16.msra.mxu1 %v3533_v6 }
 0x237   : > { %2677 = vmatprep.subr.bf16.mxu0 %v3492_v37  ;;  %2709 = vmatprep.subr.bf16.mxu1 %v3538_v12 }
 0x23a   : > { %v2254_v36 = vpop.f32.mrb[8].mxu0  ;;  %2679 = vmatpush3.bf16.msra.mxu0 %v3492_v37  ;;  %2711 = vmatpush3.bf16.msra.mxu1 %v3538_v12 }
 0x23b   : > { %v581_v38 = vpop.f32.mrb[9].mxu0  ;;  %2712 = vmatprep.subr.bf16.mxu0 %v3143_v1  ;;  %2736 = vmatprep.subr.bf16.mxu1 %v3143_v1 }
 0x23c   : > { %2334 = vmatprep.mubr.f32.mxu0 %v581_v38  ;;  %2390 = vmatprep.mubr.f32.mxu1 %v581_v38 }
 0x23d   : > { %2335 = vmatmul.mubr.f32.gmra.mrb[24].mxu0 %v2254_v36  ;;  %2391 = vmatmul.mubr.f32.gmra.mrb[24].mxu1 %v2254_v36 }
 0x242   : > { %v2257_v39 = vpop.f32.mrb[10].mxu0 }
 0x243   : > { %v591_v40 = vpop.f32.mrb[11].mxu0 }
 0x244   : > { %2337 = vmatprep.mubr.f32.mxu0 %v591_v40  ;;  %2393 = vmatprep.mubr.f32.mxu1 %v591_v40 }
 0x245   : > { %2338 = vmatmul.mubr.f32.gmra.mrb[26].mxu0 %v2257_v39  ;;  %2394 = vmatmul.mubr.f32.gmra.mrb[26].mxu1 %v2257_v39 }
 0x24a   : > { %v2260_v41 = vpop.f32.mrb[12].mxu0 }
 0x24b   : > { %v601_v42 = vpop.f32.mrb[13].mxu0 }
 0x24c   : > { %2340 = vmatprep.mubr.f32.mxu0 %v601_v42  ;;  %2396 = vmatprep.mubr.f32.mxu1 %v601_v42 }
 0x24d   : > { %2341 = vmatmul.mubr.f32.gmra.mrb[28].mxu0 %v2260_v41  ;;  %2397 = vmatmul.mubr.f32.gmra.mrb[28].mxu1 %v2260_v41 }
 0x252   : > { %v2263_v43 = vpop.f32.mrb[14].mxu0 }
 0x253   : > { %v611_v44 = vpop.f32.mrb[15].mxu0 }
 0x254   : > { %2343 = vmatprep.mubr.f32.mxu0 %v611_v44  ;;  %2399 = vmatprep.mubr.f32.mxu1 %v611_v44 }
 0x255   : > { %2344 = vmatmul.mubr.f32.gmra.mrb[30].mxu0 %v2263_v43  ;;  %2400 = vmatmul.mubr.f32.gmra.mrb[30].mxu1 %v2263_v43 }
 0x25a   : > { %v2268_v45 = vpop.f32.mrb[0].mxu1 }
 0x25b   : > { %v784_v46 = vpop.f32.mrb[1].mxu1 }
 0x25c   : > { %2434 = vmatprep.mubr.f32.mxu0 %v784_v46  ;;  %2490 = vmatprep.mubr.f32.mxu1 %v784_v46 }
 0x25d   : > { %2435 = vmatmul.mubr.f32.vlgmr.msra.gmra.mrb[32].mxu0 %v2268_v45  ;;  %2491 = vmatmul.mubr.f32.vlgmr.msra.gmra.mrb[32].mxu1 %v2268_v45 }
 0x25e   : > { %2714 = vmatpush3.bf16.xpose.msra.mxu0 %v3455_v7  ;;  %2738 = vmatpush3.bf16.xpose.msra.mxu1 %v3457_v9 }
 0x25f   : > { %2715 = vmatprep.subr.bf16.mxu0 %v3143_v1  ;;  %2739 = vmatprep.subr.bf16.mxu1 %v3143_v1 }
 0x262   : > { %v2271_v47 = vpop.f32.mrb[2].mxu1 }
 0x263   : > { %v794_v48 = vpop.f32.mrb[3].mxu1 }
 0x264   : > { %2437 = vmatprep.mubr.f32.mxu0 %v794_v48  ;;  %2493 = vmatprep.mubr.f32.mxu1 %v794_v48 }
 0x265   : > { %2438 = vmatmul.mubr.f32.gmra.mrb[34].mxu0 %v2271_v47  ;;  %2494 = vmatmul.mubr.f32.gmra.mrb[34].mxu1 %v2271_v47 }
 0x266   : > { %2717 = vmatpush3.bf16.xpose.msra.mxu0 %v3462_v13  ;;  %2741 = vmatpush3.bf16.xpose.msra.mxu1 %v3508_v50 }
 0x267   : > { %2718 = vmatprep.subr.bf16.mxu0 %v3143_v1  ;;  %2742 = vmatprep.subr.bf16.mxu1 %v3143_v1 }
 0x26a   : > { %v2274_v49 = vpop.f32.mrb[4].mxu1 }
 0x26b   : > { %v804_v51 = vpop.f32.mrb[5].mxu1 }
 0x26c   : > { %2440 = vmatprep.mubr.f32.mxu0 %v804_v51  ;;  %2496 = vmatprep.mubr.f32.mxu1 %v804_v51 }
 0x26d   : > { %2441 = vmatmul.mubr.f32.gmra.mrb[36].mxu0 %v2274_v49  ;;  %2497 = vmatmul.mubr.f32.gmra.mrb[36].mxu1 %v2274_v49 }
 0x26e   : > { %2720 = vmatpush3.bf16.xpose.msra.mxu0 %v3467_v17  ;;  %2744 = vmatpush3.bf16.xpose.msra.mxu1 %v3513_v54  ;;  %v3144_v54 = vmov 0.0  }
 0x26f   : > { %2721 = vmatprep.subr.bf16.mxu0 %v3143_v1  ;;  %2745 = vmatprep.subr.bf16.mxu1 %v3143_v1  ;;  %884 = vst [vmem:[%s3602_s29] sm:$0x1] %v3144_v54 }
 0x272   : > { %v2277_v52 = vpop.f32.mrb[6].mxu1 }
 0x273   : > { %v814_v53 = vpop.f32.mrb[7].mxu1 }
 0x274   : > { %2443 = vmatprep.mubr.f32.mxu0 %v814_v53  ;;  %2499 = vmatprep.mubr.f32.mxu1 %v814_v53 }
 0x275   : > { %2444 = vmatmul.mubr.f32.gmra.mrb[38].mxu0 %v2277_v52  ;;  %2500 = vmatmul.mubr.f32.gmra.mrb[38].mxu1 %v2277_v52 }
 0x276   : > { %2723 = vmatpush3.bf16.xpose.msra.mxu0 %v3472_v21  ;;  %2747 = vmatpush3.bf16.xpose.msra.mxu1 %v3518_v58 }
 0x277   : > { %2724 = vmatprep.subr.bf16.mxu0 %v3143_v1  ;;  %2748 = vmatprep.subr.bf16.mxu1 %v3143_v1 }
 0x27a   : > { %v2280_v55 = vpop.f32.mrb[8].mxu1 }
 0x27b   : > { %v824_v56 = vpop.f32.mrb[9].mxu1 }
 0x27c   : > { %2446 = vmatprep.mubr.f32.mxu0 %v824_v56  ;;  %2502 = vmatprep.mubr.f32.mxu1 %v824_v56 }
 0x27d   : > { %2447 = vmatmul.mubr.f32.gmra.mrb[40].mxu0 %v2280_v55  ;;  %2503 = vmatmul.mubr.f32.gmra.mrb[40].mxu1 %v2280_v55 }
 0x27e   : > { %2726 = vmatpush3.bf16.xpose.msra.mxu0 %v3477_v25  ;;  %2750 = vmatpush3.bf16.xpose.msra.mxu1 %v3523_v62 }
 0x27f   : > { %2727 = vmatprep.subr.bf16.mxu0 %v3143_v1  ;;  %2751 = vmatprep.subr.bf16.mxu1 %v3143_v1 }
 0x282   : > { %v2283_v57 = vpop.f32.mrb[10].mxu1 }
 0x283   : > { %v834_v59 = vpop.f32.mrb[11].mxu1 }
 0x284   : > { %2449 = vmatprep.mubr.f32.mxu0 %v834_v59  ;;  %2505 = vmatprep.mubr.f32.mxu1 %v834_v59 }
 0x285   : > { %2450 = vmatmul.mubr.f32.gmra.mrb[42].mxu0 %v2283_v57  ;;  %2506 = vmatmul.mubr.f32.gmra.mrb[42].mxu1 %v2283_v57 }
 0x286   : > { %2729 = vmatpush3.bf16.xpose.msra.mxu0 %v3482_v29  ;;  %2753 = vmatpush3.bf16.xpose.msra.mxu1 %v3528_v2 }
 0x287   : > { %2730 = vmatprep.subr.bf16.mxu0 %v3143_v1  ;;  %2754 = vmatprep.subr.bf16.mxu1 %v3143_v1 }
 0x28a   : > { %v2286_v60 = vpop.f32.mrb[12].mxu1 }
 0x28b   : > { %v844_v61 = vpop.f32.mrb[13].mxu1 }
 0x28c   : > { %2452 = vmatprep.mubr.f32.mxu0 %v844_v61  ;;  %2508 = vmatprep.mubr.f32.mxu1 %v844_v61 }
 0x28d   : > { %2453 = vmatmul.mubr.f32.gmra.mrb[44].mxu0 %v2286_v60  ;;  %2509 = vmatmul.mubr.f32.gmra.mrb[44].mxu1 %v2286_v60 }
 0x28e   : > { %2732 = vmatpush3.bf16.xpose.msra.mxu0 %v3487_v33  ;;  %2756 = vmatpush3.bf16.xpose.msra.mxu1 %v3533_v6 }
 0x28f   : > { %2733 = vmatprep.subr.bf16.mxu0 %v3143_v1  ;;  %2757 = vmatprep.subr.bf16.mxu1 %v3143_v1 }
 0x292   : > { %v2289_v63 = vpop.f32.mrb[14].mxu1 }
 0x293   : > { %v854_v0 = vpop.f32.mrb[15].mxu1 }
 0x294   : > { %2455 = vmatprep.mubr.f32.mxu0 %v854_v0  ;;  %2511 = vmatprep.mubr.f32.mxu1 %v854_v0 }
 0x295   : > { %2456 = vmatmul.mubr.f32.gmra.mrb[46].mxu0 %v2289_v63  ;;  %2512 = vmatmul.mubr.f32.gmra.mrb[46].mxu1 %v2289_v63 }
 0x296   : > { %2735 = vmatpush3.bf16.xpose.msra.mxu0 %v3492_v37  ;;  %2759 = vmatpush3.bf16.xpose.msra.mxu1 %v3538_v12 }
 0x297   : > { %2546 = vmatprep.mubr.msk.f32.mxu0 %vm3145_vm1, %v3144_v54  ;;  %2581 = vmatprep.mubr.msk.f32.mxu1 %vm3145_vm1, %v3144_v54 }
 0x2f0   : > { %v2324_v7 = vpop.f32.mrb[16].mxu0  ;;  %v2380_v9 = vpop.f32.mrb[16].mxu1 }
 0x2f1   : > { %v1015_v13 = vpop.f32.mrb[17].mxu0  ;;  %v1160_v17 = vpop.f32.mrb[17].mxu1 }
 0x2f8   : > { %v2327_v21 = vpop.f32.mrb[18].mxu0  ;;  %v2383_v25 = vpop.f32.mrb[18].mxu1 }
 0x2f9   : > { %v3597_v50 = vpop.f32.mrb[19].mxu0  ;;  %v1170_v29 = vpop.f32.mrb[19].mxu1 }
 0x300   : > { %v3605_v33 = vpop.f32.mrb[20].mxu0  ;;  %v3607_v58 = vpop.f32.mrb[20].mxu1 }
 0x301   : > { %v3609_v62 = vpop.f32.mrb[21].mxu0  ;;  %v3611_v2 = vpop.f32.mrb[21].mxu1 }
 0x308   : > { %v3613_v3 = vpop.f32.mrb[22].mxu0  ;;  %v3615_v37 = vpop.f32.mrb[22].mxu1 }
 0x309   : > { %v3617_v4 = vpop.f32.mrb[23].mxu0  ;;  %v3619_v5 = vpop.f32.mrb[23].mxu1 }
 0x310   : > { %v3621_v6 = vpop.f32.mrb[24].mxu0  ;;  %v3623_v8 = vpop.f32.mrb[24].mxu1 }
 0x311   : > { %v3625_v10 = vpop.f32.mrb[25].mxu0  ;;  %v3627_v11 = vpop.f32.mrb[25].mxu1 }
 0x318   : > { %v3629_v12 = vpop.f32.mrb[26].mxu0  ;;  %v3631_v14 = vpop.f32.mrb[26].mxu1 }
 0x319   : > { %v3633_v15 = vpop.f32.mrb[27].mxu0  ;;  %v3635_v16 = vpop.f32.mrb[27].mxu1 }
 0x320   : > { %v3637_v18 = vpop.f32.mrb[28].mxu0  ;;  %v3639_v19 = vpop.f32.mrb[28].mxu1 }
 0x321   : > { %v3641_v20 = vpop.f32.mrb[29].mxu0  ;;  %v3643_v22 = vpop.f32.mrb[29].mxu1 }
 0x328   : > { %v3645_v23 = vpop.f32.mrb[30].mxu0  ;;  %v3647_v24 = vpop.f32.mrb[30].mxu1 }
 0x329   : > { %v3649_v26 = vpop.f32.mrb[31].mxu0  ;;  %v3651_v27 = vpop.f32.mrb[31].mxu1 }
 0x330   : > { %v2436_v28 = vpop.f32.mrb[32].mxu0  ;;  %v2492_v30 = vpop.f32.mrb[32].mxu1 }
 0x331   : > { %v1530_v31 = vmul.f32 %v2436_v28, %v2324_v7  ;;  %v1594_v32 = vmul.f32 %v2436_v28, %v2380_v9  ;;  %v1546_v34 = vmul.f32 %v2492_v30, %v2380_v9  ;;  %v1578_v35 = vmul.f32 %v2492_v30, %v2324_v7  ;;  %v1305_v36 = vpop.f32.mrb[33].mxu0  ;;  %v1450_v38 = vpop.f32.mrb[33].mxu1 }
 0x332   : > { %v1529_v39 = vmul.f32 %v1305_v36, %v1015_v13  ;;  %v1593_v40 = vmul.f32 %v1305_v36, %v1160_v17  ;;  %v1545_v41 = vmul.f32 %v1450_v38, %v1160_v17  ;;  %v1577_v42 = vmul.f32 %v1450_v38, %v1015_v13 }
 0x333   : > { %v1562_v43 = vsub.f32 %v1530_v31, %v1546_v34  ;;  %v1610_v44 = vadd.f32 %v1594_v32, %v1578_v35 }
 0x334   : > { %v1561_v45 = vsub.f32 %v1529_v39, %v1545_v41  ;;  %v1609_v46 = vadd.f32 %v1593_v40, %v1577_v42 }
 0x336   : > { %v1625_v47 = vadd.f32 %v1562_v43, %v1561_v45  ;;  %v1646_v48 = vadd.f32 %v1610_v44, %v1609_v46 }
 0x338   : > { %v2439_v49 = vpop.f32.mrb[34].mxu0  ;;  %v2495_v51 = vpop.f32.mrb[34].mxu1 }
 0x339   : > { %v1532_v52 = vmul.f32 %v2439_v49, %v2327_v21  ;;  %v1596_v53 = vmul.f32 %v2439_v49, %v2383_v25  ;;  %v1548_v55 = vmul.f32 %v2495_v51, %v2383_v25  ;;  %v1580_v56 = vmul.f32 %v2495_v51, %v2327_v21  ;;  %v1315_v57 = vpop.f32.mrb[35].mxu0  ;;  %v1460_v59 = vpop.f32.mrb[35].mxu1 }
 0x33a   : > { %v1531_v60 = vmul.f32 %v1315_v57, %v3597_v50  ;;  %v1595_v61 = vmul.f32 %v1315_v57, %v1170_v29  ;;  %v1547_v63 = vmul.f32 %v1460_v59, %v1170_v29  ;;  %v1579_v0 = vmul.f32 %v1460_v59, %v3597_v50 }
 0x33b   : > { %v1564_v1 = vsub.f32 %v1532_v52, %v1548_v55  ;;  %v1612_v7 = vadd.f32 %v1596_v53, %v1580_v56 }
 0x33c   : > { %v1563_v9 = vsub.f32 %v1531_v60, %v1547_v63  ;;  %v1611_v13 = vadd.f32 %v1595_v61, %v1579_v0 }
 0x33e   : > { %v1626_v17 = vadd.f32 %v1625_v47, %v1563_v9  ;;  %v1647_v54 = vadd.f32 %v1646_v48, %v1611_v13 }
 0x340   : > { %v2442_v28 = vpop.f32.mrb[36].mxu0  ;;  %v2498_v30 = vpop.f32.mrb[36].mxu1  ;;  %v1627_v31 = vadd.f32 %v1626_v17, %v1564_v1  ;;  %v1648_v32 = vadd.f32 %v1647_v54, %v1612_v7 }
 0x341   : > { %v1534_v21 = vmul.f32 %v2442_v28, %v3605_v33  ;;  %v1598_v25 = vmul.f32 %v2442_v28, %v3607_v58  ;;  %v1550_v34 = vmul.f32 %v2498_v30, %v3607_v58  ;;  %v1582_v29 = vmul.f32 %v2498_v30, %v3605_v33  ;;  %v1325_v35 = vpop.f32.mrb[37].mxu0  ;;  %v1470_v50 = vpop.f32.mrb[37].mxu1 }
 0x342   : > { %v1533_v36 = vmul.f32 %v1325_v35, %v3609_v62  ;;  %v1597_v38 = vmul.f32 %v1325_v35, %v3611_v2  ;;  %v1549_v39 = vmul.f32 %v1470_v50, %v3611_v2  ;;  %v1581_v40 = vmul.f32 %v1470_v50, %v3609_v62 }
 0x343   : > { %v1566_v41 = vsub.f32 %v1534_v21, %v1550_v34  ;;  %v1614_v42 = vadd.f32 %v1598_v25, %v1582_v29 }
 0x344   : > { %v1565_v43 = vsub.f32 %v1533_v36, %v1549_v39  ;;  %v1613_v44 = vadd.f32 %v1597_v38, %v1581_v40 }
 0x346   : > { %v1628_v45 = vadd.f32 %v1627_v31, %v1565_v43  ;;  %v1649_v46 = vadd.f32 %v1648_v32, %v1613_v44 }
 0x348   : > { %v2445_v47 = vpop.f32.mrb[38].mxu0  ;;  %v2501_v58 = vpop.f32.mrb[38].mxu1  ;;  %v1629_v48 = vadd.f32 %v1628_v45, %v1566_v41  ;;  %v1650_v33 = vadd.f32 %v1649_v46, %v1614_v42 }
 0x349   : > { %v1536_v49 = vmul.f32 %v2445_v47, %v3613_v3  ;;  %v1600_v51 = vmul.f32 %v2445_v47, %v3615_v37  ;;  %v1552_v52 = vmul.f32 %v2501_v58, %v3615_v37  ;;  %v1584_v2 = vmul.f32 %v2501_v58, %v3613_v3  ;;  %v1335_v53 = vpop.f32.mrb[39].mxu0  ;;  %v1480_v62 = vpop.f32.mrb[39].mxu1 }
 0x34a   : > { %v1535_v55 = vmul.f32 %v1335_v53, %v3617_v4  ;;  %v1599_v56 = vmul.f32 %v1335_v53, %v3619_v5  ;;  %v1551_v57 = vmul.f32 %v1480_v62, %v3619_v5  ;;  %v1583_v59 = vmul.f32 %v1480_v62, %v3617_v4 }
 0x34b   : > { %v1568_v60 = vsub.f32 %v1536_v49, %v1552_v52  ;;  %v1616_v61 = vadd.f32 %v1600_v51, %v1584_v2 }
 0x34c   : > { %v1567_v63 = vsub.f32 %v1535_v55, %v1551_v57  ;;  %v1615_v0 = vadd.f32 %v1599_v56, %v1583_v59 }
 0x34e   : > { %v1630_v1 = vadd.f32 %v1629_v48, %v1567_v63  ;;  %v1651_v7 = vadd.f32 %v1650_v33, %v1615_v0 }
 0x350   : > { %v2448_v9 = vpop.f32.mrb[40].mxu0  ;;  %v2504_v37 = vpop.f32.mrb[40].mxu1  ;;  %v1631_v13 = vadd.f32 %v1630_v1, %v1568_v60  ;;  %v1652_v3 = vadd.f32 %v1651_v7, %v1616_v61 }
 0x351   : > { %v1538_v17 = vmul.f32 %v2448_v9, %v3621_v6  ;;  %v1602_v54 = vmul.f32 %v2448_v9, %v3623_v8  ;;  %v1554_v28 = vmul.f32 %v2504_v37, %v3623_v8  ;;  %v1586_v5 = vmul.f32 %v2504_v37, %v3621_v6  ;;  %v1345_v30 = vpop.f32.mrb[41].mxu0  ;;  %v1490_v4 = vpop.f32.mrb[41].mxu1 }
 0x352   : > { %v1537_v31 = vmul.f32 %v1345_v30, %v3625_v10  ;;  %v1601_v32 = vmul.f32 %v1345_v30, %v3627_v11  ;;  %v1553_v21 = vmul.f32 %v1490_v4, %v3627_v11  ;;  %v1585_v25 = vmul.f32 %v1490_v4, %v3625_v10 }
 0x353   : > { %v1570_v34 = vsub.f32 %v1538_v17, %v1554_v28  ;;  %v1618_v29 = vadd.f32 %v1602_v54, %v1586_v5  ;;  %v1668_v28 = vlaneseq }
 0x354   : > { %v1569_v35 = vsub.f32 %v1537_v31, %v1553_v21  ;;  %v1617_v50 = vadd.f32 %v1601_v32, %v1585_v25 }
 0x356   : > { %v1632_v36 = vadd.f32 %v1631_v13, %v1569_v35  ;;  %v1653_v38 = vadd.f32 %v1652_v3, %v1617_v50 }
 0x358   : > { %v2451_v39 = vpop.f32.mrb[42].mxu0  ;;  %v2507_v8 = vpop.f32.mrb[42].mxu1  ;;  %v1633_v40 = vadd.f32 %v1632_v36, %v1570_v34  ;;  %v1654_v6 = vadd.f32 %v1653_v38, %v1618_v29  ;;  %v1669_v38 = vand.u32 127, %v1668_v28 }
 0x359   : > { %v1540_v41 = vmul.f32 %v2451_v39, %v3629_v12  ;;  %v1604_v42 = vmul.f32 %v2451_v39, %v3631_v14  ;;  %v1556_v43 = vmul.f32 %v2507_v8, %v3631_v14  ;;  %v1588_v11 = vmul.f32 %v2507_v8, %v3629_v12  ;;  %v1355_v44 = vpop.f32.mrb[43].mxu0  ;;  %v1500_v10 = vpop.f32.mrb[43].mxu1 }
 0x35a   : > { %v1539_v45 = vmul.f32 %v1355_v44, %v3633_v15  ;;  %v1603_v46 = vmul.f32 %v1355_v44, %v3635_v16  ;;  %v1555_v47 = vmul.f32 %v1500_v10, %v3635_v16  ;;  %v1587_v58 = vmul.f32 %v1500_v10, %v3633_v15 }
 0x35b   : > { %v1572_v48 = vsub.f32 %v1540_v41, %v1556_v43  ;;  %v1620_v33 = vadd.f32 %v1604_v42, %v1588_v11  ;;  %vm1672_vm2 = vcmp.eq.s32.totalorder %v1669_v38, 0 }
 0x35c   : > { %v1571_v49 = vsub.f32 %v1539_v45, %v1555_v47  ;;  %v1619_v51 = vadd.f32 %v1603_v46, %v1587_v58  ;;  %v3146_v46 = vmov 2.0  }
 0x35e   : > { %v1634_v52 = vadd.f32 %v1633_v40, %v1571_v49  ;;  %v1655_v2 = vadd.f32 %v1654_v6, %v1619_v51  ;;  %v1679_v51 = vld [vmem:[%s3602_s29] sm:$0x1] }
 0x360   : > { %v2454_v53 = vpop.f32.mrb[44].mxu0  ;;  %v2510_v14 = vpop.f32.mrb[44].mxu1  ;;  %v1635_v62 = vadd.f32 %v1634_v52, %v1572_v48  ;;  %v1656_v12 = vadd.f32 %v1655_v2, %v1620_v33 }
 0x361   : > { %v1542_v55 = vmul.f32 %v2454_v53, %v3637_v18  ;;  %v1606_v56 = vmul.f32 %v2454_v53, %v3639_v19  ;;  %v1558_v57 = vmul.f32 %v2510_v14, %v3639_v19  ;;  %v1590_v16 = vmul.f32 %v2510_v14, %v3637_v18  ;;  %v1365_v59 = vpop.f32.mrb[45].mxu0  ;;  %v1510_v15 = vpop.f32.mrb[45].mxu1 }
 0x362   : > { %v1541_v60 = vmul.f32 %v1365_v59, %v3641_v20  ;;  %v1605_v61 = vmul.f32 %v1365_v59, %v3643_v22  ;;  %v1557_v63 = vmul.f32 %v1510_v15, %v3643_v22  ;;  %v1589_v0 = vmul.f32 %v1510_v15, %v3641_v20 }
 0x363   : > { %v1574_v1 = vsub.f32 %v1542_v55, %v1558_v57  ;;  %v1622_v7 = vadd.f32 %v1606_v56, %v1590_v16 }
 0x364   : > { %v1573_v9 = vsub.f32 %v1541_v60, %v1557_v63  ;;  %v1621_v37 = vadd.f32 %v1605_v61, %v1589_v0 }
 0x366   : > { %v1636_v13 = vadd.f32 %v1635_v62, %v1573_v9  ;;  %v1657_v3 = vadd.f32 %v1656_v12, %v1621_v37 }
 0x368   : > { %v2457_v17 = vpop.f32.mrb[46].mxu0  ;;  %v2513_v19 = vpop.f32.mrb[46].mxu1  ;;  %v1637_v54 = vadd.f32 %v1636_v13, %v1574_v1  ;;  %v1658_v18 = vadd.f32 %v1657_v3, %v1622_v7 }
 0x369   : > { %v1544_v5 = vmul.f32 %v2457_v17, %v3645_v23  ;;  %v1608_v30 = vmul.f32 %v2457_v17, %v3647_v24  ;;  %v1560_v4 = vmul.f32 %v2513_v19, %v3647_v24  ;;  %v1592_v22 = vmul.f32 %v2513_v19, %v3645_v23  ;;  %v1375_v20 = vpop.f32.mrb[47].mxu0  ;;  %v1520_v31 = vpop.f32.mrb[47].mxu1 }
 0x36a   : > { %v1543_v32 = vmul.f32 %v1375_v20, %v3649_v26  ;;  %v1607_v21 = vmul.f32 %v1375_v20, %v3651_v27  ;;  %v1559_v25 = vmul.f32 %v1520_v31, %v3651_v27  ;;  %v1591_v34 = vmul.f32 %v1520_v31, %v3649_v26 }
 0x36b   : > { %v1576_v29 = vsub.f32 %v1544_v5, %v1560_v4  ;;  %v1624_v35 = vadd.f32 %v1608_v30, %v1592_v22  ;;  %v1673_v23 = vmul.u32 2, %v1669_v38 }
 0x36c   : > { %v1575_v50 = vsub.f32 %v1543_v32, %v1559_v25  ;;  %v1623_v36 = vadd.f32 %v1607_v21, %v1591_v34 }
 0x36d   : > { %vm1674_vm3 = vcmp.eq.s32.totalorder %v1673_v23, 32 }
 0x36e   : > { %v1638_v39 = vadd.f32 %v1637_v54, %v1575_v50  ;;  %v1659_v8 = vadd.f32 %v1658_v18, %v1623_v36  ;;  %vm1675_vm4 = vmor %vm1672_vm2, %vm1674_vm3 }
 0x36f   : > { %v1676_v47 = vsel %vm1675_vm4, 1.0, %v3146_v46 }
 0x370   : > { %v1639_v24 = vadd.f32 %v1638_v39, %v1576_v29  ;;  %v1660_v40 = vadd.f32 %v1659_v8, %v1624_v35 }
 0x372   : > { %v1640_v6 = vrot.slane %v1639_v24, 4  ;;  %v1661_v41 = vrot.slane %v1660_v40, 4 }
 0x374   : > { %v1641_v42 = vadd.f32 %v1640_v6, %v1639_v24  ;;  %v1662_v43 = vadd.f32 %v1661_v41, %v1660_v40 }
 0x376   : > { %v1642_v27 = vrot.slane %v1641_v42, 2  ;;  %v1663_v11 = vrot.slane %v1662_v43, 2 }
 0x378   : > { %v1643_v26 = vadd.f32 %v1642_v27, %v1641_v42  ;;  %v1664_v44 = vadd.f32 %v1663_v11, %v1662_v43 }
 0x37a   : > { %v1644_v10 = vrot.slane %v1643_v26, 1  ;;  %v1665_v45 = vrot.slane %v1664_v44, 1 }
 0x37c   : > { %v1645_v58 = vadd.f32 %v1644_v10, %v1643_v26  ;;  %v1666_v48 = vadd.f32 %v1665_v45, %v1664_v44 }
 0x37e   : > { %v1677_v33 = vmul.f32 %v1676_v47, %v1645_v58  ;;  %v1678_v49 = vmul.f32 %v1676_v47, %v1666_v48 }
 0x380   : > { %2547 = vmatmul.mubr.f32.vlgmr.msra.gmra.mrb[48].mxu0 %v1677_v33  ;;  %2582 = vmatmul.mubr.f32.vlgmr.msra.gmra.mrb[48].mxu1 %v1678_v49 }
 0x453   : > { %v1746_v52 = vpop.f32.mrb[48].mxu0  ;;  %v1819_v2 = vpop.f32.mrb[48].mxu1 }
 0x454   : > { %v1750_v53 = vadd.f32 %v1746_v52, %v1679_v51  ;;  %v2548_v14 = vpop.f32.mrb[49].mxu0  ;;  %v2583_v62 = vpop.f32.mrb[49].mxu1 }
 0x456   : > { %1751 = vst [vmem:[%s3602_s29] sm:$0x1] %v1750_v53 }
 0x45d   : > { %v1752_v12 = vld [vmem:[%s3602_s29] sm:$0x1] }
 0x45e   : > { %v1823_v55 = vadd.f32 %v1819_v2, %v1752_v12 }
 0x460   : > { %1824 = vst [vmem:[%s3602_s29] sm:$0x1] %v1823_v55 }
 0x467   : > { %v1827_v56 = vld [vmem:[%s3602_s29] sm:$0x1] }
 0x468   : > { %v1828_v57 = vmul.f32 0.03125, %v1827_v56 }
 0x46a   : > { %1829 = vst [vmem:[%s3602_s29] sm:$0x1] %v1828_v57 }
 0x46b   : > { %3037 = shalt.err (!%p3034_p10)
}
 0x46c   : > { %s3038_s2 = scalar_lea.hbm %s3714_s13, 16  ;;  %s3042_s12 = scalar_lea.hbm %s3811_s17, 64 }
 0x46d   : > { %p3039_p1 = scmp.ne.s32.totalorder %s3714_s13, %s3038_s2  ;;  %p3043_p0 = scmp.lt.u32.totalorder %s3714_s13, %s3811_s17 }
 0x46e   : > { %p3044_p8 = scmp.lt.u32.totalorder %s3042_s12, %s3038_s2  ;;  %p3046_p7 = scmp.lt.u32.totalorder %s3038_s2, %s3714_s13 }
 0x46f   : > { %p3040_p5 = pnand %p3039_p1, %p3812_p12 }
 0x470   : > { %p3045_p3 = por %p3044_p8, %p3043_p0 }
 0x471   : > { %p3041_p4 = pneg %p3040_p5 }
 0x472   : > { %p3047_p11 = por %p3046_p7, %p3045_p3 }
 0x474   : > { %p3048_p13 = pnand %p3047_p11, %p3041_p4 }
 0x476   : > { %3051 = shalt.err (!%p3048_p13)
}
 0x477   : > { %2776 = dma.vmem_to_hbm [thread:$0]  (%p3812_p12), %s3716_s21, 16, %s3714_s13, %s1831_s5  }
 0x478 PF: > { %s3813_s16 = sld [smem:[#allocation19_spill]]  ;;  %s3814_s29 = sld [smem:[#allocation20_spill]] }
 0x479   : > { %p2806_p9 = scmp.ge.s32.totalorder %s3134_s28, 2 }
 0x47e   : > { %s1857_s11 = sand.u32 1, %s3813_s16   ;;  %p3815_p2 = scmp.ne.s32.totalorder %s3814_s29, 0 }
 0x47f   : > { %s1858_s4 = scalar_lea.sflag [#allocation6], %s1857_s11 }
 0x480   : > { %p2796_p6 = pnand %p2806_p9, %p3815_p2 }
 0x482   : > { %3101 = dma.done.wait (!%p2796_p6), %s1858_s4, 16  }
 0x483   : > { %3103 = vsyncadd (!%p2796_p6), %s1858_s4, 4294967280  ;;  %s26_s28 = sadd.s32 1, %s3134_s28   ;;  %s3816_s30 = sld [smem:[#allocation21_spill]] }
 0x484   : > { %p23_p10 = scmp.ge.s32.totalorder %s26_s28, 6   ;;  %s3817_s8 = sld [smem:[#allocation22_spill]] }
 0x485   : > { %s3818_s21 = smov %s3110_s22  ;;  %s3819_s22 = smov %s3114_s23 }
 0x486   : > { %s3820_s23 = smov %s3358_s20  ;;  %s3821_s24 = smov %s3126_s26 }
 0x487   : > { %s3822_s25 = smov %s3130_s27  ;;  %25 = sbr.rel (!%p23_p10) target bundleno = 15 (0xf), region = 126 }
 0x489   : > { %s3823_s26 = smov %s3816_s30 }
 0x48a   : > { %s3824_s27 = smov %s3817_s8 }
 0x48e   :  { %1862 = vsyncpa [#allocation5], 1 }
 0x48f   :  { %1864 = vsyncpa [#allocation5 + $0x1], 1 }
 0x490   :  { %1865 = vsyncpa [#allocation8], 1 }
 0x491   :  { %1867 = vsyncpa [#allocation8 + $0x1], 1 }
 0x492   :  { %1868 = vsyncpa [#allocation11], 1 }
 0x493   :  { %1869 = vsyncpa [#allocation6], 1 }
 0x494   :  { %1871 = vsyncpa [#allocation6 + $0x1], 1 }

// kernel: tpu_custom_call.1
= control target key start
LH: loop header
LB: loop body
LE: loop exit
PB: predicated region body
PF: predicated region fallthrough
CT: control target
= control target key end

     0   :  { %s3769_s0 = inlined_call_operand.hbm [shape: f32[2,8,256], index: 0, kind: input, shape index: {}]   ;;  %s3770_s1 = inlined_call_operand.hbm [shape: f32[2,8,256], index: 1, kind: input, shape index: {}]   ;;  %s3771_s2 = inlined_call_operand.hbm [shape: f32[8,128], index: 2, kind: input, shape index: {}]   ;;  %s3772_s3 = inlined_call_operand.vmem [shape: f32[8,128], index: 3, kind: input, shape index: {}]   ;;  %s3773_s4 = inlined_call_operand.hbm [shape: f32[128,128], index: 4, kind: input, shape index: {}]   ;;  %s3774_s5 = inlined_call_operand.hbm [shape: f32[128,128], index: 5, kind: input, shape index: {}]   ;;  %s3775_s6 = inlined_call_operand.hbm [shape: f32[2,2,1,128], index: 6, kind: output, shape index: {}]  }
   0x1   :  { %3785 = sst [smem:[#allocation23_spill]] %s3771_s2 }
   0x2   :  { %3786 = sst [smem:[#allocation24_spill]] %s3773_s4 }
   0x3   :  { %3787 = sst [smem:[#allocation25_spill]] %s3774_s5 }
   0x4   :  { %3788 = sst [smem:[#allocation26_spill]] %s3775_s6 }
   0x5   :  { %11 = vsyncpa [#allocation5], 0 }
   0x6   :  { %13 = vsyncpa [#allocation5 + $0x1], 0 }
   0x7   :  { %14 = vsyncpa [#allocation8], 0 }
   0x8   :  { %16 = vsyncpa [#allocation8 + $0x1], 0 }
   0x9   :  { %17 = vsyncpa [#allocation11], 0 }
   0xa   :  { %18 = vsyncpa [#allocation6], 0 }
   0xb   :  { %20 = vsyncpa [#allocation6 + $0x1], 0  ;;  %s3183_s21 = smov 0   ;;  %s3185_s22 = smov 0  }
   0xc   :  { %s3187_s23 = smov 0   ;;  %s3189_s24 = smov 0  }
   0xd   :  { %s3191_s25 = smov 0   ;;  %s3193_s26 = smov 0  }
   0xe   :  { %s3195_s27 = smov 0   ;;  %s3197_s28 = smov 0  }
   0xf LB: > { %3789 = sst [smem:[#allocation19_spill]] %s3106_s21  ;;  %s3224_s29 = sadd.s32 4294967295, %s3134_s28   ;;  %s3134_s28 = sphi %s3197_s28, %s26_s28   ;;  %s3130_s27 = sphi %s3195_s27, %s3824_s27   ;;  %s3126_s26 = sphi %s3193_s26, %s3823_s26   ;;  %s3122_s25 = sphi %s3191_s25, %s3822_s25   ;;  %s3118_s24 = sphi %s3189_s24, %s3821_s24   ;;  %s3114_s23 = sphi %s3187_s23, %s3820_s23   ;;  %s3110_s22 = sphi %s3185_s22, %s3819_s22   ;;  %s3106_s21 = sphi %s3183_s21, %s3818_s21  }
  0x10   : > { %s1988_s30 = sadd.s32 4294967294, %s3134_s28   ;;  %p76_p0 = scmp.ne.s32.totalorder %s3110_s22, %s3106_s21 }
  0x11   : > { %p3776_p1 = scmp.eq.s32.totalorder %s3224_s29, 0  ;;  %p222_p3 = scmp.eq.s32.totalorder %s1988_s30, 3 }
  0x12   : > { %p1989_p5 = scmp.ge.s32.totalorder %s3134_s28, 1  ;;  %p229_p7 = scmp.lt.s32.totalorder %s3134_s28, 5 }
  0x13   : > { %p3233_p4 = por %p3776_p1, %p76_p0  ;;  %p3238_p6 = por %p222_p3, %p76_p0 }
  0x14   : > { %p3243_p8 = pnand %p1989_p5, %p229_p7  ;;  %s3136_s10 = smov [#allocation9]  }
  0x15   : > { %s3790_s7 = scalar_select %p3233_p4, 1, 0 }
  0x16   : > { %s3791_s8 = scalar_select %p3238_p6, 1, 0 }
  0x17   : > { %s3793_s9 = scalar_select %p3243_p8, 1, 0 }
  0x18   : > { %3792 = sst [smem:[#allocation20_spill]] %s3791_s8  ;;  %s242_s11 = sshll.u32 %s3136_s10, 4  ;;  %s243_s11 = int_to_ptr.vmem [resolvable:$true] %s242_s11 }
  0x19   : > { %p2778_p9 = pneg %p3243_p8  ;;  %s3137_s12 = smov [#allocation10]  }
  0x1a   : > { %s255_s13 = sshll.u32 %s3137_s12, 4  ;;  %s3138_s15 = smov [#allocation12]   ;;  %s3255_s13 = int_to_ptr.vmem [resolvable:$true] %s255_s13 }
  0x1b   : > { %p3251_p10 = pnand %p2778_p9, %p3776_p1  ;;  %s3257_s16 = sshll.u32 %s3138_s15, 4  ;;  %s269_s16 = int_to_ptr.vmem [resolvable:$true] %s3257_s16 }
  0x1c   : > { %s3795_s2 = sld [smem:[#allocation23_spill]] }
  0x1d   : > { %p3267_p12 = pneg %p3251_p10 }
  0x22   : > { %s2880_s19 = scalar_lea.hbm %s3795_s2, 128 }
  0x23   : > { %p2881_p11 = scmp.ne.s32.totalorder %s3795_s2, %s2880_s19  ;;  %p2887_p3 = scmp.lt.u32.totalorder %s2880_s19, %s3795_s2 }
  0x25   : > { %p2883_p13 = pnand %p3267_p12, %p2881_p11 }
  0x27   : > { %p2884_p0 = pneg %p2883_p13 }
  0x29   : > { %p2889_p5 = pnand %p2887_p3, %p2884_p0 }
  0x2b   : > { %2892 = shalt.err (!%p2889_p5)
}
  0x2c   : > { %s2893_s17 = scalar_lea.vmem %s243_s11, 128  ;;  %p2901_p2 = scmp.lt.s32.totalorder %s243_s11, %s243_s11 }
  0x2d   : > { %p2894_p7 = scmp.ne.s32.totalorder %s243_s11, %s2893_s17  ;;  %p2902_p6 = scmp.lt.s32.totalorder %s2893_s17, %s2893_s17 }
  0x2f   : > { %p2896_p9 = pnand %p2894_p7, %p3267_p12  ;;  %p2903_p4 = por %p2902_p6, %p2901_p2 }
  0x31   : > { %p2897_p1 = pneg %p2896_p9 }
  0x33   : > { %p2904_p8 = pnand %p2903_p4, %p2897_p1 }
  0x35   : > { %2907 = shalt.err (!%p2904_p8)
}
  0x36   : > { %2781 = dma.hbm_to_vmem [thread:$0]  (!%p3251_p10), %s3795_s2, 128, %s243_s11, [#allocation8]  }
  0x37   : > { %s3797_s4 = sld [smem:[#allocation24_spill]] }
  0x3d   : > { %s2908_s12 = scalar_lea.hbm %s3797_s4, 2048 }
  0x3e   : > { %p2909_p11 = scmp.ne.s32.totalorder %s3797_s4, %s2908_s12  ;;  %p2915_p1 = scmp.lt.u32.totalorder %s2908_s12, %s3797_s4 }
  0x40   : > { %p2911_p13 = pnand %p2909_p11, %p3267_p12 }
  0x42   : > { %p2912_p2 = pneg %p2911_p13 }
  0x44   : > { %p2917_p4 = pnand %p2915_p1, %p2912_p2 }
  0x46   : > { %2920 = shalt.err (!%p2917_p4)
}
  0x47   : > { %s2921_s11 = scalar_lea.vmem %s3255_s13, 2048  ;;  %p2929_p3 = scmp.lt.s32.totalorder %s3255_s13, %s3255_s13 }
  0x48   : > { %p2922_p6 = scmp.ne.s32.totalorder %s3255_s13, %s2921_s11  ;;  %p2930_p5 = scmp.lt.s32.totalorder %s2921_s11, %s2921_s11 }
  0x4a   : > { %p2924_p8 = pnand %p2922_p6, %p3267_p12  ;;  %p2931_p7 = por %p2930_p5, %p2929_p3 }
  0x4c   : > { %p2925_p0 = pneg %p2924_p8 }
  0x4e   : > { %p2932_p9 = pnand %p2931_p7, %p2925_p0 }
  0x50   : > { %2935 = shalt.err (!%p2932_p9)
}
  0x51   : > { %s3139_s8 = smov 128   ;;  %s3140_s21 = smov 8  }
  0x52   : > { %2784 = dma.hbm_to_vmem [thread:$0]  (!%p3251_p10), %s3797_s4, 2048, %s3255_s13, [#allocation11], %s3139_s8, %s3139_s8, %s3140_s21  }
  0x53   : > { %s3798_s5 = sld [smem:[#allocation25_spill]] }
  0x59   : > { %s2936_s12 = scalar_lea.hbm %s3798_s5, 2048 }
  0x5a   : > { %p2937_p11 = scmp.ne.s32.totalorder %s3798_s5, %s2936_s12  ;;  %p2943_p1 = scmp.lt.u32.totalorder %s2936_s12, %s3798_s5 }
  0x5c   : > { %p2939_p13 = pnand %p2937_p11, %p3267_p12 }
  0x5e   : > { %p2940_p2 = pneg %p2939_p13 }
  0x60   : > { %p2945_p4 = pnand %p2943_p1, %p2940_p2 }
  0x62   : > { %2948 = shalt.err (!%p2945_p4)
}
  0x63   : > { %s2949_s18 = scalar_lea.vmem %s269_s16, 2048  ;;  %p2957_p3 = scmp.lt.s32.totalorder %s269_s16, %s269_s16 }
  0x64   : > { %p2950_p6 = scmp.ne.s32.totalorder %s269_s16, %s2949_s18  ;;  %p2958_p5 = scmp.lt.s32.totalorder %s2949_s18, %s2949_s18 }
  0x66   : > { %p2952_p8 = pnand %p2950_p6, %p3267_p12  ;;  %p2959_p7 = por %p2958_p5, %p2957_p3 }
  0x68   : > { %p2953_p0 = pneg %p2952_p8 }
  0x6a   : > { %p2960_p9 = pnand %p2959_p7, %p2953_p0 }
  0x6c   : > { %2963 = shalt.err (!%p2960_p9)
}
  0x6d   : > { %2787 = dma.hbm_to_vmem [thread:$0]  (!%p3251_p10), %s3798_s5, 2048, %s269_s16, [#allocation11], %s3139_s8, %s3139_s8, %s3140_s21  }
  0x6e   : > { %s48_s2 = sadd.s32 1, %s3126_s26  ;;  %s52_s14 = sadd.s32 1, %s3130_s27 }
  0x6f   : > { %p50_p12 = scmp.ge.s32.totalorder %s48_s2, 2  ;;  %s63_s10 = sadd.s32 1, %s3114_s23 }
  0x70   : > { %p70_p11 = scmp.ne.s32.totalorder %s3114_s23, %s3110_s22  ;;  %p71_p13 = scmp.eq.s32.totalorder %s3134_s28, 0 }
  0x71   : > { %s3826_s2 = smov (%p50_p12, %s48_s2), 0  ;;  %s3828_s14 = smov (!%p50_p12, %s52_s14), %s3130_s27 }
  0x72   : > { %3799 = sst [smem:[#allocation21_spill]] %s3826_s2  ;;  %s59_s19 = ssub.s32 %s3126_s26, %s3826_s2 }
  0x73   : > { %p54_p2 = scmp.ge.s32.totalorder %s3828_s14, 2  ;;  %p3800_p1 = scmp.eq.s32.totalorder %s3224_s29, 3 }
  0x74   : > { %p3342_p10 = por %p71_p13, %p70_p11  ;;  %p2802_p6 = scmp.lt.s32.totalorder %s3134_s28, 4 }
  0x75   : > { %p3338_p4 = por %p3800_p1, %p70_p11  ;;  %s3830_s14 = smov (%p54_p2, %s3828_s14), 0 }
  0x76   : > { %3803 = sst [smem:[#allocation22_spill]] %s3830_s14  ;;  %s282_s8 = sand.u32 1, %s3114_s23  }
  0x77   : > { %s3801_s30 = scalar_select %p3338_p4, 1, 0 }
  0x78   : > { %s1995_s21 = sshll.u32 %s3130_s27, 1  ;;  %s58_s12 = ssub.s32 %s3130_s27, %s3830_s14 }
  0x79   : > { %s60_s15 = sor.u32 %s59_s19, %s58_s12  ;;  %s3353_s17 = sshll.u32 %s282_s8, 3 }
  0x7a   : > { %p61_p8 = scmp.eq.s32.totalorder %s60_s15, 0  ;;  %s292_s11 = sadd.s32 %s3126_s26, %s1995_s21 }
  0x7b   : > { %s286_s18 = scalar_lea.vmem [#allocation4], %s3353_s17  ;;  %s1996_s4 = sshll.u32 %s292_s11, 7 }
  0x7c   : > { %s296_s13 = sshll.u32 %s286_s18, 4  ;;  %s3365_s6 = scalar_lea.hbm %s3769_s0, %s1996_s4  ;;  %s3360_s13 = int_to_ptr.vmem [resolvable:$true] %s296_s13 }
  0x7d   : > { %s3358_s20 = scalar_select %p61_p8, %s3114_s23, %s63_s10  }
  0x7e   : > { %p3371_p0 = pnand %p2802_p6, %p3342_p10  ;;  %s3378_s12 = scalar_lea.hbm %s3770_s1, %s1996_s4 }
  0x7f   : > { %s303_s5 = sand.u32 1, %s3134_s28   ;;  %s283_s2 = scalar_lea.sflag [#allocation5], %s282_s8 }
  0x80   : > { %s2964_s15 = scalar_lea.hbm %s3365_s6, 128  ;;  %p2966_p5 = pneg %p3371_p0 }
  0x81   : > { %p2965_p3 = scmp.ne.s32.totalorder %s3365_s6, %s2964_s15  ;;  %s2969_s18 = scalar_lea.hbm %s3769_s0, 512 }
  0x82   : > { %p2970_p12 = scmp.lt.u32.totalorder %s3365_s6, %s3769_s0  ;;  %p2971_p11 = scmp.lt.u32.totalorder %s2969_s18, %s2964_s15 }
  0x83   : > { %p2967_p7 = pnand %p2966_p5, %p2965_p3  ;;  %p2973_p2 = scmp.lt.u32.totalorder %s2964_s15, %s3365_s6 }
  0x84   : > { %p2972_p13 = por %p2971_p11, %p2970_p12 }
  0x85   : > { %p2968_p9 = pneg %p2967_p7 }
  0x86   : > { %p2974_p1 = por %p2973_p2, %p2972_p13 }
  0x88   : > { %p2975_p10 = pnand %p2974_p1, %p2968_p9 }
  0x8a   : > { %2978 = shalt.err (!%p2975_p10)
}
  0x8b   : > { %s2979_s4 = scalar_lea.vmem %s3360_s13, 128  ;;  %s3141_s8 = smov [#allocation4]  }
  0x8c   : > { %p2980_p6 = scmp.ne.s32.totalorder %s3360_s13, %s2979_s4  ;;  %s2984_s21 = sshll.u32 %s3141_s8, 4  ;;  %s2985_s21 = int_to_ptr.vmem [resolvable:$false] %s2984_s21 }
  0x8d   : > { %s2986_s14 = scalar_lea.vmem %s2985_s21, 256  ;;  %p2987_p7 = scmp.lt.s32.totalorder %s3360_s13, %s2985_s21 }
  0x8e   : > { %p2982_p8 = pnand %p2980_p6, %p2966_p5  ;;  %p2988_p12 = scmp.lt.s32.totalorder %s2986_s14, %s2979_s4 }
  0x90   : > { %p2983_p3 = pneg %p2982_p8  ;;  %p2989_p11 = por %p2988_p12, %p2987_p7 }
  0x92   : > { %p2990_p13 = pnand %p2989_p11, %p2983_p3 }
  0x94   : > { %2993 = shalt.err (!%p2990_p13)
}
  0x95   : > { %2791 = dma.hbm_to_vmem [thread:$0]  (!%p3371_p0), %s3365_s6, 128, %s3360_s13, %s283_s2  }
  0x96   : > { %s307_s15 = scalar_lea.vmem [#allocation7], %s3353_s17  ;;  %s304_s11 = scalar_lea.sflag [#allocation8], %s303_s5 }
  0x97   : > { %s317_s16 = sshll.u32 %s307_s15, 4  ;;  %s2994_s18 = scalar_lea.hbm %s3378_s12, 128  ;;  %s318_s16 = int_to_ptr.vmem [resolvable:$true] %s317_s16 }
  0x98   : > { %p2995_p9 = scmp.ne.s32.totalorder %s3378_s12, %s2994_s18  ;;  %s2999_s8 = scalar_lea.hbm %s3770_s1, 512 }
  0x99   : > { %p3000_p10 = scmp.lt.u32.totalorder %s3378_s12, %s3770_s1  ;;  %p3001_p6 = scmp.lt.u32.totalorder %s2999_s8, %s2994_s18 }
  0x9a   : > { %p2997_p2 = pnand %p2995_p9, %p2966_p5  ;;  %p3003_p3 = scmp.lt.u32.totalorder %s2994_s18, %s3378_s12 }
  0x9b   : > { %p3002_p8 = por %p3001_p6, %p3000_p10 }
  0x9c   : > { %p2998_p1 = pneg %p2997_p2 }
  0x9d   : > { %p3004_p7 = por %p3003_p3, %p3002_p8 }
  0x9f   : > { %p3005_p12 = pnand %p3004_p7, %p2998_p1 }
  0xa1   : > { %3008 = shalt.err (!%p3005_p12)
}
  0xa2   : > { %s3009_s6 = scalar_lea.vmem %s318_s16, 128  ;;  %s3142_s17 = smov [#allocation7]  }
  0xa3   : > { %p3010_p11 = scmp.ne.s32.totalorder %s318_s16, %s3009_s6  ;;  %s3014_s13 = sshll.u32 %s3142_s17, 4  ;;  %s3015_s13 = int_to_ptr.vmem [resolvable:$false] %s3014_s13 }
  0xa4   : > { %s3016_s5 = scalar_lea.vmem %s3015_s13, 256  ;;  %p3017_p2 = scmp.lt.s32.totalorder %s318_s16, %s3015_s13 }
  0xa5   : > { %p3012_p13 = pnand %p3010_p11, %p2966_p5  ;;  %p3018_p4 = scmp.lt.s32.totalorder %s3016_s5, %s3009_s6 }
  0xa7   : > { %p3013_p9 = pneg %p3012_p13  ;;  %p3019_p6 = por %p3018_p4, %p3017_p2 }
  0xa9   : > { %p3020_p10 = pnand %p3019_p6, %p3013_p9 }
  0xab   : > { %3023 = shalt.err (!%p3020_p10)
}
  0xac   : > { %2794 = dma.hbm_to_vmem [thread:$0]  (!%p3371_p0), %s3378_s12, 128, %s318_s16, %s304_s11  }
  0xad   : > { %p3805_p1 = scmp.ne.s32.totalorder %s3793_s9, 0 }
  0xae   : > { %s3431_s2 = sand.u32 (!%p3805_p1), 1, %s3110_s22   ;;  %p3806_p5 = scmp.ne.s32.totalorder (!%p3805_p1), %s3790_s7, 0 }
  0xaf   : > { %326 = sbr.rel (%p3805_p1) target bundleno = 1144 (0x478), region = 44  ;;  %s2001_s15 = sshll.u32 (!%p3805_p1), %s3431_s2, 3 }
  0xb0   : > { %s329_s18 = scalar_lea.sflag (!%p3805_p1), [#allocation5], %s3431_s2  ;;  %s332_s10 = scalar_lea.vmem (!%p3805_p1), [#allocation4], %s2001_s15 }
  0xb6   : > { %3085 = dma.done.wait (%p3806_p5), %s329_s18, 128  }
  0xb7   : > { %3087 = vsyncadd (%p3806_p5), %s329_s18, 4294967168  ;;  %s337_s19 = sand.u32 1, %s3224_s29   ;;  %s341_s9 = scalar_lea.vmem [#allocation7], %s2001_s15 }
  0xb8   : > { %s338_s12 = scalar_lea.sflag [#allocation8], %s337_s19 }
  0xb9   : > { %3089 = dma.done.wait (%p3806_p5), %s338_s12, 128  }
  0xba   : > { %3091 = vsyncadd (%p3806_p5), %s338_s12, 4294967168  ;;  %p3807_p4 = scmp.eq.s32.totalorder %s3224_s29, 0 }
  0xbc   : > { %3093 = dma.done.wait (%p3807_p4), [#allocation8], 128   ;;  %p3808_p0 = pmov %p3807_p4 }
  0xbe   : > { %3095 = vsyncadd (%p3808_p0), [#allocation8], 4294967168  ;;  %p3809_p8 = pmov %p3808_p0 }
  0xbf   : > { %p3810_p3 = pmov %p3808_p0 }
  0xc0   : > { %3097 = dma.done.wait (%p3809_p8), [#allocation11], 4096  }
  0xc1   : > { %3099 = vsyncadd (%p3810_p3), [#allocation11], 4294963200  ;;  %v392_v0 = vld [vmem:[%s332_s10] sm:$0xff]  ;;  %v636_v2 = vld [vmem:[%s341_s9] sm:$0xff]  ;;  %vm426_vm0 = vcmask 64512   ;;  %s3602_s29 = scalar_lea.vmem [#allocation13], %s3431_s2 }
  0xc2   : > { %394 = vxpose.xlu0.b32.start.end [1/1] (short) %v392_v0, 128  ;;  %v393_v1 = vld [vmem:[#allocation9] sm:$0xff]  ;;  %v885_v4 = vld [vmem:[#allocation10] sm:$0xff]  ;;  %v886_v5 = vld [vmem:[#allocation10 + $0x8] sm:$0xff]  ;;  %vm3145_vm1 = vmmov 0   ;;  %s2038_s11 = sshll.u32 %s3122_s25, 1  ;;  %s1845_s21 = sshll.u32 %s3602_s29, 4  ;;  %s3716_s21 = int_to_ptr.vmem [resolvable:$true] %s1845_s21 }
  0xc3   : > { %2238 = vmatprep.subr.mxu0 %v393_v1  ;;  %v637_v3 = vld [vmem:[%s3772_s3] sm:$0xff]  ;;  %v901_v6 = vld [vmem:[#allocation12] sm:$0xff]  ;;  %v3455_v7 = vpack.c.bf16 %v886_v5, %v885_v4  ;;  %v902_v8 = vld [vmem:[#allocation12 + $0x8] sm:$0xff]  ;;  %s1841_s4 = sadd.s32 %s3118_s24, %s2038_s11  ;;  %s3811_s17 = sld [smem:[#allocation26_spill]] }
  0xc4   : > { %2239 = vmatpush3.msra.mxu0 %v393_v1  ;;  %2264 = vmatprep.subr.mxu1 %v637_v3  ;;  %v3457_v9 = vpack.c.bf16 %v902_v8, %v901_v6  ;;  %v887_v11 = vld [vmem:[#allocation10 + $0x10] sm:$0xff]  ;;  %v888_v12 = vld [vmem:[#allocation10 + $0x18] sm:$0xff]  ;;  %v889_v15 = vld [vmem:[#allocation10 + $0x20] sm:$0xff]  ;;  %s2039_s8 = sshll.u32 %s1841_s4, 4  ;;  %s1831_s5 = scalar_lea.sflag [#allocation6], %s3431_s2 }
  0xc5   : > { %2265 = vmatpush3.msra.mxu1 %v637_v3  ;;  %2585 = vmatprep.subr.bf16.mxu0 %v3455_v7  ;;  %v3462_v13 = vpack.c.bf16 %v888_v12, %v887_v11  ;;  %v890_v16 = vld [vmem:[#allocation10 + $0x28] sm:$0xff]  ;;  %v891_v19 = vld [vmem:[#allocation10 + $0x30] sm:$0xff]  ;;  %v892_v20 = vld [vmem:[#allocation10 + $0x38] sm:$0xff]  ;;  %s3024_s15 = scalar_lea.vmem %s3716_s21, 16  ;;  %p3812_p12 = scmp.ne.s32.totalorder %s3801_s30, 0 }
  0xc6   : > { %2617 = vmatprep.subr.bf16.mxu1 %v3457_v9  ;;  %v3467_v17 = vpack.c.bf16 %v890_v16, %v889_v15  ;;  %v3472_v21 = vpack.c.bf16 %v892_v20, %v891_v19  ;;  %v893_v23 = vld [vmem:[#allocation10 + $0x40] sm:$0xff]  ;;  %v894_v24 = vld [vmem:[#allocation10 + $0x48] sm:$0xff]  ;;  %v895_v27 = vld [vmem:[#allocation10 + $0x50] sm:$0xff]  ;;  %p3025_p7 = scmp.ne.s32.totalorder %s3716_s21, %s3024_s15  ;;  %s3147_s24 = smov [#allocation13]  }
  0xc7   : > { %v3477_v25 = vpack.c.bf16 %v894_v24, %v893_v23  ;;  %v896_v28 = vld [vmem:[#allocation10 + $0x58] sm:$0xff]  ;;  %v897_v31 = vld [vmem:[#allocation10 + $0x60] sm:$0xff]  ;;  %v898_v32 = vld [vmem:[#allocation10 + $0x68] sm:$0xff]  ;;  %s3028_s25 = sshll.u32 %s3147_s24, 4  ;;  %s3029_s25 = int_to_ptr.vmem [resolvable:$false] %s3028_s25 }
  0xc8   : > { %v3482_v29 = vpack.c.bf16 %v896_v28, %v895_v27  ;;  %v3487_v33 = vpack.c.bf16 %v898_v32, %v897_v31  ;;  %v899_v35 = vld [vmem:[#allocation10 + $0x70] sm:$0xff]  ;;  %v900_v36 = vld [vmem:[#allocation10 + $0x78] sm:$0xff]  ;;  %v905_v52 = vld [vmem:[#allocation12 + $0x20] sm:$0xff]  ;;  %p3026_p11 = pnand %p3025_p7, %p3812_p12  ;;  %s3030_s18 = scalar_lea.vmem %s3029_s25, 32 }
  0xc9   : > { %v3492_v37 = vpack.c.bf16 %v900_v36, %v899_v35  ;;  %v903_v48 = vld [vmem:[#allocation12 + $0x10] sm:$0xff]  ;;  %v904_v49 = vld [vmem:[#allocation12 + $0x18] sm:$0xff]  ;;  %v906_v53 = vld [vmem:[#allocation12 + $0x28] sm:$0xff]  ;;  %s3714_s13 = scalar_lea.hbm %s3811_s17, %s2039_s8  ;;  %p3031_p9 = scmp.lt.s32.totalorder %s3716_s21, %s3029_s25 }
  0xca   : > { %v3508_v50 = vpack.c.bf16 %v904_v49, %v903_v48  ;;  %v3513_v54 = vpack.c.bf16 %v906_v53, %v905_v52  ;;  %v907_v56 = vld [vmem:[#allocation12 + $0x30] sm:$0xff]  ;;  %v908_v57 = vld [vmem:[#allocation12 + $0x38] sm:$0xff]  ;;  %v909_v60 = vld [vmem:[#allocation12 + $0x40] sm:$0xff]  ;;  %p3027_p13 = pneg %p3026_p11  ;;  %p3032_p2 = scmp.lt.s32.totalorder %s3030_s18, %s3024_s15 }
  0xcb   : > { %v3518_v58 = vpack.c.bf16 %v908_v57, %v907_v56  ;;  %v910_v61 = vld [vmem:[#allocation12 + $0x48] sm:$0xff]  ;;  %v911_v0 = vld [vmem:[#allocation12 + $0x50] sm:$0xff]  ;;  %v912_v1 = vld [vmem:[#allocation12 + $0x58] sm:$0xff] }
  0xcc   : > { %v3523_v62 = vpack.c.bf16 %v910_v61, %v909_v60  ;;  %v913_v4 = vld [vmem:[#allocation12 + $0x60] sm:$0xff]  ;;  %v914_v5 = vld [vmem:[#allocation12 + $0x68] sm:$0xff]  ;;  %v916_v11 = vld [vmem:[#allocation12 + $0x78] sm:$0xff]  ;;  %p3033_p6 = por %p3032_p2, %p3031_p9 }
  0xcd   : > { %v3533_v6 = vpack.c.bf16 %v914_v5, %v913_v4 }
  0xce   : > { %p3034_p10 = pnand %p3033_p6, %p3027_p13 }
  0xff   : > { %638 = vxpose.xlu0.b32.start.end [1/1] (short) %v636_v2, 128  ;;  %v3528_v2 = vpack.c.bf16 %v912_v1, %v911_v0  ;;  %v3143_v1 = vmov 0.0|0.0  }
 0x142   : > { %v410_v10 = vpop.trf.xlu0 }
 0x143   : > { %2240 = vmatprep.mubr.msk.f32.mxu0 %vm426_vm0, %v410_v10  ;;  %v915_v10 = vld [vmem:[#allocation12 + $0x70] sm:$0xff] }
 0x144   : > { %v3538_v12 = vpack.c.bf16 %v916_v11, %v915_v10 }
 0x146   : > { %v411_v14 = vpop.trf.xlu0 }
 0x147   : > { %2241 = vmatmul.mubr.msk.f32.vlgmr.msra.gmra.mrb[0].mxu0 %vm426_vm0, %v411_v14 }
 0x148   : > { %2587 = vmatpush3.bf16.msra.mxu0 %v3455_v7 }
 0x149   : > { %2589 = vmatprep.subr.bf16.mxu0 %v3462_v13 }
 0x14a   : > { %v412_v18 = vpop.trf.xlu0 }
 0x14b   : > { %2243 = vmatprep.mubr.msk.f32.mxu0 %vm426_vm0, %v412_v18 }
 0x14c   : > { %2591 = vmatpush3.bf16.msra.mxu0 %v3462_v13 }
 0x14d   : > { %2593 = vmatprep.subr.bf16.mxu0 %v3467_v17 }
 0x14e   : > { %v413_v22 = vpop.trf.xlu0 }
 0x14f   : > { %2244 = vmatmul.mubr.msk.f32.gmra.mrb[2].mxu0 %vm426_vm0, %v413_v22 }
 0x150   : > { %2595 = vmatpush3.bf16.msra.mxu0 %v3467_v17 }
 0x151   : > { %2597 = vmatprep.subr.bf16.mxu0 %v3472_v21 }
 0x152   : > { %v414_v26 = vpop.trf.xlu0 }
 0x153   : > { %2246 = vmatprep.mubr.msk.f32.mxu0 %vm426_vm0, %v414_v26 }
 0x154   : > { %2599 = vmatpush3.bf16.msra.mxu0 %v3472_v21 }
 0x155   : > { %2601 = vmatprep.subr.bf16.mxu0 %v3477_v25 }
 0x156   : > { %v415_v30 = vpop.trf.xlu0 }
 0x157   : > { %2247 = vmatmul.mubr.msk.f32.gmra.mrb[4].mxu0 %vm426_vm0, %v415_v30 }
 0x158   : > { %2603 = vmatpush3.bf16.msra.mxu0 %v3477_v25 }
 0x159   : > { %2605 = vmatprep.subr.bf16.mxu0 %v3482_v29 }
 0x15a   : > { %v416_v34 = vpop.trf.xlu0 }
 0x15b   : > { %2249 = vmatprep.mubr.msk.f32.mxu0 %vm426_vm0, %v416_v34 }
 0x15c   : > { %2607 = vmatpush3.bf16.msra.mxu0 %v3482_v29 }
 0x15d   : > { %2609 = vmatprep.subr.bf16.mxu0 %v3487_v33 }
 0x15e   : > { %v417_v38 = vpop.trf.xlu0 }
 0x15f   : > { %2250 = vmatmul.mubr.msk.f32.gmra.mrb[6].mxu0 %vm426_vm0, %v417_v38 }
 0x160   : > { %2611 = vmatpush3.bf16.msra.mxu0 %v3487_v33 }
 0x161   : > { %2613 = vmatprep.subr.bf16.mxu0 %v3492_v37 }
 0x162   : > { %v418_v39 = vpop.trf.xlu0 }
 0x163   : > { %2252 = vmatprep.mubr.msk.f32.mxu0 %vm426_vm0, %v418_v39 }
 0x164   : > { %2615 = vmatpush3.bf16.msra.mxu0 %v3492_v37 }
 0x165   : > { %2649 = vmatprep.subr.bf16.mxu0 %v3455_v7 }
 0x166   : > { %v419_v40 = vpop.trf.xlu0 }
 0x167   : > { %2253 = vmatmul.mubr.msk.f32.gmra.mrb[8].mxu0 %vm426_vm0, %v419_v40 }
 0x16a   : > { %v420_v41 = vpop.trf.xlu0 }
 0x16b   : > { %2255 = vmatprep.mubr.msk.f32.mxu0 %vm426_vm0, %v420_v41 }
 0x16e   : > { %v421_v42 = vpop.trf.xlu0 }
 0x16f   : > { %2256 = vmatmul.mubr.msk.f32.gmra.mrb[10].mxu0 %vm426_vm0, %v421_v42 }
 0x172   : > { %v422_v43 = vpop.trf.xlu0 }
 0x173   : > { %2258 = vmatprep.mubr.msk.f32.mxu0 %vm426_vm0, %v422_v43 }
 0x176   : > { %v423_v44 = vpop.trf.xlu0 }
 0x177   : > { %2259 = vmatmul.mubr.msk.f32.gmra.mrb[12].mxu0 %vm426_vm0, %v423_v44 }
 0x17a   : > { %v424_v45 = vpop.trf.xlu0 }
 0x17b   : > { %2261 = vmatprep.mubr.msk.f32.mxu0 %vm426_vm0, %v424_v45 }
 0x17e   : > { %v425_v46 = vpop.trf.xlu0 }
 0x17f   : > { %2262 = vmatmul.mubr.msk.f32.gmra.mrb[14].mxu0 %vm426_vm0, %v425_v46 }
 0x182   : > { %v654_v47 = vpop.trf.xlu0 }
 0x183   : > { %2266 = vmatprep.mubr.msk.f32.mxu1 %vm426_vm0, %v654_v47 }
 0x186   : > { %v655_v51 = vpop.trf.xlu0 }
 0x187   : > { %2267 = vmatmul.mubr.msk.f32.vlgmr.msra.gmra.mrb[0].mxu1 %vm426_vm0, %v655_v51 }
 0x188   : > { %2619 = vmatpush3.bf16.msra.mxu1 %v3457_v9 }
 0x189   : > { %2621 = vmatprep.subr.bf16.mxu1 %v3508_v50 }
 0x18a   : > { %v656_v55 = vpop.trf.xlu0 }
 0x18b   : > { %2269 = vmatprep.mubr.msk.f32.mxu1 %vm426_vm0, %v656_v55 }
 0x18c   : > { %2623 = vmatpush3.bf16.msra.mxu1 %v3508_v50 }
 0x18d   : > { %2625 = vmatprep.subr.bf16.mxu1 %v3513_v54 }
 0x18e   : > { %v657_v59 = vpop.trf.xlu0 }
 0x18f   : > { %2270 = vmatmul.mubr.msk.f32.gmra.mrb[2].mxu1 %vm426_vm0, %v657_v59 }
 0x190   : > { %2627 = vmatpush3.bf16.msra.mxu1 %v3513_v54 }
 0x191   : > { %2629 = vmatprep.subr.bf16.mxu1 %v3518_v58 }
 0x192   : > { %v658_v63 = vpop.trf.xlu0 }
 0x193   : > { %2272 = vmatprep.mubr.msk.f32.mxu1 %vm426_vm0, %v658_v63 }
 0x194   : > { %2631 = vmatpush3.bf16.msra.mxu1 %v3518_v58 }
 0x195   : > { %2633 = vmatprep.subr.bf16.mxu1 %v3523_v62 }
 0x196   : > { %v659_v3 = vpop.trf.xlu0 }
 0x197   : > { %2273 = vmatmul.mubr.msk.f32.gmra.mrb[4].mxu1 %vm426_vm0, %v659_v3 }
 0x198   : > { %2635 = vmatpush3.bf16.msra.mxu1 %v3523_v62 }
 0x199   : > { %2637 = vmatprep.subr.bf16.mxu1 %v3528_v2 }
 0x19a   : > { %v660_v8 = vpop.trf.xlu0 }
 0x19b   : > { %2275 = vmatprep.mubr.msk.f32.mxu1 %vm426_vm0, %v660_v8 }
 0x19c   : > { %2639 = vmatpush3.bf16.msra.mxu1 %v3528_v2 }
 0x19d   : > { %2641 = vmatprep.subr.bf16.mxu1 %v3533_v6 }
 0x19e   : > { %v661_v14 = vpop.trf.xlu0 }
 0x19f   : > { %2276 = vmatmul.mubr.msk.f32.gmra.mrb[6].mxu1 %vm426_vm0, %v661_v14 }
 0x1a0   : > { %2643 = vmatpush3.bf16.msra.mxu1 %v3533_v6 }
 0x1a1   : > { %2645 = vmatprep.subr.bf16.mxu1 %v3538_v12 }
 0x1a2   : > { %v662_v15 = vpop.trf.xlu0 }
 0x1a3   : > { %2278 = vmatprep.mubr.msk.f32.mxu1 %vm426_vm0, %v662_v15 }
 0x1a4   : > { %2647 = vmatpush3.bf16.msra.mxu1 %v3538_v12 }
 0x1a5   : > { %2681 = vmatprep.subr.bf16.mxu1 %v3457_v9 }
 0x1a6   : > { %v663_v16 = vpop.trf.xlu0 }
 0x1a7   : > { %2279 = vmatmul.mubr.msk.f32.gmra.mrb[8].mxu1 %vm426_vm0, %v663_v16 }
 0x1aa   : > { %v664_v18 = vpop.trf.xlu0 }
 0x1ab   : > { %2281 = vmatprep.mubr.msk.f32.mxu1 %vm426_vm0, %v664_v18 }
 0x1ae   : > { %v665_v19 = vpop.trf.xlu0 }
 0x1af   : > { %2282 = vmatmul.mubr.msk.f32.gmra.mrb[10].mxu1 %vm426_vm0, %v665_v19 }
 0x1b2   : > { %v666_v20 = vpop.trf.xlu0 }
 0x1b3   : > { %2284 = vmatprep.mubr.msk.f32.mxu1 %vm426_vm0, %v666_v20 }
 0x1b6   : > { %v667_v22 = vpop.trf.xlu0 }
 0x1b7   : > { %2285 = vmatmul.mubr.msk.f32.gmra.mrb[12].mxu1 %vm426_vm0, %v667_v22 }
 0x1ba   : > { %v668_v23 = vpop.trf.xlu0 }
 0x1bb   : > { %2287 = vmatprep.mubr.msk.f32.mxu1 %vm426_vm0, %v668_v23 }
 0x1be   : > { %v669_v24 = vpop.trf.xlu0 }
 0x1bf   : > { %2288 = vmatmul.mubr.msk.f32.gmra.mrb[14].mxu1 %vm426_vm0, %v669_v24 }
 0x21a   : > { %v2242_v26 = vpop.f32.mrb[0].mxu0 }
 0x21b   : > { %v541_v27 = vpop.f32.mrb[1].mxu0 }
 0x21c   : > { %2322 = vmatprep.mubr.f32.mxu0 %v541_v27  ;;  %2378 = vmatprep.mubr.f32.mxu1 %v541_v27 }
 0x21d   : > { %2323 = vmatmul.mubr.f32.vlgmr.msra.gmra.mrb[16].mxu0 %v2242_v26  ;;  %2379 = vmatmul.mubr.f32.vlgmr.msra.gmra.mrb[16].mxu1 %v2242_v26 }
 0x21e   : > { %2651 = vmatpush3.bf16.msra.mxu0 %v3455_v7  ;;  %2683 = vmatpush3.bf16.msra.mxu1 %v3457_v9 }
 0x21f   : > { %2653 = vmatprep.subr.bf16.mxu0 %v3462_v13  ;;  %2685 = vmatprep.subr.bf16.mxu1 %v3508_v50 }
 0x222   : > { %v2245_v28 = vpop.f32.mrb[2].mxu0  ;;  %2655 = vmatpush3.bf16.msra.mxu0 %v3462_v13  ;;  %2687 = vmatpush3.bf16.msra.mxu1 %v3508_v50 }
 0x223   : > { %v551_v30 = vpop.f32.mrb[3].mxu0  ;;  %2657 = vmatprep.subr.bf16.mxu0 %v3467_v17  ;;  %2689 = vmatprep.subr.bf16.mxu1 %v3513_v54 }
 0x224   : > { %2325 = vmatprep.mubr.f32.mxu0 %v551_v30  ;;  %2381 = vmatprep.mubr.f32.mxu1 %v551_v30 }
 0x225   : > { %2326 = vmatmul.mubr.f32.gmra.mrb[18].mxu0 %v2245_v28  ;;  %2382 = vmatmul.mubr.f32.gmra.mrb[18].mxu1 %v2245_v28 }
 0x226   : > { %2659 = vmatpush3.bf16.msra.mxu0 %v3467_v17  ;;  %2691 = vmatpush3.bf16.msra.mxu1 %v3513_v54 }
 0x227   : > { %2661 = vmatprep.subr.bf16.mxu0 %v3472_v21  ;;  %2693 = vmatprep.subr.bf16.mxu1 %v3518_v58 }
 0x22a   : > { %v2248_v31 = vpop.f32.mrb[4].mxu0  ;;  %2663 = vmatpush3.bf16.msra.mxu0 %v3472_v21  ;;  %2695 = vmatpush3.bf16.msra.mxu1 %v3518_v58 }
 0x22b   : > { %v561_v32 = vpop.f32.mrb[5].mxu0  ;;  %2665 = vmatprep.subr.bf16.mxu0 %v3477_v25  ;;  %2697 = vmatprep.subr.bf16.mxu1 %v3523_v62 }
 0x22c   : > { %2328 = vmatprep.mubr.f32.mxu0 %v561_v32  ;;  %2384 = vmatprep.mubr.f32.mxu1 %v561_v32 }
 0x22d   : > { %2329 = vmatmul.mubr.f32.gmra.mrb[20].mxu0 %v2248_v31  ;;  %2385 = vmatmul.mubr.f32.gmra.mrb[20].mxu1 %v2248_v31 }
 0x22e   : > { %2667 = vmatpush3.bf16.msra.mxu0 %v3477_v25  ;;  %2699 = vmatpush3.bf16.msra.mxu1 %v3523_v62 }
 0x22f   : > { %2669 = vmatprep.subr.bf16.mxu0 %v3482_v29  ;;  %2701 = vmatprep.subr.bf16.mxu1 %v3528_v2 }
 0x232   : > { %v2251_v34 = vpop.f32.mrb[6].mxu0  ;;  %2671 = vmatpush3.bf16.msra.mxu0 %v3482_v29  ;;  %2703 = vmatpush3.bf16.msra.mxu1 %v3528_v2 }
 0x233   : > { %v571_v35 = vpop.f32.mrb[7].mxu0  ;;  %2673 = vmatprep.subr.bf16.mxu0 %v3487_v33  ;;  %2705 = vmatprep.subr.bf16.mxu1 %v3533_v6 }
 0x234   : > { %2331 = vmatprep.mubr.f32.mxu0 %v571_v35  ;;  %2387 = vmatprep.mubr.f32.mxu1 %v571_v35 }
 0x235   : > { %2332 = vmatmul.mubr.f32.gmra.mrb[22].mxu0 %v2251_v34  ;;  %2388 = vmatmul.mubr.f32.gmra.mrb[22].mxu1 %v2251_v34 }
 0x236   : > { %2675 = vmatpush3.bf16.msra.mxu0 %v3487_v33  ;;  %2707 = vmatpush3.bf16.msra.mxu1 %v3533_v6 }
 0x237   : > { %2677 = vmatprep.subr.bf16.mxu0 %v3492_v37  ;;  %2709 = vmatprep.subr.bf16.mxu1 %v3538_v12 }
 0x23a   : > { %v2254_v36 = vpop.f32.mrb[8].mxu0  ;;  %2679 = vmatpush3.bf16.msra.mxu0 %v3492_v37  ;;  %2711 = vmatpush3.bf16.msra.mxu1 %v3538_v12 }
 0x23b   : > { %v581_v38 = vpop.f32.mrb[9].mxu0  ;;  %2712 = vmatprep.subr.bf16.mxu0 %v3143_v1  ;;  %2736 = vmatprep.subr.bf16.mxu1 %v3143_v1 }
 0x23c   : > { %2334 = vmatprep.mubr.f32.mxu0 %v581_v38  ;;  %2390 = vmatprep.mubr.f32.mxu1 %v581_v38 }
 0x23d   : > { %2335 = vmatmul.mubr.f32.gmra.mrb[24].mxu0 %v2254_v36  ;;  %2391 = vmatmul.mubr.f32.gmra.mrb[24].mxu1 %v2254_v36 }
 0x242   : > { %v2257_v39 = vpop.f32.mrb[10].mxu0 }
 0x243   : > { %v591_v40 = vpop.f32.mrb[11].mxu0 }
 0x244   : > { %2337 = vmatprep.mubr.f32.mxu0 %v591_v40  ;;  %2393 = vmatprep.mubr.f32.mxu1 %v591_v40 }
 0x245   : > { %2338 = vmatmul.mubr.f32.gmra.mrb[26].mxu0 %v2257_v39  ;;  %2394 = vmatmul.mubr.f32.gmra.mrb[26].mxu1 %v2257_v39 }
 0x24a   : > { %v2260_v41 = vpop.f32.mrb[12].mxu0 }
 0x24b   : > { %v601_v42 = vpop.f32.mrb[13].mxu0 }
 0x24c   : > { %2340 = vmatprep.mubr.f32.mxu0 %v601_v42  ;;  %2396 = vmatprep.mubr.f32.mxu1 %v601_v42 }
 0x24d   : > { %2341 = vmatmul.mubr.f32.gmra.mrb[28].mxu0 %v2260_v41  ;;  %2397 = vmatmul.mubr.f32.gmra.mrb[28].mxu1 %v2260_v41 }
 0x252   : > { %v2263_v43 = vpop.f32.mrb[14].mxu0 }
 0x253   : > { %v611_v44 = vpop.f32.mrb[15].mxu0 }
 0x254   : > { %2343 = vmatprep.mubr.f32.mxu0 %v611_v44  ;;  %2399 = vmatprep.mubr.f32.mxu1 %v611_v44 }
 0x255   : > { %2344 = vmatmul.mubr.f32.gmra.mrb[30].mxu0 %v2263_v43  ;;  %2400 = vmatmul.mubr.f32.gmra.mrb[30].mxu1 %v2263_v43 }
 0x25a   : > { %v2268_v45 = vpop.f32.mrb[0].mxu1 }
 0x25b   : > { %v784_v46 = vpop.f32.mrb[1].mxu1 }
 0x25c   : > { %2434 = vmatprep.mubr.f32.mxu0 %v784_v46  ;;  %2490 = vmatprep.mubr.f32.mxu1 %v784_v46 }
 0x25d   : > { %2435 = vmatmul.mubr.f32.vlgmr.msra.gmra.mrb[32].mxu0 %v2268_v45  ;;  %2491 = vmatmul.mubr.f32.vlgmr.msra.gmra.mrb[32].mxu1 %v2268_v45 }
 0x25e   : > { %2714 = vmatpush3.bf16.xpose.msra.mxu0 %v3455_v7  ;;  %2738 = vmatpush3.bf16.xpose.msra.mxu1 %v3457_v9 }
 0x25f   : > { %2715 = vmatprep.subr.bf16.mxu0 %v3143_v1  ;;  %2739 = vmatprep.subr.bf16.mxu1 %v3143_v1 }
 0x262   : > { %v2271_v47 = vpop.f32.mrb[2].mxu1 }
 0x263   : > { %v794_v48 = vpop.f32.mrb[3].mxu1 }
 0x264   : > { %2437 = vmatprep.mubr.f32.mxu0 %v794_v48  ;;  %2493 = vmatprep.mubr.f32.mxu1 %v794_v48 }
 0x265   : > { %2438 = vmatmul.mubr.f32.gmra.mrb[34].mxu0 %v2271_v47  ;;  %2494 = vmatmul.mubr.f32.gmra.mrb[34].mxu1 %v2271_v47 }
 0x266   : > { %2717 = vmatpush3.bf16.xpose.msra.mxu0 %v3462_v13  ;;  %2741 = vmatpush3.bf16.xpose.msra.mxu1 %v3508_v50 }
 0x267   : > { %2718 = vmatprep.subr.bf16.mxu0 %v3143_v1  ;;  %2742 = vmatprep.subr.bf16.mxu1 %v3143_v1 }
 0x26a   : > { %v2274_v49 = vpop.f32.mrb[4].mxu1 }
 0x26b   : > { %v804_v51 = vpop.f32.mrb[5].mxu1 }
 0x26c   : > { %2440 = vmatprep.mubr.f32.mxu0 %v804_v51  ;;  %2496 = vmatprep.mubr.f32.mxu1 %v804_v51 }
 0x26d   : > { %2441 = vmatmul.mubr.f32.gmra.mrb[36].mxu0 %v2274_v49  ;;  %2497 = vmatmul.mubr.f32.gmra.mrb[36].mxu1 %v2274_v49 }
 0x26e   : > { %2720 = vmatpush3.bf16.xpose.msra.mxu0 %v3467_v17  ;;  %2744 = vmatpush3.bf16.xpose.msra.mxu1 %v3513_v54  ;;  %v3144_v54 = vmov 0.0  }
 0x26f   : > { %2721 = vmatprep.subr.bf16.mxu0 %v3143_v1  ;;  %2745 = vmatprep.subr.bf16.mxu1 %v3143_v1  ;;  %884 = vst [vmem:[%s3602_s29] sm:$0x1] %v3144_v54 }
 0x272   : > { %v2277_v52 = vpop.f32.mrb[6].mxu1 }
 0x273   : > { %v814_v53 = vpop.f32.mrb[7].mxu1 }
 0x274   : > { %2443 = vmatprep.mubr.f32.mxu0 %v814_v53  ;;  %2499 = vmatprep.mubr.f32.mxu1 %v814_v53 }
 0x275   : > { %2444 = vmatmul.mubr.f32.gmra.mrb[38].mxu0 %v2277_v52  ;;  %2500 = vmatmul.mubr.f32.gmra.mrb[38].mxu1 %v2277_v52 }
 0x276   : > { %2723 = vmatpush3.bf16.xpose.msra.mxu0 %v3472_v21  ;;  %2747 = vmatpush3.bf16.xpose.msra.mxu1 %v3518_v58 }
 0x277   : > { %2724 = vmatprep.subr.bf16.mxu0 %v3143_v1  ;;  %2748 = vmatprep.subr.bf16.mxu1 %v3143_v1 }
 0x27a   : > { %v2280_v55 = vpop.f32.mrb[8].mxu1 }
 0x27b   : > { %v824_v56 = vpop.f32.mrb[9].mxu1 }
 0x27c   : > { %2446 = vmatprep.mubr.f32.mxu0 %v824_v56  ;;  %2502 = vmatprep.mubr.f32.mxu1 %v824_v56 }
 0x27d   : > { %2447 = vmatmul.mubr.f32.gmra.mrb[40].mxu0 %v2280_v55  ;;  %2503 = vmatmul.mubr.f32.gmra.mrb[40].mxu1 %v2280_v55 }
 0x27e   : > { %2726 = vmatpush3.bf16.xpose.msra.mxu0 %v3477_v25  ;;  %2750 = vmatpush3.bf16.xpose.msra.mxu1 %v3523_v62 }
 0x27f   : > { %2727 = vmatprep.subr.bf16.mxu0 %v3143_v1  ;;  %2751 = vmatprep.subr.bf16.mxu1 %v3143_v1 }
 0x282   : > { %v2283_v57 = vpop.f32.mrb[10].mxu1 }
 0x283   : > { %v834_v59 = vpop.f32.mrb[11].mxu1 }
 0x284   : > { %2449 = vmatprep.mubr.f32.mxu0 %v834_v59  ;;  %2505 = vmatprep.mubr.f32.mxu1 %v834_v59 }
 0x285   : > { %2450 = vmatmul.mubr.f32.gmra.mrb[42].mxu0 %v2283_v57  ;;  %2506 = vmatmul.mubr.f32.gmra.mrb[42].mxu1 %v2283_v57 }
 0x286   : > { %2729 = vmatpush3.bf16.xpose.msra.mxu0 %v3482_v29  ;;  %2753 = vmatpush3.bf16.xpose.msra.mxu1 %v3528_v2 }
 0x287   : > { %2730 = vmatprep.subr.bf16.mxu0 %v3143_v1  ;;  %2754 = vmatprep.subr.bf16.mxu1 %v3143_v1 }
 0x28a   : > { %v2286_v60 = vpop.f32.mrb[12].mxu1 }
 0x28b   : > { %v844_v61 = vpop.f32.mrb[13].mxu1 }
 0x28c   : > { %2452 = vmatprep.mubr.f32.mxu0 %v844_v61  ;;  %2508 = vmatprep.mubr.f32.mxu1 %v844_v61 }
 0x28d   : > { %2453 = vmatmul.mubr.f32.gmra.mrb[44].mxu0 %v2286_v60  ;;  %2509 = vmatmul.mubr.f32.gmra.mrb[44].mxu1 %v2286_v60 }
 0x28e   : > { %2732 = vmatpush3.bf16.xpose.msra.mxu0 %v3487_v33  ;;  %2756 = vmatpush3.bf16.xpose.msra.mxu1 %v3533_v6 }
 0x28f   : > { %2733 = vmatprep.subr.bf16.mxu0 %v3143_v1  ;;  %2757 = vmatprep.subr.bf16.mxu1 %v3143_v1 }
 0x292   : > { %v2289_v63 = vpop.f32.mrb[14].mxu1 }
 0x293   : > { %v854_v0 = vpop.f32.mrb[15].mxu1 }
 0x294   : > { %2455 = vmatprep.mubr.f32.mxu0 %v854_v0  ;;  %2511 = vmatprep.mubr.f32.mxu1 %v854_v0 }
 0x295   : > { %2456 = vmatmul.mubr.f32.gmra.mrb[46].mxu0 %v2289_v63  ;;  %2512 = vmatmul.mubr.f32.gmra.mrb[46].mxu1 %v2289_v63 }
 0x296   : > { %2735 = vmatpush3.bf16.xpose.msra.mxu0 %v3492_v37  ;;  %2759 = vmatpush3.bf16.xpose.msra.mxu1 %v3538_v12 }
 0x297   : > { %2546 = vmatprep.mubr.msk.f32.mxu0 %vm3145_vm1, %v3144_v54  ;;  %2581 = vmatprep.mubr.msk.f32.mxu1 %vm3145_vm1, %v3144_v54 }
 0x2f0   : > { %v2324_v7 = vpop.f32.mrb[16].mxu0  ;;  %v2380_v9 = vpop.f32.mrb[16].mxu1 }
 0x2f1   : > { %v1015_v13 = vpop.f32.mrb[17].mxu0  ;;  %v1160_v17 = vpop.f32.mrb[17].mxu1 }
 0x2f8   : > { %v2327_v21 = vpop.f32.mrb[18].mxu0  ;;  %v2383_v25 = vpop.f32.mrb[18].mxu1 }
 0x2f9   : > { %v3597_v50 = vpop.f32.mrb[19].mxu0  ;;  %v1170_v29 = vpop.f32.mrb[19].mxu1 }
 0x300   : > { %v3605_v33 = vpop.f32.mrb[20].mxu0  ;;  %v3607_v58 = vpop.f32.mrb[20].mxu1 }
 0x301   : > { %v3609_v62 = vpop.f32.mrb[21].mxu0  ;;  %v3611_v2 = vpop.f32.mrb[21].mxu1 }
 0x308   : > { %v3613_v3 = vpop.f32.mrb[22].mxu0  ;;  %v3615_v37 = vpop.f32.mrb[22].mxu1 }
 0x309   : > { %v3617_v4 = vpop.f32.mrb[23].mxu0  ;;  %v3619_v5 = vpop.f32.mrb[23].mxu1 }
 0x310   : > { %v3621_v6 = vpop.f32.mrb[24].mxu0  ;;  %v3623_v8 = vpop.f32.mrb[24].mxu1 }
 0x311   : > { %v3625_v10 = vpop.f32.mrb[25].mxu0  ;;  %v3627_v11 = vpop.f32.mrb[25].mxu1 }
 0x318   : > { %v3629_v12 = vpop.f32.mrb[26].mxu0  ;;  %v3631_v14 = vpop.f32.mrb[26].mxu1 }
 0x319   : > { %v3633_v15 = vpop.f32.mrb[27].mxu0  ;;  %v3635_v16 = vpop.f32.mrb[27].mxu1 }
 0x320   : > { %v3637_v18 = vpop.f32.mrb[28].mxu0  ;;  %v3639_v19 = vpop.f32.mrb[28].mxu1 }
 0x321   : > { %v3641_v20 = vpop.f32.mrb[29].mxu0  ;;  %v3643_v22 = vpop.f32.mrb[29].mxu1 }
 0x328   : > { %v3645_v23 = vpop.f32.mrb[30].mxu0  ;;  %v3647_v24 = vpop.f32.mrb[30].mxu1 }
 0x329   : > { %v3649_v26 = vpop.f32.mrb[31].mxu0  ;;  %v3651_v27 = vpop.f32.mrb[31].mxu1 }
 0x330   : > { %v2436_v28 = vpop.f32.mrb[32].mxu0  ;;  %v2492_v30 = vpop.f32.mrb[32].mxu1 }
 0x331   : > { %v1530_v31 = vmul.f32 %v2436_v28, %v2324_v7  ;;  %v1594_v32 = vmul.f32 %v2436_v28, %v2380_v9  ;;  %v1546_v34 = vmul.f32 %v2492_v30, %v2380_v9  ;;  %v1578_v35 = vmul.f32 %v2492_v30, %v2324_v7  ;;  %v1305_v36 = vpop.f32.mrb[33].mxu0  ;;  %v1450_v38 = vpop.f32.mrb[33].mxu1 }
 0x332   : > { %v1529_v39 = vmul.f32 %v1305_v36, %v1015_v13  ;;  %v1593_v40 = vmul.f32 %v1305_v36, %v1160_v17  ;;  %v1545_v41 = vmul.f32 %v1450_v38, %v1160_v17  ;;  %v1577_v42 = vmul.f32 %v1450_v38, %v1015_v13 }
 0x333   : > { %v1562_v43 = vsub.f32 %v1530_v31, %v1546_v34  ;;  %v1610_v44 = vadd.f32 %v1594_v32, %v1578_v35 }
 0x334   : > { %v1561_v45 = vsub.f32 %v1529_v39, %v1545_v41  ;;  %v1609_v46 = vadd.f32 %v1593_v40, %v1577_v42 }
 0x336   : > { %v1625_v47 = vadd.f32 %v1562_v43, %v1561_v45  ;;  %v1646_v48 = vadd.f32 %v1610_v44, %v1609_v46 }
 0x338   : > { %v2439_v49 = vpop.f32.mrb[34].mxu0  ;;  %v2495_v51 = vpop.f32.mrb[34].mxu1 }
 0x339   : > { %v1532_v52 = vmul.f32 %v2439_v49, %v2327_v21  ;;  %v1596_v53 = vmul.f32 %v2439_v49, %v2383_v25  ;;  %v1548_v55 = vmul.f32 %v2495_v51, %v2383_v25  ;;  %v1580_v56 = vmul.f32 %v2495_v51, %v2327_v21  ;;  %v1315_v57 = vpop.f32.mrb[35].mxu0  ;;  %v1460_v59 = vpop.f32.mrb[35].mxu1 }
 0x33a   : > { %v1531_v60 = vmul.f32 %v1315_v57, %v3597_v50  ;;  %v1595_v61 = vmul.f32 %v1315_v57, %v1170_v29  ;;  %v1547_v63 = vmul.f32 %v1460_v59, %v1170_v29  ;;  %v1579_v0 = vmul.f32 %v1460_v59, %v3597_v50 }
 0x33b   : > { %v1564_v1 = vsub.f32 %v1532_v52, %v1548_v55  ;;  %v1612_v7 = vadd.f32 %v1596_v53, %v1580_v56 }
 0x33c   : > { %v1563_v9 = vsub.f32 %v1531_v60, %v1547_v63  ;;  %v1611_v13 = vadd.f32 %v1595_v61, %v1579_v0 }
 0x33e   : > { %v1626_v17 = vadd.f32 %v1625_v47, %v1563_v9  ;;  %v1647_v54 = vadd.f32 %v1646_v48, %v1611_v13 }
 0x340   : > { %v2442_v28 = vpop.f32.mrb[36].mxu0  ;;  %v2498_v30 = vpop.f32.mrb[36].mxu1  ;;  %v1627_v31 = vadd.f32 %v1626_v17, %v1564_v1  ;;  %v1648_v32 = vadd.f32 %v1647_v54, %v1612_v7 }
 0x341   : > { %v1534_v21 = vmul.f32 %v2442_v28, %v3605_v33  ;;  %v1598_v25 = vmul.f32 %v2442_v28, %v3607_v58  ;;  %v1550_v34 = vmul.f32 %v2498_v30, %v3607_v58  ;;  %v1582_v29 = vmul.f32 %v2498_v30, %v3605_v33  ;;  %v1325_v35 = vpop.f32.mrb[37].mxu0  ;;  %v1470_v50 = vpop.f32.mrb[37].mxu1 }
 0x342   : > { %v1533_v36 = vmul.f32 %v1325_v35, %v3609_v62  ;;  %v1597_v38 = vmul.f32 %v1325_v35, %v3611_v2  ;;  %v1549_v39 = vmul.f32 %v1470_v50, %v3611_v2  ;;  %v1581_v40 = vmul.f32 %v1470_v50, %v3609_v62 }
 0x343   : > { %v1566_v41 = vsub.f32 %v1534_v21, %v1550_v34  ;;  %v1614_v42 = vadd.f32 %v1598_v25, %v1582_v29 }
 0x344   : > { %v1565_v43 = vsub.f32 %v1533_v36, %v1549_v39  ;;  %v1613_v44 = vadd.f32 %v1597_v38, %v1581_v40 }
 0x346   : > { %v1628_v45 = vadd.f32 %v1627_v31, %v1565_v43  ;;  %v1649_v46 = vadd.f32 %v1648_v32, %v1613_v44 }
 0x348   : > { %v2445_v47 = vpop.f32.mrb[38].mxu0  ;;  %v2501_v58 = vpop.f32.mrb[38].mxu1  ;;  %v1629_v48 = vadd.f32 %v1628_v45, %v1566_v41  ;;  %v1650_v33 = vadd.f32 %v1649_v46, %v1614_v42 }
 0x349   : > { %v1536_v49 = vmul.f32 %v2445_v47, %v3613_v3  ;;  %v1600_v51 = vmul.f32 %v2445_v47, %v3615_v37  ;;  %v1552_v52 = vmul.f32 %v2501_v58, %v3615_v37  ;;  %v1584_v2 = vmul.f32 %v2501_v58, %v3613_v3  ;;  %v1335_v53 = vpop.f32.mrb[39].mxu0  ;;  %v1480_v62 = vpop.f32.mrb[39].mxu1 }
 0x34a   : > { %v1535_v55 = vmul.f32 %v1335_v53, %v3617_v4  ;;  %v1599_v56 = vmul.f32 %v1335_v53, %v3619_v5  ;;  %v1551_v57 = vmul.f32 %v1480_v62, %v3619_v5  ;;  %v1583_v59 = vmul.f32 %v1480_v62, %v3617_v4 }
 0x34b   : > { %v1568_v60 = vsub.f32 %v1536_v49, %v1552_v52  ;;  %v1616_v61 = vadd.f32 %v1600_v51, %v1584_v2 }
 0x34c   : > { %v1567_v63 = vsub.f32 %v1535_v55, %v1551_v57  ;;  %v1615_v0 = vadd.f32 %v1599_v56, %v1583_v59 }
 0x34e   : > { %v1630_v1 = vadd.f32 %v1629_v48, %v1567_v63  ;;  %v1651_v7 = vadd.f32 %v1650_v33, %v1615_v0 }
 0x350   : > { %v2448_v9 = vpop.f32.mrb[40].mxu0  ;;  %v2504_v37 = vpop.f32.mrb[40].mxu1  ;;  %v1631_v13 = vadd.f32 %v1630_v1, %v1568_v60  ;;  %v1652_v3 = vadd.f32 %v1651_v7, %v1616_v61 }
 0x351   : > { %v1538_v17 = vmul.f32 %v2448_v9, %v3621_v6  ;;  %v1602_v54 = vmul.f32 %v2448_v9, %v3623_v8  ;;  %v1554_v28 = vmul.f32 %v2504_v37, %v3623_v8  ;;  %v1586_v5 = vmul.f32 %v2504_v37, %v3621_v6  ;;  %v1345_v30 = vpop.f32.mrb[41].mxu0  ;;  %v1490_v4 = vpop.f32.mrb[41].mxu1 }
 0x352   : > { %v1537_v31 = vmul.f32 %v1345_v30, %v3625_v10  ;;  %v1601_v32 = vmul.f32 %v1345_v30, %v3627_v11  ;;  %v1553_v21 = vmul.f32 %v1490_v4, %v3627_v11  ;;  %v1585_v25 = vmul.f32 %v1490_v4, %v3625_v10 }
 0x353   : > { %v1570_v34 = vsub.f32 %v1538_v17, %v1554_v28  ;;  %v1618_v29 = vadd.f32 %v1602_v54, %v1586_v5  ;;  %v1668_v28 = vlaneseq }
 0x354   : > { %v1569_v35 = vsub.f32 %v1537_v31, %v1553_v21  ;;  %v1617_v50 = vadd.f32 %v1601_v32, %v1585_v25 }
 0x356   : > { %v1632_v36 = vadd.f32 %v1631_v13, %v1569_v35  ;;  %v1653_v38 = vadd.f32 %v1652_v3, %v1617_v50 }
 0x358   : > { %v2451_v39 = vpop.f32.mrb[42].mxu0  ;;  %v2507_v8 = vpop.f32.mrb[42].mxu1  ;;  %v1633_v40 = vadd.f32 %v1632_v36, %v1570_v34  ;;  %v1654_v6 = vadd.f32 %v1653_v38, %v1618_v29  ;;  %v1669_v38 = vand.u32 127, %v1668_v28 }
 0x359   : > { %v1540_v41 = vmul.f32 %v2451_v39, %v3629_v12  ;;  %v1604_v42 = vmul.f32 %v2451_v39, %v3631_v14  ;;  %v1556_v43 = vmul.f32 %v2507_v8, %v3631_v14  ;;  %v1588_v11 = vmul.f32 %v2507_v8, %v3629_v12  ;;  %v1355_v44 = vpop.f32.mrb[43].mxu0  ;;  %v1500_v10 = vpop.f32.mrb[43].mxu1 }
 0x35a   : > { %v1539_v45 = vmul.f32 %v1355_v44, %v3633_v15  ;;  %v1603_v46 = vmul.f32 %v1355_v44, %v3635_v16  ;;  %v1555_v47 = vmul.f32 %v1500_v10, %v3635_v16  ;;  %v1587_v58 = vmul.f32 %v1500_v10, %v3633_v15 }
 0x35b   : > { %v1572_v48 = vsub.f32 %v1540_v41, %v1556_v43  ;;  %v1620_v33 = vadd.f32 %v1604_v42, %v1588_v11  ;;  %vm1672_vm2 = vcmp.eq.s32.totalorder %v1669_v38, 0 }
 0x35c   : > { %v1571_v49 = vsub.f32 %v1539_v45, %v1555_v47  ;;  %v1619_v51 = vadd.f32 %v1603_v46, %v1587_v58  ;;  %v3146_v46 = vmov 2.0  }
 0x35e   : > { %v1634_v52 = vadd.f32 %v1633_v40, %v1571_v49  ;;  %v1655_v2 = vadd.f32 %v1654_v6, %v1619_v51  ;;  %v1679_v51 = vld [vmem:[%s3602_s29] sm:$0x1] }
 0x360   : > { %v2454_v53 = vpop.f32.mrb[44].mxu0  ;;  %v2510_v14 = vpop.f32.mrb[44].mxu1  ;;  %v1635_v62 = vadd.f32 %v1634_v52, %v1572_v48  ;;  %v1656_v12 = vadd.f32 %v1655_v2, %v1620_v33 }
 0x361   : > { %v1542_v55 = vmul.f32 %v2454_v53, %v3637_v18  ;;  %v1606_v56 = vmul.f32 %v2454_v53, %v3639_v19  ;;  %v1558_v57 = vmul.f32 %v2510_v14, %v3639_v19  ;;  %v1590_v16 = vmul.f32 %v2510_v14, %v3637_v18  ;;  %v1365_v59 = vpop.f32.mrb[45].mxu0  ;;  %v1510_v15 = vpop.f32.mrb[45].mxu1 }
 0x362   : > { %v1541_v60 = vmul.f32 %v1365_v59, %v3641_v20  ;;  %v1605_v61 = vmul.f32 %v1365_v59, %v3643_v22  ;;  %v1557_v63 = vmul.f32 %v1510_v15, %v3643_v22  ;;  %v1589_v0 = vmul.f32 %v1510_v15, %v3641_v20 }
 0x363   : > { %v1574_v1 = vsub.f32 %v1542_v55, %v1558_v57  ;;  %v1622_v7 = vadd.f32 %v1606_v56, %v1590_v16 }
 0x364   : > { %v1573_v9 = vsub.f32 %v1541_v60, %v1557_v63  ;;  %v1621_v37 = vadd.f32 %v1605_v61, %v1589_v0 }
 0x366   : > { %v1636_v13 = vadd.f32 %v1635_v62, %v1573_v9  ;;  %v1657_v3 = vadd.f32 %v1656_v12, %v1621_v37 }
 0x368   : > { %v2457_v17 = vpop.f32.mrb[46].mxu0  ;;  %v2513_v19 = vpop.f32.mrb[46].mxu1  ;;  %v1637_v54 = vadd.f32 %v1636_v13, %v1574_v1  ;;  %v1658_v18 = vadd.f32 %v1657_v3, %v1622_v7 }
 0x369   : > { %v1544_v5 = vmul.f32 %v2457_v17, %v3645_v23  ;;  %v1608_v30 = vmul.f32 %v2457_v17, %v3647_v24  ;;  %v1560_v4 = vmul.f32 %v2513_v19, %v3647_v24  ;;  %v1592_v22 = vmul.f32 %v2513_v19, %v3645_v23  ;;  %v1375_v20 = vpop.f32.mrb[47].mxu0  ;;  %v1520_v31 = vpop.f32.mrb[47].mxu1 }
 0x36a   : > { %v1543_v32 = vmul.f32 %v1375_v20, %v3649_v26  ;;  %v1607_v21 = vmul.f32 %v1375_v20, %v3651_v27  ;;  %v1559_v25 = vmul.f32 %v1520_v31, %v3651_v27  ;;  %v1591_v34 = vmul.f32 %v1520_v31, %v3649_v26 }
 0x36b   : > { %v1576_v29 = vsub.f32 %v1544_v5, %v1560_v4  ;;  %v1624_v35 = vadd.f32 %v1608_v30, %v1592_v22  ;;  %v1673_v23 = vmul.u32 2, %v1669_v38 }
 0x36c   : > { %v1575_v50 = vsub.f32 %v1543_v32, %v1559_v25  ;;  %v1623_v36 = vadd.f32 %v1607_v21, %v1591_v34 }
 0x36d   : > { %vm1674_vm3 = vcmp.eq.s32.totalorder %v1673_v23, 32 }
 0x36e   : > { %v1638_v39 = vadd.f32 %v1637_v54, %v1575_v50  ;;  %v1659_v8 = vadd.f32 %v1658_v18, %v1623_v36  ;;  %vm1675_vm4 = vmor %vm1672_vm2, %vm1674_vm3 }
 0x36f   : > { %v1676_v47 = vsel %vm1675_vm4, 1.0, %v3146_v46 }
 0x370   : > { %v1639_v24 = vadd.f32 %v1638_v39, %v1576_v29  ;;  %v1660_v40 = vadd.f32 %v1659_v8, %v1624_v35 }
 0x372   : > { %v1640_v6 = vrot.slane %v1639_v24, 4  ;;  %v1661_v41 = vrot.slane %v1660_v40, 4 }
 0x374   : > { %v1641_v42 = vadd.f32 %v1640_v6, %v1639_v24  ;;  %v1662_v43 = vadd.f32 %v1661_v41, %v1660_v40 }
 0x376   : > { %v1642_v27 = vrot.slane %v1641_v42, 2  ;;  %v1663_v11 = vrot.slane %v1662_v43, 2 }
 0x378   : > { %v1643_v26 = vadd.f32 %v1642_v27, %v1641_v42  ;;  %v1664_v44 = vadd.f32 %v1663_v11, %v1662_v43 }
 0x37a   : > { %v1644_v10 = vrot.slane %v1643_v26, 1  ;;  %v1665_v45 = vrot.slane %v1664_v44, 1 }
 0x37c   : > { %v1645_v58 = vadd.f32 %v1644_v10, %v1643_v26  ;;  %v1666_v48 = vadd.f32 %v1665_v45, %v1664_v44 }
 0x37e   : > { %v1677_v33 = vmul.f32 %v1676_v47, %v1645_v58  ;;  %v1678_v49 = vmul.f32 %v1676_v47, %v1666_v48 }
 0x380   : > { %2547 = vmatmul.mubr.f32.vlgmr.msra.gmra.mrb[48].mxu0 %v1677_v33  ;;  %2582 = vmatmul.mubr.f32.vlgmr.msra.gmra.mrb[48].mxu1 %v1678_v49 }
 0x453   : > { %v1746_v52 = vpop.f32.mrb[48].mxu0  ;;  %v1819_v2 = vpop.f32.mrb[48].mxu1 }
 0x454   : > { %v1750_v53 = vadd.f32 %v1746_v52, %v1679_v51  ;;  %v2548_v14 = vpop.f32.mrb[49].mxu0  ;;  %v2583_v62 = vpop.f32.mrb[49].mxu1 }
 0x456   : > { %1751 = vst [vmem:[%s3602_s29] sm:$0x1] %v1750_v53 }
 0x45d   : > { %v1752_v12 = vld [vmem:[%s3602_s29] sm:$0x1] }
 0x45e   : > { %v1823_v55 = vadd.f32 %v1819_v2, %v1752_v12 }
 0x460   : > { %1824 = vst [vmem:[%s3602_s29] sm:$0x1] %v1823_v55 }
 0x467   : > { %v1827_v56 = vld [vmem:[%s3602_s29] sm:$0x1] }
 0x468   : > { %v1828_v57 = vmul.f32 0.03125, %v1827_v56 }
 0x46a   : > { %1829 = vst [vmem:[%s3602_s29] sm:$0x1] %v1828_v57 }
 0x46b   : > { %3037 = shalt.err (!%p3034_p10)
}
 0x46c   : > { %s3038_s2 = scalar_lea.hbm %s3714_s13, 16  ;;  %s3042_s12 = scalar_lea.hbm %s3811_s17, 64 }
 0x46d   : > { %p3039_p1 = scmp.ne.s32.totalorder %s3714_s13, %s3038_s2  ;;  %p3043_p0 = scmp.lt.u32.totalorder %s3714_s13, %s3811_s17 }
 0x46e   : > { %p3044_p8 = scmp.lt.u32.totalorder %s3042_s12, %s3038_s2  ;;  %p3046_p7 = scmp.lt.u32.totalorder %s3038_s2, %s3714_s13 }
 0x46f   : > { %p3040_p5 = pnand %p3039_p1, %p3812_p12 }
 0x470   : > { %p3045_p3 = por %p3044_p8, %p3043_p0 }
 0x471   : > { %p3041_p4 = pneg %p3040_p5 }
 0x472   : > { %p3047_p11 = por %p3046_p7, %p3045_p3 }
 0x474   : > { %p3048_p13 = pnand %p3047_p11, %p3041_p4 }
 0x476   : > { %3051 = shalt.err (!%p3048_p13)
}
 0x477   : > { %2776 = dma.vmem_to_hbm [thread:$0]  (%p3812_p12), %s3716_s21, 16, %s3714_s13, %s1831_s5  }
 0x478 PF: > { %s3813_s16 = sld [smem:[#allocation19_spill]]  ;;  %s3814_s29 = sld [smem:[#allocation20_spill]] }
 0x479   : > { %p2806_p9 = scmp.ge.s32.totalorder %s3134_s28, 2 }
 0x47e   : > { %s1857_s11 = sand.u32 1, %s3813_s16   ;;  %p3815_p2 = scmp.ne.s32.totalorder %s3814_s29, 0 }
 0x47f   : > { %s1858_s4 = scalar_lea.sflag [#allocation6], %s1857_s11 }
 0x480   : > { %p2796_p6 = pnand %p2806_p9, %p3815_p2 }
 0x482   : > { %3101 = dma.done.wait (!%p2796_p6), %s1858_s4, 16  }
 0x483   : > { %3103 = vsyncadd (!%p2796_p6), %s1858_s4, 4294967280  ;;  %s26_s28 = sadd.s32 1, %s3134_s28   ;;  %s3816_s30 = sld [smem:[#allocation21_spill]] }
 0x484   : > { %p23_p10 = scmp.ge.s32.totalorder %s26_s28, 6   ;;  %s3817_s8 = sld [smem:[#allocation22_spill]] }
 0x485   : > { %s3818_s21 = smov %s3110_s22  ;;  %s3819_s22 = smov %s3114_s23 }
 0x486   : > { %s3820_s23 = smov %s3358_s20  ;;  %s3821_s24 = smov %s3126_s26 }
 0x487   : > { %s3822_s25 = smov %s3130_s27  ;;  %25 = sbr.rel (!%p23_p10) target bundleno = 15 (0xf), region = 126 }
 0x489   : > { %s3823_s26 = smov %s3816_s30 }
 0x48a   : > { %s3824_s27 = smov %s3817_s8 }
 0x48e   :  { %1862 = vsyncpa [#allocation5], 1 }
 0x48f   :  { %1864 = vsyncpa [#allocation5 + $0x1], 1 }
 0x490   :  { %1865 = vsyncpa [#allocation8], 1 }
 0x491   :  { %1867 = vsyncpa [#allocation8 + $0x1], 1 }
 0x492   :  { %1868 = vsyncpa [#allocation11], 1 }
 0x493   :  { %1869 = vsyncpa [#allocation6], 1 }
 0x494   :  { %1871 = vsyncpa [#allocation6 + $0x1], 1 }

</bundles_post_ra>
